<compile_context>
chip_gen: v7x
topology: tpu7x:2x2x1
jax: 0.10.0
libtpu: 0.0.40
codegen_flags: <defaults>
</compile_context>

<pallas_src>
import functools

import jax
import jax.numpy as jnp
from jax.experimental import pallas as pl
from jax.experimental.pallas import tpu as pltpu


# ----------------------------------------------------------------------------
# Portable counter-based Gaussian sampler (pure jnp ops -> lowers everywhere).
# ----------------------------------------------------------------------------
def _hash_u32(x):
    """lowbias32 integer hash (full 32-bit avalanche); VPU-only ops."""
    x = x ^ (x >> 16)
    x = x * jnp.uint32(0x7FEB352D)
    x = x ^ (x >> 15)
    x = x * jnp.uint32(0x846CA68B)
    x = x ^ (x >> 16)
    return x


def _uniform_from_counter(idx_u32, seed_u32):
    """counter + seed -> uniform float32 strictly inside (0, 1)."""
    h = _hash_u32(idx_u32 ^ (seed_u32 * jnp.uint32(0x9E3779B9)))
    bits = (h >> 9).astype(jnp.int32)                  # top 23 bits, [0, 2^23)
    # (bits + 0.5) / 2^23 is exact in f32 and never rounds to 0.0 or 1.0.
    return (bits.astype(jnp.float32) + 0.5) * jnp.float32(1.0 / 8388608.0)


def _inv_normal_cdf(p):
    """Acklam's rational approximation of the inverse normal CDF.

    Uses only mul/add/div/select plus log and sqrt (no trig), so it lowers on
    every TPU generation and in interpret mode.  Accuracy in f32 is ~1e-5
    typically (up to ~1% very near the branch seam) — far more than adequate
    for weight-noise injection.
    """
    a1, a2, a3 = -3.969683028665376e+01, 2.209460984245205e+02, -2.759285104469687e+02
    a4, a5, a6 = 1.383577518672690e+02, -3.066479806614716e+01, 2.506628277459239e+00
    b1, b2, b3 = -5.447609879822406e+01, 1.615858368580409e+02, -1.556989798598866e+02
    b4, b5 = 6.680131188771972e+01, -1.328068155288572e+01
    c1, c2, c3 = -7.784894002430293e-03, -3.223964580411365e-01, -2.400758277161838e+00
    c4, c5, c6 = -2.549732539343734e+00, 4.374664141464968e+00, 2.938163982698783e+00
    d1, d2 = 7.784695709041462e-03, 3.224671290700398e-01
    d3, d4 = 2.445134137142996e+00, 3.754408661907416e+00
    p_low = 0.02425

    # central region
    q = p - 0.5
    r = q * q
    num_c = (((((a1 * r + a2) * r + a3) * r + a4) * r + a5) * r + a6) * q
    den_c = ((((b1 * r + b2) * r + b3) * r + b4) * r + b5) * r + 1.0
    x_center = num_c / den_c

    # lower tail
    ql = jnp.sqrt(-2.0 * jnp.log(p))
    x_low = ((((((c1 * ql + c2) * ql + c3) * ql + c4) * ql + c5) * ql + c6)
             / ((((d1 * ql + d2) * ql + d3) * ql + d4) * ql + 1.0))

    # upper tail (1 - p is exact here since p in [0.5, 1) for this branch)
    qu = jnp.sqrt(-2.0 * jnp.log(1.0 - p))
    x_high = -((((((c1 * qu + c2) * qu + c3) * qu + c4) * qu + c5) * qu + c6)
               / ((((d1 * qu + d2) * qu + d3) * qu + d4) * qu + 1.0))

    x = jnp.where(p < p_low, x_low, x_center)
    x = jnp.where(p > 1.0 - p_low, x_high, x)
    return x


def _normal_from_counter(idx_u32, seed_u32):
    return _inv_normal_cdf(_uniform_from_counter(idx_u32, seed_u32))


# ----------------------------------------------------------------------------
# Kernel
# ----------------------------------------------------------------------------
def _gaussian_prior_kernel(seed_ref, x_ref, wmean_ref, alpha_ref, bias_ref,
                           o_ref, acc_ref, *, mxu_dtype):
    n = pl.program_id(0)                 # OUT tile   ("parallel")
    k = pl.program_id(1)                 # IN  tile   ("arbitrary" / reduction)
    num_k = pl.num_programs(1)
    tk, tn = wmean_ref.shape

    # Fold the bias add into the accumulator init (no separate epilogue pass).
    @pl.when(k == 0)
    def _():
        acc_ref[...] = jnp.broadcast_to(
            bias_ref[...].astype(jnp.float32), acc_ref.shape)

    # Per-tile unique counters -> hash -> N(0, 1) noise for this weight tile.
    # tile_id is unique per (n, k), so no two tiles reuse the same noise.
    seed_u = seed_ref[0].astype(jnp.uint32)
    tile_id = (n * num_k + k).astype(jnp.uint32)
    row = jax.lax.broadcasted_iota(jnp.int32, (tk, tn), 0).astype(jnp.uint32)
    col = jax.lax.broadcasted_iota(jnp.int32, (tk, tn), 1).astype(jnp.uint32)
    idx = tile_id * jnp.uint32(tk * tn) + row * jnp.uint32(tn) + col
    eps = _normal_from_counter(idx, seed_u)                      # (tk, tn) f32

    # weights = mean + sqrt(alpha_i) * eps   (all f32 on the VPU/EUP)
    std = jnp.sqrt(alpha_ref[...])                               # (tk, 1)
    w = wmean_ref[...].astype(jnp.float32) + std * eps           # (tk, tn)

    # MXU partial matmul: bf16 operands (full MXU rate), f32 accumulation.
    acc_ref[...] += jnp.dot(x_ref[...].astype(mxu_dtype), w.astype(mxu_dtype),
                            preferred_element_type=jnp.float32)

    # Lane-dense writeback on the final K step only.
    @pl.when(k == num_k - 1)
    def _():
        o_ref[...] = acc_ref[...].astype(o_ref.dtype)


# ----------------------------------------------------------------------------
# Wrapper
# ----------------------------------------------------------------------------
def _pick_tile(dim, candidates):
    for c in candidates:
        if dim % c == 0:
            return c
    return dim        # fall back to the full (untiled) dimension


def gaussian_prior_layer(x, weights_mean, bias, alpha_i, seed, *,
                         block_n=None, block_k=None,
                         mxu_dtype=jnp.bfloat16,
                         weights_stream_dtype=jnp.float32):
    """Forward pass of GaussianPriorLayer.

    x:            (B, in_features)               float32
    weights_mean: (in_features, out_features)    float32
    bias:         (out_features,)                float32
    alpha_i:      (in_features,)                 float32, must be > 0
    seed:         int — vary per call to emulate torch's fresh randn per forward
    weights_stream_dtype: set to jnp.bfloat16 to halve the dominant HBM stream
                          (weights_mean) on v6e/v7x (slightly quantizes means).
    """
    x = x.astype(jnp.float32)
    B, IN = x.shape
    IN2, OUT = weights_mean.shape
    assert IN == IN2, (IN, IN2)

    tn = block_n or _pick_tile(OUT, (512, 256, 128))
    tk = block_k or _pick_tile(IN, (512, 256, 128, 64, 32, 16, 8))
    num_n, num_k = OUT // tn, IN // tk

    wmean = weights_mean.astype(weights_stream_dtype)
    alpha_col = alpha_i.reshape(IN, 1).astype(jnp.float32)
    bias_row = bias.reshape(1, OUT).astype(jnp.float32)
    seed_arr = jnp.asarray([seed], dtype=jnp.int32)

    # Explicit scoped-VMEM budget with headroom (double-buffered input tiles +
    # output tile + f32 accumulator); stays well under every generation's limit.
    est = 4 * (2 * (B * tk + tk * tn + tk + tn) + 2 * B * tn + B * tn)
    vmem_limit = int(min(max(4 * est, 16 * 1024 * 1024), 32 * 1024 * 1024))

    grid_spec = pltpu.PrefetchScalarGridSpec(
        num_scalar_prefetch=1,                         # seed lives in SMEM
        grid=(num_n, num_k),                           # reduction axis last
        in_specs=[
            pl.BlockSpec((B, tk), lambda n, k, seed: (0, k)),    # x
            pl.BlockSpec((tk, tn), lambda n, k, seed: (k, n)),   # weights_mean
            pl.BlockSpec((tk, 1), lambda n, k, seed: (k, 0)),    # alpha column
            pl.BlockSpec((1, tn), lambda n, k, seed: (0, n)),    # bias row
        ],
        out_specs=pl.BlockSpec((B, tn), lambda n, k, seed: (0, n)),
        scratch_shapes=[pltpu.VMEM((B, tn), jnp.float32)],       # f32 accumulator
    )

    kernel = functools.partial(_gaussian_prior_kernel, mxu_dtype=mxu_dtype)
    return pl.pallas_call(
        kernel,
        out_shape=jax.ShapeDtypeStruct((B, OUT), jnp.float32),
        grid_spec=grid_spec,
        compiler_params=pltpu.CompilerParams(
            dimension_semantics=("parallel", "arbitrary"),  # N shards over TCs (v7x)
            vmem_limit_bytes=vmem_limit,
        ),
    )(seed_arr, x, wmean, alpha_col, bias_row)


# ----------------------------------------------------------------------------
# Pure-JAX reference that regenerates exactly the kernel's tiled noise.
# ----------------------------------------------------------------------------
def _reference_noise(in_features, out_features, tk, tn, seed):
    num_k = in_features // tk
    r = jnp.arange(in_features, dtype=jnp.int32)
    c = jnp.arange(out_features, dtype=jnp.int32)
    tile_id = (c // tn)[None, :] * num_k + (r // tk)[:, None]
    local = (r % tk)[:, None] * tn + (c % tn)[None, :]
    idx = tile_id.astype(jnp.uint32) * jnp.uint32(tk * tn) + local.astype(jnp.uint32)
    return _normal_from_counter(idx, jnp.uint32(seed))


if __name__ == "__main__":
    # Small shapes consistent with the module (a plain linear layer), sized so
    # the grid has multiple tiles on both axes: grid = (3, 3) with 128x128 tiles.
    B, IN, OUT = 8, 384, 384
    seed = 1234

    key = jax.random.PRNGKey(0)
    k_x, k_w, k_b, k_a = jax.random.split(key, 4)
    x = jax.random.normal(k_x, (B, IN), dtype=jnp.float32)
    weights_mean = 0.02 * jax.random.normal(k_w, (IN, OUT), dtype=jnp.float32)
    bias = 0.01 * jax.random.normal(k_b, (OUT,), dtype=jnp.float32)
    alpha_i = jax.random.uniform(k_a, (IN,), dtype=jnp.float32,
                                 minval=0.1, maxval=1.0)

    out = gaussian_prior_layer(x, weights_mean, bias, alpha_i, seed)
    out = jax.block_until_ready(out)

    assert out.shape == (B, OUT)
    assert out.dtype == jnp.float32
    assert bool(jnp.all(jnp.isfinite(out)))

    # Cross-check against a pure-JAX reference using the identical noise stream.
    tn = _pick_tile(OUT, (512, 256, 128))
    tk = _pick_tile(IN, (512, 256, 128, 64, 32, 16, 8))
    eps = _reference_noise(IN, OUT, tk, tn, seed)

    # Sanity on the in-kernel sampler's statistics (~N(0, 1)).
    assert abs(float(jnp.mean(eps))) < 0.03
    assert 0.95 < float(jnp.std(eps)) < 1.05

    w_ref = weights_mean + jnp.sqrt(alpha_i)[:, None] * eps
    y_ref = jnp.dot(x.astype(jnp.bfloat16), w_ref.astype(jnp.bfloat16),
                    preferred_element_type=jnp.float32) + bias[None, :]
    scale = float(jnp.maximum(jnp.max(jnp.abs(y_ref)), 1.0))
    max_err = float(jnp.max(jnp.abs(out - y_ref))) / scale
    assert max_err < 2e-2, f"normalized max error too large: {max_err}"

    print("KERNEL_OK")
</pallas_src>

<mosaic_0001>
module attributes {stable_mosaic.version = 11 : i64} {
  func.func @_gaussian_prior_kernel(%arg0: i32, %arg1: i32, %arg2: memref<1xi32, #tpu.memory_space<smem>>, %arg3: memref<8x128xf32, #tpu.memory_space<vmem>>, %arg4: memref<128x128xf32, #tpu.memory_space<vmem>>, %arg5: memref<128x1xf32, #tpu.memory_space<vmem>>, %arg6: memref<1x128xf32, #tpu.memory_space<vmem>>, %arg7: memref<8x128xf32, #tpu.memory_space<vmem>>, %arg8: memref<8x128xf32, #tpu.memory_space<vmem>>) attributes {dimension_semantics = [#tpu.dimension_semantics<parallel>, #tpu.dimension_semantics<arbitrary>], iteration_bounds = array<i64: 3, 3>, scalar_prefetch = 1 : i64, scratch_operands = 1 : i64, tpu.core_type = #tpu.core_type<tc>, window_params = [{transform_indices = @transform_0, window_bounds = array<i64: 8, 128>}, {transform_indices = @transform_1, window_bounds = array<i64: 128, 128>}, {transform_indices = @transform_2, window_bounds = array<i64: 128, 1>}, {transform_indices = @transform_3, window_bounds = array<i64: 1, 128>}, {transform_indices = @transform_4, window_bounds = array<i64: 8, 128>}]} {
    %c0_i32 = arith.constant 0 : i32
    %0 = arith.cmpi eq, %arg1, %c0_i32 : i32
    %1 = arith.extui %0 : i1 to i32
    %c0_i32_0 = arith.constant 0 : i32
    %2 = arith.cmpi ne, %1, %c0_i32_0 : i32
    scf.if %2 {
      %c0_56 = arith.constant 0 : index
      %c0_57 = arith.constant 0 : index
      %168 = vector.load %arg6[%c0_56, %c0_57] : memref<1x128xf32, #tpu.memory_space<vmem>>, vector<1x128xf32>
      %169 = vector.shape_cast %168 : vector<1x128xf32> to vector<1x128xf32>
      %170 = vector.broadcast %169 : vector<1x128xf32> to vector<8x128xf32>
      %c0_58 = arith.constant 0 : index
      %c0_59 = arith.constant 0 : index
      %171 = vector.load %arg8[%c0_58, %c0_59] : memref<8x128xf32, #tpu.memory_space<vmem>>, vector<8x128xf32>
      tpu.vector_store %arg8[%c0_58, %c0_59], %170 {strides = array<i32>} : memref<8x128xf32, #tpu.memory_space<vmem>>, vector<8x128xf32>,
    } else {
    }
    %c0 = arith.constant 0 : index
    %3 = memref.load %arg2[%c0] : memref<1xi32, #tpu.memory_space<smem>>
    %c3_i32 = arith.constant 3 : i32
    %4 = arith.muli %arg0, %c3_i32 : i32
    %5 = arith.addi %4, %arg1 : i32
    %6 = tpu.iota {dimensions = array<i32: 0>} : vector<128x128xi32>
    %7 = tpu.iota {dimensions = array<i32: 1>} : vector<128x128xi32>
    %c16384_i32 = arith.constant 16384 : i32
    %8 = arith.muli %5, %c16384_i32 : i32
    %c128_i32 = arith.constant 128 : i32
    %9 = vector.broadcast %c128_i32 : i32 to vector<128x128xi32>
    %10 = arith.muli %6, %9 : vector<128x128xi32>
    %11 = vector.broadcast %8 : i32 to vector<128x128xi32>
    %12 = arith.addi %11, %10 : vector<128x128xi32>
    %13 = arith.addi %12, %7 : vector<128x128xi32>
    %c-1640531527_i32 = arith.constant -1640531527 : i32
    %14 = arith.muli %3, %c-1640531527_i32 : i32
    %15 = vector.broadcast %14 : i32 to vector<128x128xi32>
    %16 = arith.xori %13, %15 : vector<128x128xi32>
    %c16_i32 = arith.constant 16 : i32
    %17 = vector.broadcast %c16_i32 : i32 to vector<128x128xi32>
    %18 = arith.shrui %16, %17 : vector<128x128xi32>
    %19 = arith.xori %16, %18 : vector<128x128xi32>
    %c2146121005_i32 = arith.constant 2146121005 : i32
    %20 = vector.broadcast %c2146121005_i32 : i32 to vector<128x128xi32>
    %21 = arith.muli %19, %20 : vector<128x128xi32>
    %c15_i32 = arith.constant 15 : i32
    %22 = vector.broadcast %c15_i32 : i32 to vector<128x128xi32>
    %23 = arith.shrui %21, %22 : vector<128x128xi32>
    %24 = arith.xori %21, %23 : vector<128x128xi32>
    %c-2073254261_i32 = arith.constant -2073254261 : i32
    %25 = vector.broadcast %c-2073254261_i32 : i32 to vector<128x128xi32>
    %26 = arith.muli %24, %25 : vector<128x128xi32>
    %c16_i32_1 = arith.constant 16 : i32
    %27 = vector.broadcast %c16_i32_1 : i32 to vector<128x128xi32>
    %28 = arith.shrui %26, %27 : vector<128x128xi32>
    %29 = arith.xori %26, %28 : vector<128x128xi32>
    %c9_i32 = arith.constant 9 : i32
    %30 = vector.broadcast %c9_i32 : i32 to vector<128x128xi32>
    %31 = arith.shrui %29, %30 : vector<128x128xi32>
    %32 = arith.sitofp %31 : vector<128x128xi32> to vector<128x128xf32>
    %cst = arith.constant 5.000000e-01 : f32
    %33 = vector.broadcast %cst : f32 to vector<128x128xf32>
    %34 = arith.addf %32, %33 : vector<128x128xf32>
    %cst_2 = arith.constant 1.1920929E-7 : f32
    %35 = vector.broadcast %cst_2 : f32 to vector<128x128xf32>
    %36 = arith.mulf %34, %35 : vector<128x128xf32>
    %cst_3 = arith.constant 5.000000e-01 : f32
    %37 = vector.broadcast %cst_3 : f32 to vector<128x128xf32>
    %38 = arith.subf %36, %37 : vector<128x128xf32>
    %39 = arith.mulf %38, %38 : vector<128x128xf32>
    %cst_4 = arith.constant -39.6968307 : f32
    %40 = vector.broadcast %cst_4 : f32 to vector<128x128xf32>
    %41 = arith.mulf %40, %39 : vector<128x128xf32>
    %cst_5 = arith.constant 220.946106 : f32
    %42 = vector.broadcast %cst_5 : f32 to vector<128x128xf32>
    %43 = arith.addf %41, %42 : vector<128x128xf32>
    %44 = arith.mulf %43, %39 : vector<128x128xf32>
    %cst_6 = arith.constant -275.928497 : f32
    %45 = vector.broadcast %cst_6 : f32 to vector<128x128xf32>
    %46 = arith.addf %44, %45 : vector<128x128xf32>
    %47 = arith.mulf %46, %39 : vector<128x128xf32>
    %cst_7 = arith.constant 138.357758 : f32
    %48 = vector.broadcast %cst_7 : f32 to vector<128x128xf32>
    %49 = arith.addf %47, %48 : vector<128x128xf32>
    %50 = arith.mulf %49, %39 : vector<128x128xf32>
    %cst_8 = arith.constant -30.6647987 : f32
    %51 = vector.broadcast %cst_8 : f32 to vector<128x128xf32>
    %52 = arith.addf %50, %51 : vector<128x128xf32>
    %53 = arith.mulf %52, %39 : vector<128x128xf32>
    %cst_9 = arith.constant 2.50662827 : f32
    %54 = vector.broadcast %cst_9 : f32 to vector<128x128xf32>
    %55 = arith.addf %53, %54 : vector<128x128xf32>
    %56 = arith.mulf %55, %38 : vector<128x128xf32>
    %cst_10 = arith.constant -54.4760971 : f32
    %57 = vector.broadcast %cst_10 : f32 to vector<128x128xf32>
    %58 = arith.mulf %57, %39 : vector<128x128xf32>
    %cst_11 = arith.constant 161.585831 : f32
    %59 = vector.broadcast %cst_11 : f32 to vector<128x128xf32>
    %60 = arith.addf %58, %59 : vector<128x128xf32>
    %61 = arith.mulf %60, %39 : vector<128x128xf32>
    %cst_12 = arith.constant -155.698975 : f32
    %62 = vector.broadcast %cst_12 : f32 to vector<128x128xf32>
    %63 = arith.addf %61, %62 : vector<128x128xf32>
    %64 = arith.mulf %63, %39 : vector<128x128xf32>
    %cst_13 = arith.constant 66.8013153 : f32
    %65 = vector.broadcast %cst_13 : f32 to vector<128x128xf32>
    %66 = arith.addf %64, %65 : vector<128x128xf32>
    %67 = arith.mulf %66, %39 : vector<128x128xf32>
    %cst_14 = arith.constant -13.2806816 : f32
    %68 = vector.broadcast %cst_14 : f32 to vector<128x128xf32>
    %69 = arith.addf %67, %68 : vector<128x128xf32>
    %70 = arith.mulf %69, %39 : vector<128x128xf32>
    %cst_15 = arith.constant 1.000000e+00 : f32
    %71 = vector.broadcast %cst_15 : f32 to vector<128x128xf32>
    %72 = arith.addf %70, %71 : vector<128x128xf32>
    %73 = arith.divf %56, %72 : vector<128x128xf32>
    %74 = math.log %36 : vector<128x128xf32>
    %cst_16 = arith.constant -2.000000e+00 : f32
    %75 = vector.broadcast %cst_16 : f32 to vector<128x128xf32>
    %76 = arith.mulf %75, %74 : vector<128x128xf32>
    %77 = math.sqrt %76 : vector<128x128xf32>
    %cst_17 = arith.constant -0.0077848942 : f32
    %78 = vector.broadcast %cst_17 : f32 to vector<128x128xf32>
    %79 = arith.mulf %78, %77 : vector<128x128xf32>
    %cst_18 = arith.constant -0.322396457 : f32
    %80 = vector.broadcast %cst_18 : f32 to vector<128x128xf32>
    %81 = arith.addf %79, %80 : vector<128x128xf32>
    %82 = arith.mulf %81, %77 : vector<128x128xf32>
    %cst_19 = arith.constant -2.40075827 : f32
    %83 = vector.broadcast %cst_19 : f32 to vector<128x128xf32>
    %84 = arith.addf %82, %83 : vector<128x128xf32>
    %85 = arith.mulf %84, %77 : vector<128x128xf32>
    %cst_20 = arith.constant -2.54973245 : f32
    %86 = vector.broadcast %cst_20 : f32 to vector<128x128xf32>
    %87 = arith.addf %85, %86 : vector<128x128xf32>
    %88 = arith.mulf %87, %77 : vector<128x128xf32>
    %cst_21 = arith.constant 4.37466431 : f32
    %89 = vector.broadcast %cst_21 : f32 to vector<128x128xf32>
    %90 = arith.addf %88, %89 : vector<128x128xf32>
    %91 = arith.mulf %90, %77 : vector<128x128xf32>
    %cst_22 = arith.constant 2.938164 : f32
    %92 = vector.broadcast %cst_22 : f32 to vector<128x128xf32>
    %93 = arith.addf %91, %92 : vector<128x128xf32>
    %cst_23 = arith.constant 0.00778469583 : f32
    %94 = vector.broadcast %cst_23 : f32 to vector<128x128xf32>
    %95 = arith.mulf %94, %77 : vector<128x128xf32>
    %cst_24 = arith.constant 0.322467119 : f32
    %96 = vector.broadcast %cst_24 : f32 to vector<128x128xf32>
    %97 = arith.addf %95, %96 : vector<128x128xf32>
    %98 = arith.mulf %97, %77 : vector<128x128xf32>
    %cst_25 = arith.constant 2.44513416 : f32
    %99 = vector.broadcast %cst_25 : f32 to vector<128x128xf32>
    %100 = arith.addf %98, %99 : vector<128x128xf32>
    %101 = arith.mulf %100, %77 : vector<128x128xf32>
    %cst_26 = arith.constant 3.7544086 : f32
    %102 = vector.broadcast %cst_26 : f32 to vector<128x128xf32>
    %103 = arith.addf %101, %102 : vector<128x128xf32>
    %104 = arith.mulf %103, %77 : vector<128x128xf32>
    %cst_27 = arith.constant 1.000000e+00 : f32
    %105 = vector.broadcast %cst_27 : f32 to vector<128x128xf32>
    %106 = arith.addf %104, %105 : vector<128x128xf32>
    %107 = arith.divf %93, %106 : vector<128x128xf32>
    %cst_28 = arith.constant 1.000000e+00 : f32
    %108 = vector.broadcast %cst_28 : f32 to vector<128x128xf32>
    %109 = arith.subf %108, %36 : vector<128x128xf32>
    %110 = math.log %109 : vector<128x128xf32>
    %cst_29 = arith.constant -2.000000e+00 : f32
    %111 = vector.broadcast %cst_29 : f32 to vector<128x128xf32>
    %112 = arith.mulf %111, %110 : vector<128x128xf32>
    %113 = math.sqrt %112 : vector<128x128xf32>
    %cst_30 = arith.constant -0.0077848942 : f32
    %114 = vector.broadcast %cst_30 : f32 to vector<128x128xf32>
    %115 = arith.mulf %114, %113 : vector<128x128xf32>
    %cst_31 = arith.constant -0.322396457 : f32
    %116 = vector.broadcast %cst_31 : f32 to vector<128x128xf32>
    %117 = arith.addf %115, %116 : vector<128x128xf32>
    %118 = arith.mulf %117, %113 : vector<128x128xf32>
    %cst_32 = arith.constant -2.40075827 : f32
    %119 = vector.broadcast %cst_32 : f32 to vector<128x128xf32>
    %120 = arith.addf %118, %119 : vector<128x128xf32>
    %121 = arith.mulf %120, %113 : vector<128x128xf32>
    %cst_33 = arith.constant -2.54973245 : f32
    %122 = vector.broadcast %cst_33 : f32 to vector<128x128xf32>
    %123 = arith.addf %121, %122 : vector<128x128xf32>
    %124 = arith.mulf %123, %113 : vector<128x128xf32>
    %cst_34 = arith.constant 4.37466431 : f32
    %125 = vector.broadcast %cst_34 : f32 to vector<128x128xf32>
    %126 = arith.addf %124, %125 : vector<128x128xf32>
    %127 = arith.mulf %126, %113 : vector<128x128xf32>
    %cst_35 = arith.constant 2.938164 : f32
    %128 = vector.broadcast %cst_35 : f32 to vector<128x128xf32>
    %129 = arith.addf %127, %128 : vector<128x128xf32>
    %cst_36 = arith.constant 0.00778469583 : f32
    %130 = vector.broadcast %cst_36 : f32 to vector<128x128xf32>
    %131 = arith.mulf %130, %113 : vector<128x128xf32>
    %cst_37 = arith.constant 0.322467119 : f32
    %132 = vector.broadcast %cst_37 : f32 to vector<128x128xf32>
    %133 = arith.addf %131, %132 : vector<128x128xf32>
    %134 = arith.mulf %133, %113 : vector<128x128xf32>
    %cst_38 = arith.constant 2.44513416 : f32
    %135 = vector.broadcast %cst_38 : f32 to vector<128x128xf32>
    %136 = arith.addf %134, %135 : vector<128x128xf32>
    %137 = arith.mulf %136, %113 : vector<128x128xf32>
    %cst_39 = arith.constant 3.7544086 : f32
    %138 = vector.broadcast %cst_39 : f32 to vector<128x128xf32>
    %139 = arith.addf %137, %138 : vector<128x128xf32>
    %140 = arith.mulf %139, %113 : vector<128x128xf32>
    %cst_40 = arith.constant 1.000000e+00 : f32
    %141 = vector.broadcast %cst_40 : f32 to vector<128x128xf32>
    %142 = arith.addf %140, %141 : vector<128x128xf32>
    %143 = arith.divf %129, %142 : vector<128x128xf32>
    %cst_41 = arith.constant 0.000000e+00 : f32
    %144 = vector.broadcast %cst_41 : f32 to vector<128x128xf32>
    %145 = arith.subf %144, %143 : vector<128x128xf32>
    %cst_42 = arith.constant 2.425000e-02 : f32
    %146 = vector.broadcast %cst_42 : f32 to vector<128x128xf32>
    %147 = arith.cmpf olt, %36, %146 : vector<128x128xf32>
    %148 = arith.select %147, %107, %73 : vector<128x128xi1>, vector<128x128xf32>
    %cst_43 = arith.constant 9.757500e-01 : f32
    %149 = vector.broadcast %cst_43 : f32 to vector<128x128xf32>
    %150 = arith.cmpf ogt, %36, %149 : vector<128x128xf32>
    %151 = arith.select %150, %145, %148 : vector<128x128xi1>, vector<128x128xf32>
    %c0_44 = arith.constant 0 : index
    %c0_45 = arith.constant 0 : index
    %152 = vector.load %arg5[%c0_44, %c0_45] : memref<128x1xf32, #tpu.memory_space<vmem>>, vector<128x1xf32>
    %153 = math.sqrt %152 : vector<128x1xf32>
    %c0_46 = arith.constant 0 : index
    %c0_47 = arith.constant 0 : index
    %154 = vector.load %arg4[%c0_46, %c0_47] : memref<128x128xf32, #tpu.memory_space<vmem>>, vector<128x128xf32>
    %155 = vector.broadcast %153 : vector<128x1xf32> to vector<128x128xf32>
    %156 = arith.mulf %155, %151 : vector<128x128xf32>
    %157 = arith.addf %154, %156 : vector<128x128xf32>
    %c0_48 = arith.constant 0 : index
    %c0_49 = arith.constant 0 : index
    %158 = vector.load %arg8[%c0_48, %c0_49] : memref<8x128xf32, #tpu.memory_space<vmem>>, vector<8x128xf32>
    %c0_50 = arith.constant 0 : index
    %c0_51 = arith.constant 0 : index
    %159 = vector.load %arg3[%c0_50, %c0_51] : memref<8x128xf32, #tpu.memory_space<vmem>>, vector<8x128xf32>
    %160 = arith.truncf %159 : vector<8x128xf32> to vector<8x128xbf16>
    %161 = arith.truncf %157 : vector<128x128xf32> to vector<128x128xbf16>
    %cst_52 = arith.constant dense<0.000000e+00> : vector<8x128xf32>
    %162 = tpu.matmul %160, %161, %cst_52 {dimension_numbers = #tpu.dot_dimension_numbers<[1], [0], [0], [1], [0, 0, 1, 1], [], []>} : vector<8x128xbf16>, vector<128x128xbf16>, vector<8x128xf32> -> vector<8x128xf32>
    %163 = arith.addf %158, %162 : vector<8x128xf32>
    %c0_53 = arith.constant 0 : index
    %c0_54 = arith.constant 0 : index
    %164 = vector.load %arg8[%c0_53, %c0_54] : memref<8x128xf32, #tpu.memory_space<vmem>>, vector<8x128xf32>
    tpu.vector_store %arg8[%c0_53, %c0_54], %163 {strides = array<i32>} : memref<8x128xf32, #tpu.memory_space<vmem>>, vector<8x128xf32>,
    %c2_i32 = arith.constant 2 : i32
    %165 = arith.cmpi eq, %arg1, %c2_i32 : i32
    %166 = arith.extui %165 : i1 to i32
    %c0_i32_55 = arith.constant 0 : i32
    %167 = arith.cmpi ne, %166, %c0_i32_55 : i32
    scf.if %167 {
      %c0_56 = arith.constant 0 : index
      %c0_57 = arith.constant 0 : index
      %168 = vector.load %arg8[%c0_56, %c0_57] : memref<8x128xf32, #tpu.memory_space<vmem>>, vector<8x128xf32>
      %c0_58 = arith.constant 0 : index
      %c0_59 = arith.constant 0 : index
      %169 = vector.load %arg7[%c0_58, %c0_59] : memref<8x128xf32, #tpu.memory_space<vmem>>, vector<8x128xf32>
      tpu.vector_store %arg7[%c0_58, %c0_59], %168 {strides = array<i32>} : memref<8x128xf32, #tpu.memory_space<vmem>>, vector<8x128xf32>,
    } else {
    }
    return
  }
  func.func @transform_0(%arg0: i32, %arg1: i32, %arg2: memref<1xi32, #tpu.memory_space<smem>>) -> (i32, i32) {
    %c0_i32 = arith.constant 0 : i32
    %c0_i32_0 = arith.constant 0 : i32
    return %c0_i32, %arg1 : i32, i32
  }
  func.func @transform_1(%arg0: i32, %arg1: i32, %arg2: memref<1xi32, #tpu.memory_space<smem>>) -> (i32, i32) {
    %c0_i32 = arith.constant 0 : i32
    return %arg1, %arg0 : i32, i32
  }
  func.func @transform_2(%arg0: i32, %arg1: i32, %arg2: memref<1xi32, #tpu.memory_space<smem>>) -> (i32, i32) {
    %c0_i32 = arith.constant 0 : i32
    %c0_i32_0 = arith.constant 0 : i32
    return %arg1, %c0_i32 : i32, i32
  }
  func.func @transform_3(%arg0: i32, %arg1: i32, %arg2: memref<1xi32, #tpu.memory_space<smem>>) -> (i32, i32) {
    %c0_i32 = arith.constant 0 : i32
    %c0_i32_0 = arith.constant 0 : i32
    return %c0_i32, %arg0 : i32, i32
  }
  func.func @transform_4(%arg0: i32, %arg1: i32, %arg2: memref<1xi32, #tpu.memory_space<smem>>) -> (i32, i32) {
    %c0_i32 = arith.constant 0 : i32
    %c0_i32_0 = arith.constant 0 : i32
    return %c0_i32, %arg0 : i32, i32
  }
}

</mosaic_0001>

<bundles_post_ra>
// kernel: tpu_custom_call.1
= control target key start
LH: loop header
LB: loop body
LE: loop exit
PB: predicated region body
PF: predicated region fallthrough
CT: control target
= control target key end

     0   :  { %s4845_s0 = inlined_call_operand.<no memory space> [shape: s32[1], index: 0, kind: input, shape index: {}]   ;;  %s4846_s1 = inlined_call_operand.vmem [shape: f32[8,384], index: 1, kind: input, shape index: {}]   ;;  %s4847_s2 = inlined_call_operand.hbm [shape: f32[384,384], index: 2, kind: input, shape index: {}]   ;;  %s4848_s3 = inlined_call_operand.vmem [shape: f32[384,1], index: 3, kind: input, shape index: {}]   ;;  %s4849_s4 = inlined_call_operand.vmem [shape: f32[1,384], index: 4, kind: input, shape index: {}]   ;;  %s4850_s5 = inlined_call_operand.hbm [shape: f32[8,384], index: 5, kind: output, shape index: {}]  }
   0x1   :  { %4858 = sst [smem:[#allocation17_spill]] %s4847_s2 }
   0x2   :  { %10 = sst [smem:[#allocation4]] %s4845_s0 }
   0x3   :  { %11 = vsyncpa [#allocation6], 0 }
   0x4   :  { %13 = vsyncpa [#allocation6 + $0x1], 0 }
   0x5   :  { %14 = vsyncpa [#allocation7], 0 }
   0x6   :  { %16 = vsyncpa [#allocation7 + $0x1], 0  ;;  %s3113_s20 = smov 0   ;;  %s3115_s21 = smov 0  }
   0x7   :  { %s3117_s22 = smov 0   ;;  %s3119_s23 = smov 0  }
   0x8   :  { %s3121_s24 = smov 0   ;;  %s3123_s25 = smov 0  }
   0x9   :  { %s3125_s26 = smov 0   ;;  %s3127_s27 = smov 0  }
   0xa   :  { %s3129_s0 = smov 0   ;;  %s3131_s28 = smov 0  }
   0xb   :  { %s3133_s29 = smov 0  }
   0xc LB: > { %4859 = sst [smem:[#allocation11_spill]] %s3050_s25  ;;  %s2484_s30 = sadd.s32 4294967295, %s3070_s29   ;;  %s3070_s29 = sphi %s3133_s29, %s22_s29   ;;  %s3066_s28 = sphi %s3131_s28, %s4882_s28   ;;  %s3062_s0 = sphi %s3129_s0, %s4881_s0   ;;  %s3058_s27 = sphi %s3127_s27, %s4880_s27   ;;  %s3054_s26 = sphi %s3125_s26, %s4879_s26   ;;  %s3050_s25 = sphi %s3123_s25, %s4878_s25   ;;  %s3046_s24 = sphi %s3121_s24, %s4887_s24   ;;  %s3042_s23 = sphi %s3119_s23, %s4886_s23   ;;  %s3038_s22 = sphi %s3117_s22, %s4885_s22   ;;  %s3034_s21 = sphi %s3115_s21, %s4884_s21   ;;  %s3030_s20 = sphi %s3113_s20, %s4883_s20  }
   0xd   : > { %4860 = sst [smem:[#allocation12_spill]] %s3062_s0  ;;  %s2485_s6 = sadd.s32 4294967294, %s3070_s29  }
   0xe   : > { %4861 = sst [smem:[#allocation13_spill]] %s3066_s28  ;;  %s31_s7 = sadd.s32 1, %s3062_s0 }
   0xf   : > { %s34_s8 = sadd.s32 1, %s3066_s28  ;;  %p32_p0 = scmp.ge.s32.totalorder %s31_s7, 3 }
  0x10   : > { %s69_s9 = sadd.s32 1, %s3050_s25  ;;  %p76_p1 = scmp.ne.s32.totalorder %s3050_s25, %s3046_s24 }
  0x11   : > { %p77_p2 = scmp.eq.s32.totalorder %s3070_s29, 0  ;;  %s4889_s7 = smov (%p32_p0, %s31_s7), 0 }
  0x12   : > { %4862 = sst [smem:[#allocation14_spill]] %s4889_s7  ;;  %s4891_s8 = smov (!%p32_p0, %s34_s8), %s3066_s28 }
  0x13   : > { %s64_s10 = ssub.s32 %s3062_s0, %s4889_s7  ;;  %p3179_p3 = por %p77_p2, %p76_p1 }
  0x14   : > { %p36_p4 = scmp.ge.s32.totalorder %s4891_s8, 3  ;;  %p82_p5 = scmp.ne.s32.totalorder %s3046_s24, %s3042_s23 }
  0x15   : > { %p83_p6 = scmp.eq.s32.totalorder %s2484_s30, 0  ;;  %s147_s12 = sadd.s32 1, %s3038_s22 }
  0x16   : > { %s4893_s8 = smov (%p36_p4, %s4891_s8), 0  ;;  %p157_p8 = scmp.ne.s32.totalorder %s3038_s22, %s3034_s21 }
  0x17   : > { %4864 = sst [smem:[#allocation15_spill]] %s4893_s8  ;;  %p3187_p7 = por %p83_p6, %p82_p5 }
  0x18   : > { %s65_s14 = ssub.s32 %s3066_s28, %s4893_s8  ;;  %p158_p9 = scmp.eq.s32.totalorder %s2484_s30, 8 }
  0x19   : > { %s66_s15 = sor.u32 %s65_s14, %s64_s10  ;;  %p145_p10 = scmp.eq.s32.totalorder %s65_s14, 0 }
  0x1a   : > { %p67_p11 = scmp.eq.s32.totalorder %s66_s15, 0  ;;  %p3195_p12 = por %p158_p9, %p157_p8 }
  0x1b   : > { %s3200_s17 = scalar_select %p145_p10, %s3038_s22, %s147_s12  }
  0x1c   : > { %s4866_s16 = scalar_select %p3195_p12, 1, 0 }
  0x1d   : > { %s3203_s18 = scalar_select %p67_p11, %s3050_s25, %s69_s9  }
  0x1e   : > { %p163_p13 = scmp.ne.s32.totalorder %s3034_s21, %s3030_s20  ;;  %p164_p0 = scmp.eq.s32.totalorder %s2485_s6, 8 }
  0x1f   : > { %4867 = sst [smem:[#allocation16_spill]] %s3203_s18  ;;  %p2564_p1 = scmp.lt.s32.totalorder %s3070_s29, 9 }
  0x20   : > { %p3208_p2 = por %p164_p0, %p163_p13  ;;  %s191_s23 = sand.u32 1, %s3050_s25  }
  0x21   : > { %s2488_s30 = sshll.u32 %s191_s23, 7  ;;  %s2551_s10 = smul.u32 48, %s3062_s0 }
  0x22   : > { %s4868_s19 = scalar_select %p3208_p2, 1, 0 }
  0x23   : > { %s195_s14 = scalar_lea.vmem [#allocation5], %s2488_s30  ;;  %p3216_p4 = pnand %p2564_p1, %p3179_p3 }
  0x24   : > { %s204_s15 = sshll.u32 %s195_s14, 4  ;;  %s201_s9 = sadd.s32 %s3066_s28, %s2551_s10  ;;  %s3221_s15 = int_to_ptr.vmem [resolvable:$true] %s204_s15 }
  0x25   : > { %s2491_s6 = sshll.u32 %s201_s9, 7  ;;  %s4870_s2 = sld [smem:[#allocation17_spill]] }
  0x26   : > { %s3228_s11 = scalar_lea.sflag [#allocation6], %s191_s23  ;;  %p2920_p5 = pneg %p3216_p4 }
  0x2b   : > { %s3226_s18 = scalar_lea.hbm %s4870_s2, %s2491_s6  ;;  %s2923_s7 = scalar_lea.hbm %s4870_s2, 18432 }
  0x2c   : > { %s2918_s30 = scalar_lea.hbm %s3226_s18, 2048  ;;  %p2924_p9 = scmp.lt.u32.totalorder %s3226_s18, %s4870_s2 }
  0x2d   : > { %p2919_p3 = scmp.ne.s32.totalorder %s3226_s18, %s2918_s30  ;;  %p2925_p10 = scmp.lt.u32.totalorder %s2923_s7, %s2918_s30 }
  0x2e   : > { %p2927_p13 = scmp.lt.u32.totalorder %s2918_s30, %s3226_s18 }
  0x2f   : > { %p2921_p6 = pnand %p2920_p5, %p2919_p3  ;;  %p2926_p11 = por %p2925_p10, %p2924_p9 }
  0x31   : > { %p2922_p8 = pneg %p2921_p6  ;;  %p2928_p0 = por %p2927_p13, %p2926_p11 }
  0x33   : > { %p2929_p1 = pnand %p2928_p0, %p2922_p8 }
  0x35   : > { %2932 = shalt.err (!%p2929_p1)
}
  0x36   : > { %s2933_s23 = scalar_lea.vmem %s3221_s15, 2048  ;;  %s3072_s12 = smov [#allocation5]  }
  0x37   : > { %p2934_p3 = scmp.ne.s32.totalorder %s3221_s15, %s2933_s23  ;;  %s2938_s10 = sshll.u32 %s3072_s12, 4  ;;  %s2939_s10 = int_to_ptr.vmem [resolvable:$false] %s2938_s10 }
  0x38   : > { %s2940_s14 = scalar_lea.vmem %s2939_s10, 4096  ;;  %p2941_p12 = scmp.lt.s32.totalorder %s3221_s15, %s2939_s10 }
  0x39   : > { %p2936_p6 = pnand %p2934_p3, %p2920_p5  ;;  %p2942_p9 = scmp.lt.s32.totalorder %s2940_s14, %s2933_s23 }
  0x3b   : > { %p2937_p2 = pneg %p2936_p6  ;;  %p2943_p10 = por %p2942_p9, %p2941_p12 }
  0x3d   : > { %p2944_p11 = pnand %p2943_p10, %p2937_p2 }
  0x3f   : > { %2947 = shalt.err (!%p2944_p11)
}
  0x40   : > { %s3073_s30 = smov 384   ;;  %s3074_s7 = smov 128  }
  0x41   : > { %s3075_s9 = smov 8   ;;  %p2492_p5 = scmp.ge.s32.totalorder %s3070_s29, 1 }
  0x42   : > { %2559 = dma.hbm_to_vmem [thread:$0]  (!%p3216_p4), %s3226_s18, 2048, %s3221_s15, %s3228_s11, %s3073_s30, %s3074_s7, %s3075_s9  }
  0x43   : > { %p227_p8 = scmp.lt.s32.totalorder %s3070_s29, 10 }
  0x45   : > { %p228_p13 = pnand %p2492_p5, %p227_p8 }
  0x46   : > { %s233_s6 = sand.u32 (!%p228_p13), 1, %s3046_s24  }
  0x47   : > { %231 = sbr.rel (%p228_p13) target bundleno = 849 (0x351), region = 36  ;;  %s2493_s23 = sshll.u32 (!%p228_p13), %s233_s6, 7 }
  0x48   : > { %s234_s12 = scalar_lea.sflag (!%p228_p13), [#allocation6], %s233_s6  ;;  %s3259_s10 = scalar_lea.vmem (!%p228_p13), [#allocation5], %s2493_s23 }
  0x4e   : > { %3021 = dma.done.wait (%p3187_p7), %s234_s12, 2048  }
  0x4f   : > { %3023 = vsyncadd (%p3187_p7), %s234_s12, 4294965248  ;;  %s4854_s8 = sand.u32 1, %s3034_s21   ;;  %p274_p12 = scmp.lt.s32.totalorder %s3054_s26, 2 }
  0x50   : > { %s3269_s18 = sshll.u32 %s4854_s8, 3  ;;  %s2496_s15 = sshll.u32 %s3054_s26, 4 }
  0x51   : > { %p280_p2 = scmp.lt.s32.totalorder %s2496_s15, 47  ;;  %p285_p4 = scmp.lt.s32.totalorder %s3058_s27, 2 }
  0x52   : > { %s275_s11 = scalar_select %p274_p12, %s3054_s26, 2 }
  0x53   : > { %s4895_s15 = smov (!%p280_p2, %s2496_s15), 47  ;;  %s273_s25 = scalar_lea.vmem [#allocation8], %s3269_s18 }
  0x54   : > { %s2495_s14 = sshll.u32 %s275_s11, 3  ;;  %s2497_s9 = sshll.u32 %s4895_s15, 3 }
  0x55   : > { %s3277_s7 = scalar_lea.vmem %s4846_s1, %s2495_s14  ;;  %s3282_s12 = scalar_lea.vmem %s4848_s3, %s2497_s9 }
  0x56   : > { %s286_s8 = scalar_select %p285_p4, %s3058_s27, 2 }
  0x57   : > { %p2498_p7 = scmp.ne.s32.totalorder %s3054_s26, 0 }
  0x58   : > { %s287_s0 = scalar_lea.vmem %s4849_s4, %s286_s8 }
  0x59   : > { %292 = sbr.rel (%p2498_p7) target bundleno = 96 (0x60), region = 44  ;;  %v2499_v0 = vld [vmem:[%s287_s0] ss:$0 sm:$0xff] (!%p2498_p7) }
  0x5a   : > { %300 = vst [vmem:[#allocation2] sm:$0xff] (!%p2498_p7), %v2499_v0 }
  0x60 PF: > { %v3291_v1 = vld [vmem:[%s3282_s12 + $0x10] sm:$0xff]  ;;  %v3294_v2 = vld [vmem:[%s3282_s12] sm:$0xff]  ;;  %v3297_v3 = vld [vmem:[%s3282_s12 + $0x18] sm:$0xff]  ;;  %v3076_v4 = vmov 0   ;;  %v304_v10 = vlaneseq  ;;  %s302_s2 = smul.u32 3, %s3058_s27  ;;  %s3418_s0 = sld [smem:[#allocation4]] }
  0x61   : > { %2661 = vset.pattern.permute.xlu1 %v3076_v4  ;;  %2660 = vset.pattern.permute.xlu0 %v3076_v4  ;;  %2662 = vrsqrt.f32 %v3291_v1  ;;  %v3301_v5 = vld [vmem:[%s3282_s12 + $0x8] sm:$0xff]  ;;  %v3309_v7 = vld [vmem:[%s3282_s12 + $0x20] sm:$0xff]  ;;  %v3313_v8 = vld [vmem:[%s3282_s12 + $0x38] sm:$0xff]  ;;  %vm2071_vm0 = vcmp.eq.f32.partialorder %v3291_v1, inf  ;;  %vm2073_vm1 = vcmp.eq.f32.partialorder %v3291_v1, 0.0  ;;  %v2074_v11 = vand.u32 2147483648, %v3291_v1 }
  0x62   : > { %2664 = vrsqrt.f32 %v3294_v2  ;;  %v3305_v6 = vld [vmem:[%s3282_s12 + $0x28] sm:$0xff]  ;;  %v3318_v9 = vld [vmem:[%s3282_s12 + $0x30] sm:$0xff]  ;;  %vm2057_vm2 = vcmp.eq.f32.partialorder %v3294_v2, inf  ;;  %vm2059_vm3 = vcmp.eq.f32.partialorder %v3294_v2, 0.0  ;;  %v2060_v13 = vand.u32 2147483648, %v3294_v2  ;;  %v3332_v14 = vld [vmem:[%s3282_s12 + $0x40] sm:$0xff]  ;;  %s3435_s28 = sadd.s32 %s3054_s26, %s302_s2 }
  0x63   : > { %2666 = vrsqrt.f32 %v3297_v3  ;;  %v3325_v12 = vld [vmem:[%s3282_s12 + $0x48] sm:$0xff]  ;;  %vm2078_vm4 = vcmp.eq.f32.partialorder %v3297_v3, inf  ;;  %vm2080_vm5 = vcmp.eq.f32.partialorder %v3297_v3, 0.0  ;;  %v2081_v15 = vand.u32 2147483648, %v3297_v3  ;;  %v3339_v16 = vld [vmem:[%s3282_s12 + $0x58] sm:$0xff]  ;;  %v3346_v18 = vld [vmem:[%s3282_s12 + $0x50] sm:$0xff] }
  0x64   : > { %2668 = vrsqrt.f32 %v3301_v5  ;;  %vm2064_vm6 = vcmp.eq.f32.partialorder %v3301_v5, inf  ;;  %vm2066_vm7 = vcmp.eq.f32.partialorder %v3301_v5, 0.0  ;;  %v2067_v17 = vand.u32 2147483648, %v3301_v5  ;;  %v3353_v20 = vld [vmem:[%s3282_s12 + $0x68] sm:$0xff]  ;;  %v3364_v26 = vld [vmem:[%s3282_s12 + $0x60] sm:$0xff]  ;;  %v3402_v47 = vld [vmem:[%s3282_s12 + $0x78] sm:$0xff] }
  0x65   : > { %2670 = vrsqrt.f32 %v3305_v6  ;;  %vm2092_vm8 = vcmp.eq.f32.partialorder %v3305_v6, inf  ;;  %vm2094_vm9 = vcmp.eq.f32.partialorder %v3305_v6, 0.0  ;;  %v2095_v19 = vand.u32 2147483648, %v3305_v6  ;;  %v3425_v59 = vld [vmem:[%s3282_s12 + $0x70] sm:$0xff]  ;;  %s2500_s8 = sshll.u32 %s3435_s28, 14  ;;  %p2517_p0 = scmp.ne.s32.totalorder %s3054_s26, 2 }
  0x66   : > { %2672 = vrsqrt.f32 %v3309_v7  ;;  %vm2085_vm10 = vcmp.eq.f32.partialorder %v3309_v7, inf  ;;  %vm2087_vm11 = vcmp.eq.f32.partialorder %v3309_v7, 0.0  ;;  %v2088_v22 = vand.u32 2147483648, %v3309_v7  ;;  %s373_s15 = smul.u32 2654435769, %s3418_s0 }
  0x67   : > { %2674 = vrsqrt.f32 %v3313_v8  ;;  %v2109_v25 = vand.u32 2147483648, %v3313_v8  ;;  %v2102_v29 = vand.u32 2147483648, %v3318_v9  ;;  %vm2120_vm14 = vcmp.eq.f32.partialorder %v3325_v12, inf }
  0x68   : > { %2676 = vrsqrt.f32 %v3318_v9  ;;  %vm2108_vm15 = vcmp.eq.f32.partialorder %v3313_v8, 0.0  ;;  %v2123_v33 = vand.u32 2147483648, %v3325_v12  ;;  %vm2113_vm12 = vcmp.eq.f32.partialorder %v3332_v14, inf }
  0x69   : > { %2678 = vrsqrt.f32 %v3325_v12  ;;  %vm2115_vm13 = vcmp.eq.f32.partialorder %v3332_v14, 0.0  ;;  %v2116_v42 = vand.u32 2147483648, %v3332_v14  ;;  %v2137_v55 = vand.u32 2147483648, %v3339_v16 }
  0x6a   : > { %2680 = vrsqrt.f32 %v3332_v14  ;;  %v2130_v58 = vand.u32 2147483648, %v3346_v18 }
  0x6b   : > { %v2663_v21 = vpop.eup %2662  ;;  %2682 = vrsqrt.f32 %v3339_v16 }
  0x6c   : > { %v2665_v23 = vpop.eup %2664  ;;  %v2070_v24 = vmul.f32 %v2663_v21, %v3291_v1  ;;  %2684 = vrsqrt.f32 %v3346_v18 }
  0x6d   : > { %v2667_v27 = vpop.eup %2666  ;;  %v2056_v28 = vmul.f32 %v2665_v23, %v3294_v2  ;;  %2686 = vrsqrt.f32 %v3353_v20  ;;  %v2165_v23 = vand.u32 2147483648, %v3402_v47 }
  0x6e   : > { %v2669_v30 = vpop.eup %2668  ;;  %v2072_v31 = vsel %vm2071_vm0, %v3291_v1, %v2070_v24  ;;  %v2077_v32 = vmul.f32 %v2667_v27, %v3297_v3  ;;  %vm2122_vm0 = vcmp.eq.f32.partialorder %v3325_v12, 0.0  ;;  %2688 = vrsqrt.f32 %v3364_v26 }
  0x6f   : > { %v2671_v34 = vpop.eup %2670  ;;  %v2075_v35 = vsel %vm2073_vm1, %v2074_v11, %v2072_v31  ;;  %v2058_v36 = vsel %vm2057_vm2, %v3294_v2, %v2056_v28  ;;  %v2063_v37 = vmul.f32 %v2669_v30, %v3301_v5  ;;  %vm2134_vm1 = vcmp.eq.f32.partialorder %v3339_v16, inf }
  0x70   : > { %v2673_v38 = vpop.eup %2672  ;;  %2195 = vperm.xlu1 %2661, %v2075_v35   ;;  %v2061_v39 = vsel %vm2059_vm3, %v2060_v13, %v2058_v36  ;;  %v2079_v40 = vsel %vm2078_vm4, %v3297_v3, %v2077_v32  ;;  %v2091_v41 = vmul.f32 %v2671_v34, %v3305_v6  ;;  %vm2136_vm2 = vcmp.eq.f32.partialorder %v3339_v16, 0.0 }
  0x71   : > { %v2675_v43 = vpop.eup %2674  ;;  %2185 = vperm.xlu0 %2660, %v2061_v39   ;;  %v2082_v44 = vsel %vm2080_vm5, %v2081_v15, %v2079_v40  ;;  %v2065_v45 = vsel %vm2064_vm6, %v3301_v5, %v2063_v37  ;;  %v2084_v46 = vmul.f32 %v2673_v38, %v3309_v7  ;;  %vm2127_vm3 = vcmp.eq.f32.partialorder %v3346_v18, inf }
  0x72   : > { %v2677_v48 = vpop.eup %2676  ;;  %v2068_v49 = vsel %vm2066_vm7, %v2067_v17, %v2065_v45  ;;  %v2093_v50 = vsel %vm2092_vm8, %v3305_v6, %v2091_v41  ;;  %v2105_v51 = vmul.f32 %v2675_v43, %v3313_v8  ;;  %vm2129_vm4 = vcmp.eq.f32.partialorder %v3346_v18, 0.0 }
  0x73   : > { %v2679_v52 = vpop.eup %2678  ;;  %v2086_v53 = vsel %vm2085_vm10, %v3309_v7, %v2084_v46  ;;  %v2098_v54 = vmul.f32 %v2677_v48, %v3318_v9  ;;  %2690 = vrsqrt.f32 %v3402_v47  ;;  %v2096_v61 = vsel %vm2094_vm9, %v2095_v19, %v2093_v50 }
  0x74   : > { %v2681_v56 = vpop.eup %2680  ;;  %2200 = vperm.xlu1 %2661, %v2082_v44   ;;  %v2119_v57 = vmul.f32 %v2679_v52, %v3325_v12  ;;  %vm2148_vm5 = vcmp.eq.f32.partialorder %v3353_v20, inf  ;;  %vm2150_vm6 = vcmp.eq.f32.partialorder %v3353_v20, 0.0  ;;  %v2089_v0 = vsel %vm2087_vm11, %v2088_v22, %v2086_v53 }
  0x75   : > { %v2683_v60 = vpop.eup %2682  ;;  %2190 = vperm.xlu0 %2660, %v2068_v49   ;;  %v2112_v62 = vmul.f32 %v2681_v56, %v3332_v14  ;;  %vm4871_vm7 = vcmp.eq.f32.partialorder %v3313_v8, inf  ;;  %vm4872_vm8 = vcmp.eq.f32.partialorder %v3318_v9, inf  ;;  %2692 = vrsqrt.f32 %v3425_v59 }
  0x76   : > { %v2685_v63 = vpop.eup %2684  ;;  %v2107_v1 = vsel %vm4871_vm7, %v3313_v8, %v2105_v51  ;;  %v2100_v2 = vsel %vm4872_vm8, %v3318_v9, %v2098_v54  ;;  %v2133_v3 = vmul.f32 %v2683_v60, %v3339_v16  ;;  %v2121_v5 = vsel %vm2120_vm14, %v3325_v12, %v2119_v57 }
  0x77   : > { %v2687_v4 = vpop.eup %2686  ;;  %v2114_v6 = vsel %vm2113_vm12, %v3332_v14, %v2112_v62  ;;  %v2126_v7 = vmul.f32 %v2685_v63, %v3346_v18  ;;  %v2151_v15 = vand.u32 2147483648, %v3353_v20  ;;  %vm2141_vm9 = vcmp.eq.f32.partialorder %v3364_v26, inf }
  0x78   : > { %2210 = vperm.xlu1 %2661, %v2096_v61   ;;  %v2135_v11 = vsel %vm2134_vm1, %v3339_v16, %v2133_v3  ;;  %v2147_v13 = vmul.f32 %v2687_v4, %v3353_v20  ;;  %v2689_v17 = vpop.eup %2688  ;;  %v2110_v19 = vsel %vm2108_vm15, %v2109_v25, %v2107_v1  ;;  %vm4873_vm10 = vcmp.eq.f32.partialorder %v3318_v9, 0.0 }
  0x79   : > { %2205 = vperm.xlu0 %2660, %v2089_v0   ;;  %v2103_v21 = vsel %vm4873_vm10, %v2102_v29, %v2100_v2  ;;  %vm2143_vm11 = vcmp.eq.f32.partialorder %v3364_v26, 0.0  ;;  %v2144_v22 = vand.u32 2147483648, %v3364_v26  ;;  %v2124_v24 = vsel %vm2122_vm0, %v2123_v33, %v2121_v5 }
  0x7a   : > { %v2117_v8 = vsel %vm2115_vm13, %v2116_v42, %v2114_v6  ;;  %v2138_v25 = vsel %vm2136_vm2, %v2137_v55, %v2135_v11  ;;  %v3483_v9 = vshrl.u32 %v304_v10, 7  ;;  %v2128_v27 = vsel %vm2127_vm3, %v3346_v18, %v2126_v7 }
  0x7b   : > { %v2149_v28 = vsel %vm2148_vm5, %v3353_v20, %v2147_v13  ;;  %v2140_v12 = vmul.f32 %v2689_v17, %v3364_v26  ;;  %vm2162_vm12 = vcmp.eq.f32.partialorder %v3402_v47, inf  ;;  %v3493_v14 = vstv %s2500_s8 }
  0x7c   : > { %2220 = vperm.xlu1 %2661, %v2110_v19   ;;  %vm2155_vm13 = vcmp.eq.f32.partialorder %v3425_v59, inf  ;;  %v307_v16 = vadd.s32 16, %v3483_v9  ;;  %v3499_v29 = vand.u32 127, %v304_v10  ;;  %v324_v30 = vmul.u32 128, %v3483_v9 }
  0x7d   : > { %v308_v31 = vadd.s32 24, %v3483_v9  ;;  %2215 = vperm.xlu0 %2660, %v2103_v21   ;;  %v2158_v32 = vand.u32 2147483648, %v3425_v59  ;;  %v306_v33 = vadd.s32 8, %v3483_v9  ;;  %v310_v34 = vadd.s32 40, %v3483_v9  ;;  %v2691_v36 = vpop.eup %2690 }
  0x7e   : > { %v309_v35 = vadd.s32 32, %v3483_v9  ;;  %v2131_v37 = vsel %vm2129_vm4, %v2130_v58, %v2128_v27  ;;  %vm2164_vm14 = vcmp.eq.f32.partialorder %v3402_v47, 0.0  ;;  %v326_v10 = vmul.u32 128, %v307_v16 }
  0x7f   : > { %v341_v38 = vadd.s32 %v3493_v14, %v324_v30  ;;  %v327_v39 = vmul.u32 128, %v308_v31  ;;  %v2152_v40 = vsel %vm2150_vm6, %v2151_v15, %v2149_v28  ;;  %vm2157_vm15 = vcmp.eq.f32.partialorder %v3425_v59, 0.0  ;;  %v2693_v48 = vpop.eup %2692 }
  0x80   : > { %v3514_v41 = vstv %s373_s15  ;;  %v325_v42 = vmul.u32 128, %v306_v33  ;;  %v329_v43 = vmul.u32 128, %v310_v34  ;;  %2230 = vperm.xlu1 %2661, %v2124_v24   ;;  %v2142_v18 = vsel %vm2141_vm9, %v3364_v26, %v2140_v12 }
  0x81   : > { %v343_v44 = vadd.s32 %v3493_v14, %v326_v10  ;;  %v357_v45 = vadd.s32 %v341_v38, %v3499_v29  ;;  %v344_v46 = vadd.s32 %v3493_v14, %v327_v39  ;;  %2225 = vperm.xlu0 %2660, %v2117_v8   ;;  %v2161_v20 = vmul.f32 %v2691_v36, %v3402_v47 }
  0x82   : > { %v342_v49 = vadd.s32 %v3493_v14, %v325_v42  ;;  %v346_v50 = vadd.s32 %v3493_v14, %v329_v43  ;;  %v328_v51 = vmul.u32 128, %v309_v35  ;;  %v312_v55 = vadd.s32 56, %v3483_v9 }
  0x83   : > { %v359_v52 = vadd.s32 %v343_v44, %v3499_v29  ;;  %v375_v53 = vxor.u32 %v3514_v41, %v357_v45  ;;  %v360_v54 = vadd.s32 %v344_v46, %v3499_v29  ;;  %v2154_v56 = vmul.f32 %v2693_v48, %v3425_v59 }
  0x84   : > { %v358_v57 = vadd.s32 %v342_v49, %v3499_v29  ;;  %v362_v58 = vadd.s32 %v346_v50, %v3499_v29  ;;  %v345_v60 = vadd.s32 %v3493_v14, %v328_v51  ;;  %2240 = vperm.xlu1 %2661, %v2138_v25   ;;  %v2145_v61 = vsel %vm2143_vm11, %v2144_v22, %v2142_v18 }
  0x85   : > { %v377_v62 = vxor.u32 %v3514_v41, %v359_v52  ;;  %v391_v63 = vshrl.u32 %v375_v53, 16  ;;  %v378_v0 = vxor.u32 %v3514_v41, %v360_v54  ;;  %2235 = vperm.xlu0 %2660, %v2131_v37   ;;  %v311_v4 = vadd.s32 48, %v3483_v9 }
  0x86   : > { %v376_v1 = vxor.u32 %v3514_v41, %v358_v57  ;;  %v380_v2 = vxor.u32 %v3514_v41, %v362_v58  ;;  %v361_v3 = vadd.s32 %v345_v60, %v3499_v29  ;;  %v2163_v5 = vsel %vm2162_vm12, %v3402_v47, %v2161_v20 }
  0x87   : > { %v393_v26 = vshrl.u32 %v377_v62, 16  ;;  %v407_v6 = vxor.u32 %v391_v63, %v375_v53  ;;  %v394_v7 = vshrl.u32 %v378_v0, 16  ;;  %v2156_v11 = vsel %vm2155_vm13, %v3425_v59, %v2154_v56 }
  0x88   : > { %v392_v13 = vshrl.u32 %v376_v1, 16  ;;  %v396_v15 = vshrl.u32 %v380_v2, 16  ;;  %v331_v17 = vmul.u32 128, %v312_v55  ;;  %2250 = vperm.xlu1 %2661, %v2152_v40   ;;  %v379_v24 = vxor.u32 %v3514_v41, %v361_v3 }
  0x89   : > { %v409_v19 = vxor.u32 %v393_v26, %v377_v62  ;;  %v423_v21 = vmul.u32 2146121005, %v407_v6  ;;  %v410_v22 = vxor.u32 %v394_v7, %v378_v0  ;;  %2245 = vperm.xlu0 %2660, %v2145_v61   ;;  %v2166_v8 = vsel %vm2164_vm14, %v2165_v23, %v2163_v5 }
  0x8a   : > { %v408_v25 = vxor.u32 %v392_v13, %v376_v1  ;;  %v2159_v27 = vsel %vm2157_vm15, %v2158_v32, %v2156_v11  ;;  %v412_v30 = vxor.u32 %v396_v15, %v380_v2  ;;  %v348_v31 = vadd.s32 %v3493_v14, %v331_v17 }
  0x8b   : > { %v425_v28 = vmul.u32 2146121005, %v409_v19  ;;  %v439_v12 = vshrl.u32 %v423_v21, 15  ;;  %v426_v16 = vmul.u32 2146121005, %v410_v22  ;;  %v395_v37 = vshrl.u32 %v379_v24, 16 }
  0x8c   : > { %v330_v33 = vmul.u32 128, %v311_v4  ;;  %2260 = vperm.xlu1 %2661, %v2166_v8   ;;  %v424_v10 = vmul.u32 2146121005, %v408_v25  ;;  %v364_v59 = vadd.s32 %v348_v31, %v3499_v29 }
  0x8d   : > { %v441_v34 = vshrl.u32 %v425_v28, 15  ;;  %v455_v35 = vxor.u32 %v439_v12, %v423_v21  ;;  %v442_v36 = vshrl.u32 %v426_v16, 15  ;;  %2255 = vperm.xlu0 %2660, %v2159_v27   ;;  %v428_v39 = vmul.u32 2146121005, %v412_v30 }
  0x8e   : > { %v347_v32 = vadd.s32 %v3493_v14, %v330_v33  ;;  %v411_v18 = vxor.u32 %v395_v37, %v379_v24  ;;  %v440_v44 = vshrl.u32 %v424_v10, 15  ;;  %v382_v49 = vxor.u32 %v3514_v41, %v364_v59 }
  0x8f   : > { %v457_v47 = vxor.u32 %v441_v34, %v425_v28  ;;  %v471_v23 = vmul.u32 2221713035, %v455_v35  ;;  %v458_v38 = vxor.u32 %v442_v36, %v426_v16  ;;  %v444_v20 = vshrl.u32 %v428_v39, 15 }
  0x90   : > { %v363_v50 = vadd.s32 %v347_v32, %v3499_v29  ;;  %v427_v54 = vmul.u32 2146121005, %v411_v18  ;;  %v456_v55 = vxor.u32 %v440_v44, %v424_v10  ;;  %v398_v61 = vshrl.u32 %v382_v49, 16 }
  0x91   : > { %v473_v40 = vmul.u32 2221713035, %v457_v47  ;;  %v487_v42 = vshrl.u32 %v471_v23, 16  ;;  %v474_v43 = vmul.u32 2221713035, %v458_v38  ;;  %v460_v60 = vxor.u32 %v444_v20, %v428_v39 }
  0x92   : > { %v381_v62 = vxor.u32 %v3514_v41, %v363_v50  ;;  %v443_v2 = vshrl.u32 %v427_v54, 15  ;;  %v472_v3 = vmul.u32 2221713035, %v456_v55  ;;  %v414_v7 = vxor.u32 %v398_v61, %v382_v49 }
  0x93   : > { %v489_v45 = vshrl.u32 %v473_v40, 16  ;;  %v503_v46 = vxor.u32 %v487_v42, %v471_v23  ;;  %v490_v48 = vshrl.u32 %v474_v43, 16  ;;  %v476_v6 = vmul.u32 2221713035, %v460_v60 }
  0x94   : > { %v397_v11 = vshrl.u32 %v381_v62, 16  ;;  %v459_v17 = vxor.u32 %v443_v2, %v427_v54  ;;  %v488_v22 = vshrl.u32 %v472_v3, 16  ;;  %v430_v28 = vmul.u32 2146121005, %v414_v7 }
  0x95   : > { %v505_v51 = vxor.u32 %v489_v45, %v473_v40  ;;  %v519_v52 = vshrl.u32 %v503_v46, 9  ;;  %v506_v53 = vxor.u32 %v490_v48, %v474_v43  ;;  %v492_v30 = vshrl.u32 %v476_v6, 16 }
  0x96   : > { %v413_v12 = vxor.u32 %v397_v11, %v381_v62  ;;  %v475_v31 = vmul.u32 2221713035, %v459_v17  ;;  %v504_v35 = vxor.u32 %v488_v22, %v472_v3  ;;  %v446_v32 = vshrl.u32 %v430_v28, 15 }
  0x97   : > { %v521_v56 = vshrl.u32 %v505_v51, 9  ;;  %v535_v57 = vcvt.s32.f32 %v519_v52  ;;  %v522_v58 = vshrl.u32 %v506_v53, 9  ;;  %v508_v43 = vxor.u32 %v492_v30, %v476_v6 }
  0x98   : > { %v429_v38 = vmul.u32 2146121005, %v413_v12  ;;  %v520_v42 = vshrl.u32 %v504_v35, 9  ;;  %v491_v18 = vshrl.u32 %v475_v31, 16  ;;  %v3600_v53 = vxor.u32 %v446_v32, %v430_v28 }
  0x99   : > { %v537_v63 = vcvt.s32.f32 %v521_v56  ;;  %v551_v0 = vadd.f32 0.5, %v535_v57  ;;  %v538_v1 = vcvt.s32.f32 %v522_v58 }
  0x9a   : > { %v445_v54 = vshrl.u32 %v429_v38, 15  ;;  %v536_v58 = vcvt.s32.f32 %v520_v42  ;;  %v478_v6 = vmul.u32 2221713035, %v3600_v53 }
  0x9b   : > { %v553_v4 = vadd.f32 0.5, %v537_v63  ;;  %v3560_v5 = vmul.f32 1.1920929e-07, %v551_v0  ;;  %v554_v26 = vadd.f32 0.5, %v538_v1  ;;  %v524_v63 = vshrl.u32 %v508_v43, 9 }
  0x9c   : > { %v507_v0 = vxor.u32 %v491_v18, %v475_v31  ;;  %v3611_v7 = vxor.u32 %v445_v54, %v429_v38 }
  0x9d   : > { %v3562_v13 = vmul.f32 1.1920929e-07, %v553_v4  ;;  %v3565_v15 = vadd.f32 -0.5, %v3560_v5  ;;  %2694 = vlog2.f32 %v3560_v5  ;;  %v1463_v19 = vsub.f32 1.0, %v3560_v5 }
  0x9e   : > { %v3569_v21 = vmul.f32 1.1920929e-07, %v554_v26  ;;  %v523_v35 = vshrl.u32 %v507_v0, 9  ;;  %vm1975_vm13 = vcmp.lt.f32.partialorder %v3560_v5, 0.02425 }
  0x9f   : > { %v3572_v24 = vadd.f32 -0.5, %v3562_v13  ;;  %2696 = vlog2.f32 %v3562_v13  ;;  %v1465_v8 = vsub.f32 1.0, %v3562_v13  ;;  %v3578_v25 = vmul.f32 %v3565_v15, %v3565_v15 }
  0xa0   : > { %v3581_v27 = vadd.f32 -0.5, %v3569_v21  ;;  %v1466_v12 = vsub.f32 1.0, %v3569_v21  ;;  %vm1977_vm12 = vcmp.lt.f32.partialorder %v3562_v13, 0.02425 }
  0xa1   : > { %v3585_v16 = vmul.f32 %v3572_v24, %v3572_v24  ;;  %2698 = vlog2.f32 %v1465_v8  ;;  %v615_v33 = vmul.f32 -39.69683, %v3578_v25  ;;  %v791_v34 = vmul.f32 -54.476097, %v3578_v25 }
  0xa2   : > { %2700 = vlog2.f32 %v1463_v19  ;;  %v3593_v23 = vmul.f32 %v3581_v27, %v3581_v27  ;;  %v552_v19 = vadd.f32 0.5, %v536_v58 }
  0xa3   : > { %v617_v36 = vmul.f32 -39.69683, %v3585_v16  ;;  %v793_v37 = vmul.f32 -54.476097, %v3585_v16  ;;  %v631_v10 = vadd.f32 220.9461, %v615_v33  ;;  %v540_v33 = vcvt.s32.f32 %v524_v63 }
  0xa4   : > { %v807_v47 = vadd.f32 161.58583, %v791_v34  ;;  %v618_v40 = vmul.f32 -39.69683, %v3593_v23  ;;  %v794_v17 = vmul.f32 -54.476097, %v3593_v23 }
  0xa5   : > { %v633_v39 = vadd.f32 220.9461, %v617_v36  ;;  %v809_v59 = vadd.f32 161.58583, %v793_v37  ;;  %v647_v48 = vmul.f32 %v631_v10, %v3578_v25  ;;  %v477_v36 = vmul.u32 2221713035, %v3611_v7 }
  0xa6   : > { %v823_v20 = vmul.f32 %v807_v47, %v3578_v25  ;;  %v634_v57 = vadd.f32 220.9461, %v618_v40  ;;  %v810_v10 = vadd.f32 161.58583, %v794_v17  ;;  %v3623_v47 = vmul.f32 1.1920929e-07, %v552_v19 }
  0xa7   : > { %v2695_v44 = vpop.eup %2694  ;;  %v649_v45 = vmul.f32 %v633_v39, %v3585_v16  ;;  %v825_v46 = vmul.f32 %v809_v59, %v3585_v16  ;;  %v663_v61 = vadd.f32 -275.9285, %v647_v48  ;;  %v3629_v59 = vshrl.u32 %v478_v6, 16 }
  0xa8   : > { %v984_v49 = vmul.f32 0.6931472, %v2695_v44  ;;  %v839_v62 = vadd.f32 -155.69897, %v823_v20  ;;  %v650_v11 = vmul.f32 %v634_v57, %v3593_v23  ;;  %v3633_v42 = vadd.f32 0.5, %v540_v33 }
  0xa9   : > { %v2697_v50 = vpop.eup %2696  ;;  %v665_v51 = vadd.f32 -275.9285, %v649_v45  ;;  %v841_v52 = vadd.f32 -155.69897, %v825_v46  ;;  %v679_v8 = vmul.f32 %v663_v61, %v3578_v25  ;;  %v3638_v18 = vadd.f32 -0.5, %v3623_v47 }
  0xaa   : > { %v988_v55 = vmul.f32 0.6931472, %v2697_v50  ;;  %v3602_v56 = vmul.f32 -2.0, %v984_v49  ;;  %v855_v31 = vmul.f32 %v839_v62, %v3578_v25  ;;  %v666_v37 = vadd.f32 -275.9285, %v650_v11 }
  0xab   : > { %v2699_v60 = vpop.eup %2698  ;;  %v681_v2 = vmul.f32 %v665_v51, %v3585_v16  ;;  %v857_v26 = vmul.f32 %v841_v52, %v3585_v16  ;;  %v695_v38 = vadd.f32 138.35776, %v679_v8  ;;  %v3640_v44 = vcvt.s32.f32 %v523_v35 }
  0xac   : > { %v2701_v1 = vpop.eup %2700  ;;  %v3605_v3 = vmul.f32 -2.0, %v988_v55  ;;  %v1484_v4 = vmul.f32 0.6931472, %v2699_v60  ;;  %2702 = vrsqrt.f32 %v3602_v56  ;;  %v871_v40 = vadd.f32 66.801315, %v855_v31 }
  0xad   : > { %2704 = vlog2.f32 %v3569_v21  ;;  %v1480_v28 = vmul.f32 0.6931472, %v2701_v1  ;;  %v697_v30 = vadd.f32 138.35776, %v681_v2  ;;  %v873_v34 = vadd.f32 66.801315, %v857_v26 }
  0xae   : > { %2706 = vrsqrt.f32 %v3605_v3  ;;  %v3616_v22 = vmul.f32 -2.0, %v1484_v4  ;;  %vm1033_vm0 = vcmp.eq.f32.partialorder %v3602_v56, inf  ;;  %v1036_v46 = vand.u32 2147483648, %v3602_v56 }
  0xaf   : > { %v3625_v39 = vmul.f32 -2.0, %v1480_v28  ;;  %v713_v32 = vmul.f32 %v697_v30, %v3585_v16  ;;  %v889_v43 = vmul.f32 %v873_v34, %v3585_v16  ;;  %v682_v48 = vmul.f32 %v666_v37, %v3593_v23 }
  0xb0   : > { %2708 = vrsqrt.f32 %v3616_v22  ;;  %v826_v20 = vmul.f32 %v810_v10, %v3593_v23  ;;  %vm1047_vm1 = vcmp.eq.f32.partialorder %v3605_v3, inf  ;;  %v711_v50 = vmul.f32 %v695_v38, %v3578_v25 }
  0xb1   : > { %2710 = vlog2.f32 %v1466_v12  ;;  %vm1035_vm2 = vcmp.eq.f32.partialorder %v3602_v56, 0.0  ;;  %v729_v54 = vadd.f32 -30.664799, %v713_v32  ;;  %vm1049_vm3 = vcmp.eq.f32.partialorder %v3605_v3, 0.0 }
  0xb2   : > { %2712 = vlog2.f32 %v3623_v47  ;;  %v1050_v55 = vand.u32 2147483648, %v3605_v3  ;;  %v887_v57 = vmul.f32 %v871_v40, %v3578_v25  ;;  %v905_v58 = vadd.f32 -13.280682, %v889_v43 }
  0xb3   : > { %2714 = vrsqrt.f32 %v3625_v39  ;;  %vm1543_vm4 = vcmp.eq.f32.partialorder %v3616_v22, inf  ;;  %vm1545_vm5 = vcmp.eq.f32.partialorder %v3616_v22, 0.0  ;;  %v1546_v62 = vand.u32 2147483648, %v3616_v22 }
  0xb4   : > { %v727_v4 = vadd.f32 -30.664799, %v711_v50  ;;  %v903_v19 = vadd.f32 -13.280682, %v887_v57  ;;  %v698_v8 = vadd.f32 138.35776, %v682_v48  ;;  %v921_v12 = vmul.f32 %v905_v58, %v3585_v16 }
  0xb5   : > { %v842_v37 = vadd.f32 -155.69897, %v826_v20  ;;  %vm1529_vm6 = vcmp.eq.f32.partialorder %v3625_v39, inf  ;;  %vm1531_vm7 = vcmp.eq.f32.partialorder %v3625_v39, 0.0 }
  0xb6   : > { %v2703_v45 = vpop.eup %2702 }
  0xb7   : > { %v2705_v49 = vpop.eup %2704  ;;  %v1032_v51 = vmul.f32 %v2703_v45, %v3602_v56 }
  0xb8   : > { %v2707_v52 = vpop.eup %2706  ;;  %v990_v0 = vmul.f32 0.6931472, %v2705_v49 }
  0xb9   : > { %v1046_v60 = vmul.f32 %v2707_v52, %v3605_v3  ;;  %v1034_v61 = vsel %vm1033_vm0, %v3602_v56, %v1032_v51  ;;  %vm2009_vm0 = vcmp.gt.f32.partialorder %v3562_v13, 0.97575 }
  0xba   : > { %v3660_v63 = vsel %vm1035_vm2, %v1036_v46, %v1034_v61  ;;  %v2709_v1 = vpop.eup %2708  ;;  %v3680_v10 = vmul.f32 -2.0, %v990_v0  ;;  %v1464_v61 = vsub.f32 1.0, %v3623_v47 }
  0xbb   : > { %v1048_v2 = vsel %vm1047_vm1, %v3605_v3, %v1046_v60  ;;  %v1143_v26 = vmul.f32 -0.007784894, %v3660_v63  ;;  %v1303_v11 = vmul.f32 0.007784696, %v3660_v63  ;;  %v1542_v17 = vmul.f32 %v2709_v1, %v3616_v22  ;;  %v2711_v28 = vpop.eup %2710 }
  0xbc   : > { %v3669_v56 = vsel %vm1049_vm3, %v1050_v55, %v1048_v2  ;;  %v3675_v34 = vpop.eup %2712  ;;  %2716 = vrsqrt.f32 %v3680_v10  ;;  %vm1054_vm8 = vcmp.eq.f32.partialorder %v3680_v10, inf  ;;  %vm1056_vm9 = vcmp.eq.f32.partialorder %v3680_v10, 0.0 }
  0xbd   : > { %v1145_v30 = vmul.f32 -0.007784894, %v3669_v56  ;;  %v1305_v31 = vmul.f32 0.007784696, %v3669_v56  ;;  %v1159_v33 = vadd.f32 -0.32239646, %v1143_v26  ;;  %v1544_v3 = vsel %vm1543_vm4, %v3616_v22, %v1542_v17  ;;  %v2715_v38 = vpop.eup %2714 }
  0xbe   : > { %v1319_v35 = vadd.f32 0.32246712, %v1303_v11  ;;  %v3684_v43 = vsel %vm1545_vm5, %v1546_v62, %v1544_v3  ;;  %v1528_v50 = vmul.f32 %v2715_v38, %v3625_v39  ;;  %v1532_v22 = vand.u32 2147483648, %v3625_v39 }
  0xbf   : > { %v1161_v32 = vadd.f32 -0.32239646, %v1145_v30  ;;  %v1321_v40 = vadd.f32 0.32246712, %v1305_v31  ;;  %v1175_v45 = vmul.f32 %v1159_v33, %v3660_v63  ;;  %v1641_v46 = vmul.f32 -0.007784894, %v3684_v43 }
  0xc0   : > { %v1801_v48 = vmul.f32 0.007784696, %v3684_v43  ;;  %v1335_v49 = vmul.f32 %v1319_v35, %v3660_v63  ;;  %v1530_v2 = vsel %vm1529_vm6, %v3625_v39, %v1528_v50  ;;  %v745_v26 = vmul.f32 %v729_v54, %v3585_v16 }
  0xc1   : > { %v1337_v20 = vmul.f32 %v1321_v40, %v3669_v56  ;;  %v1657_v51 = vadd.f32 -0.32239646, %v1641_v46  ;;  %v1177_v57 = vmul.f32 %v1161_v32, %v3669_v56  ;;  %v1191_v60 = vadd.f32 -2.4007583, %v1175_v45 }
  0xc2   : > { %v1817_v52 = vadd.f32 0.32246712, %v1801_v48  ;;  %v1351_v55 = vadd.f32 2.4451342, %v1335_v49  ;;  %v743_v11 = vmul.f32 %v727_v4, %v3578_v25  ;;  %v3706_v17 = vsel %vm1531_vm7, %v1532_v22, %v1530_v2 }
  0xc3   : > { %v1353_v58 = vadd.f32 2.4451342, %v1337_v20  ;;  %v1673_v62 = vmul.f32 %v1657_v51, %v3684_v43  ;;  %v714_v30 = vmul.f32 %v698_v8, %v3593_v23  ;;  %v937_v31 = vadd.f32 1.0, %v921_v12 }
  0xc4   : > { %v1833_v0 = vmul.f32 %v1817_v52, %v3684_v43  ;;  %v1367_v1 = vmul.f32 %v1351_v55, %v3660_v63  ;;  %v919_v3 = vmul.f32 %v903_v19, %v3578_v25  ;;  %v858_v35 = vmul.f32 %v842_v37, %v3593_v23 }
  0xc5   : > { %v1193_v38 = vadd.f32 -2.4007583, %v1177_v57  ;;  %v1369_v32 = vmul.f32 %v1353_v58, %v3669_v56  ;;  %v1639_v40 = vmul.f32 -0.007784894, %v3706_v17  ;;  %v3715_v16 = vmul.f32 %v3638_v18, %v3638_v18 }
  0xc6   : > { %v1849_v33 = vadd.f32 2.4451342, %v1833_v0  ;;  %v1689_v39 = vadd.f32 -2.4007583, %v1673_v62  ;;  %v1207_v54 = vmul.f32 %v1191_v60, %v3660_v63  ;;  %v1383_v4 = vadd.f32 3.7544086, %v1367_v1  ;;  %v2717_v51 = vpop.eup %2716 }
  0xc7   : > { %v1799_v8 = vmul.f32 0.007784696, %v3706_v17  ;;  %v3719_v12 = vadd.f32 2.5066283, %v745_v26  ;;  %v1655_v19 = vadd.f32 -0.32239646, %v1639_v40  ;;  %2718 = vrcp.f32 %v937_v31 }
  0xc8   : > { %v1865_v25 = vmul.f32 %v1849_v33, %v3684_v43  ;;  %v730_v37 = vadd.f32 -30.664799, %v714_v30  ;;  %v3722_v45 = vadd.f32 2.5066283, %v743_v11  ;;  %v935_v46 = vadd.f32 1.0, %v919_v3 }
  0xc9   : > { %v874_v48 = vadd.f32 66.801315, %v858_v35  ;;  %v1209_v49 = vmul.f32 %v1193_v38, %v3669_v56  ;;  %v1385_v50 = vadd.f32 3.7544086, %v1369_v32  ;;  %v1671_v20 = vmul.f32 %v1655_v19, %v3706_v17 }
  0xca   : > { %v1486_v22 = vmul.f32 0.6931472, %v2711_v28  ;;  %v1705_v52 = vmul.f32 %v1689_v39, %v3684_v43  ;;  %v1223_v55 = vadd.f32 -2.5497324, %v1207_v54  ;;  %v1399_v57 = vmul.f32 %v1383_v4, %v3660_v63 }
  0xcb   : > { %v1815_v58 = vadd.f32 0.32246712, %v1799_v8  ;;  %v1881_v60 = vadd.f32 3.7544086, %v1865_v25  ;;  %v1687_v62 = vadd.f32 -2.4007583, %v1671_v20  ;;  %v746_v0 = vmul.f32 %v730_v37, %v3593_v23 }
  0xcc   : > { %v890_v2 = vmul.f32 %v874_v48, %v3593_v23  ;;  %2720 = vlog2.f32 %v1464_v61  ;;  %v1225_v28 = vadd.f32 -2.5497324, %v1209_v49  ;;  %v1401_v26 = vmul.f32 %v1385_v50, %v3669_v56 }
  0xcd   : > { %v1831_v1 = vmul.f32 %v1815_v58, %v3706_v17  ;;  %v1053_v11 = vmul.f32 %v2717_v51, %v3680_v10  ;;  %v1057_v30 = vand.u32 2147483648, %v3680_v10  ;;  %v1721_v31 = vadd.f32 -2.5497324, %v1705_v52 }
  0xce   : > { %v1239_v33 = vmul.f32 %v1223_v55, %v3660_v63  ;;  %v1415_v3 = vadd.f32 1.0, %v1399_v57  ;;  %v3737_v35 = vmul.f32 -2.0, %v1486_v22  ;;  %v1897_v38 = vmul.f32 %v1881_v60, %v3684_v43 }
  0xcf   : > { %v1703_v32 = vmul.f32 %v1687_v62, %v3706_v17  ;;  %v1847_v40 = vadd.f32 2.4451342, %v1831_v1  ;;  %v1055_v61 = vsel %vm1054_vm8, %v3680_v10, %v1053_v11  ;;  %v616_v54 = vmul.f32 -39.69683, %v3715_v16 }
  0xd0   : > { %v3744_v39 = vsel %vm1056_vm9, %v1057_v30, %v1055_v61  ;;  %2722 = vrsqrt.f32 %v3737_v35  ;;  %v792_v4 = vmul.f32 -54.476097, %v3715_v16  ;;  %v1241_v8 = vmul.f32 %v1225_v28, %v3669_v56 }
  0xd1   : > { %v1417_v25 = vadd.f32 1.0, %v1401_v26  ;;  %2724 = vrcp.f32 %v935_v46  ;;  %v1306_v19 = vmul.f32 0.007784696, %v3744_v39  ;;  %v2719_v37 = vpop.eup %2718  ;;  %v1737_v48 = vmul.f32 %v1721_v31, %v3684_v43 }
  0xd2   : > { %v1255_v49 = vadd.f32 4.3746643, %v1239_v33  ;;  %v762_v50 = vadd.f32 2.5066283, %v746_v0  ;;  %v906_v10 = vadd.f32 -13.280682, %v890_v2  ;;  %v1863_v51 = vmul.f32 %v1847_v40, %v3706_v17 }
  0xd3   : > { %v1913_v20 = vadd.f32 1.0, %v1897_v38  ;;  %v1719_v22 = vadd.f32 -2.5497324, %v1703_v32  ;;  %v1322_v52 = vadd.f32 0.32246712, %v1306_v19  ;;  %2726 = vrcp.f32 %v1415_v3 }
  0xd4   : > { %v1146_v55 = vmul.f32 -0.007784894, %v3744_v39  ;;  %v632_v57 = vadd.f32 220.9461, %v616_v54  ;;  %v808_v58 = vadd.f32 161.58583, %v792_v4  ;;  %2728 = vrcp.f32 %v1417_v25 }
  0xd5   : > { %v1257_v60 = vadd.f32 4.3746643, %v1241_v8  ;;  %v1338_v46 = vmul.f32 %v1322_v52, %v3744_v39  ;;  %v986_v62 = vmul.f32 0.6931472, %v3675_v34  ;;  %v777_v0 = vmul.f32 %v3572_v24, %v3719_v12 }
  0xd6   : > { %v2721_v1 = vpop.eup %2720  ;;  %v1753_v2 = vadd.f32 4.3746643, %v1737_v48  ;;  %v824_v28 = vmul.f32 %v808_v58, %v3715_v16  ;;  %v3761_v26 = vshrl.u32 %v477_v36, 16  ;;  %2730 = vrcp.f32 %v1913_v20 }
  0xd7   : > { %v775_v11 = vmul.f32 %v3565_v15, %v3722_v45  ;;  %v1735_v30 = vmul.f32 %v1719_v22, %v3706_v17  ;;  %v1879_v31 = vadd.f32 3.7544086, %v1863_v51  ;;  %v3767_v34 = vmul.f32 %v3581_v27, %v762_v50 }
  0xd8   : > { %v922_v33 = vmul.f32 %v906_v10, %v3593_v23  ;;  %v1162_v24 = vadd.f32 -0.32239646, %v1146_v55  ;;  %v648_v12 = vmul.f32 %v632_v57, %v3715_v16  ;;  %v1273_v3 = vmul.f32 %v1257_v60, %v3669_v56 }
  0xd9   : > { %v1271_v38 = vmul.f32 %v1255_v49, %v3660_v63  ;;  %v1354_v32 = vadd.f32 2.4451342, %v1338_v46  ;;  %v3773_v40 = vmul.f32 -2.0, %v986_v62  ;;  %v1769_v15 = vmul.f32 %v1753_v2, %v3684_v43 }
  0xda   : > { %v2723_v61 = vpop.eup %2722  ;;  %vm1550_vm10 = vcmp.eq.f32.partialorder %v3737_v35, inf  ;;  %v1553_v27 = vand.u32 2147483648, %v3737_v35  ;;  %v840_v45 = vadd.f32 -155.69897, %v824_v28  ;;  %v1751_v23 = vadd.f32 4.3746643, %v1735_v30 }
  0xdb   : > { %v2725_v54 = vpop.eup %2724  ;;  %v1895_v4 = vmul.f32 %v1879_v31, %v3706_v17  ;;  %v1549_v8 = vmul.f32 %v2723_v61, %v3737_v35  ;;  %vm1552_vm11 = vcmp.eq.f32.partialorder %v3737_v35, 0.0  ;;  %v1178_v63 = vmul.f32 %v1162_v24, %v3744_v39 }
  0xdc   : > { %v664_v56 = vadd.f32 -275.9285, %v648_v12  ;;  %2732 = vrsqrt.f32 %v3773_v40  ;;  %v1482_v25 = vmul.f32 0.6931472, %v2721_v1  ;;  %v3783_v43 = vmul.f32 %v2719_v37, %v777_v0 }
  0xdd   : > { %v938_v19 = vadd.f32 1.0, %v922_v33  ;;  %v1370_v48 = vmul.f32 %v1354_v32, %v3744_v39  ;;  %v1551_v49 = vsel %vm1550_vm10, %v3737_v35, %v1549_v8  ;;  %v2727_v50 = vpop.eup %2726  ;;  %v1289_v10 = vadd.f32 2.938164, %v1273_v3 }
  0xde   : > { %v1287_v20 = vadd.f32 2.938164, %v1271_v38  ;;  %v3787_v22 = vsel %vm1552_vm11, %v1553_v27, %v1551_v49  ;;  %v856_v51 = vmul.f32 %v840_v45, %v3715_v16  ;;  %v2729_v52 = vpop.eup %2728  ;;  %v1767_v55 = vmul.f32 %v1751_v23, %v3706_v17 }
  0xdf   : > { %v1911_v57 = vadd.f32 1.0, %v1895_v4  ;;  %v1642_v58 = vmul.f32 -0.007784894, %v3787_v22  ;;  %v1802_v37 = vmul.f32 0.007784696, %v3787_v22  ;;  %v680_v62 = vmul.f32 %v664_v56, %v3715_v16 }
  0xe0   : > { %v1785_v60 = vadd.f32 2.938164, %v1769_v15  ;;  %v1194_v46 = vadd.f32 -2.4007583, %v1178_v63  ;;  %v3794_v35 = vmul.f32 -2.0, %v1482_v25  ;;  %v2731_v1 = vpop.eup %2730  ;;  %v952_v0 = vmul.f32 %v2725_v54, %v775_v11 }
  0xe1   : > { %v1386_v2 = vadd.f32 3.7544086, %v1370_v48  ;;  %v1658_v28 = vadd.f32 -0.32239646, %v1642_v58  ;;  %v1818_v17 = vadd.f32 0.32246712, %v1802_v37  ;;  %v1436_v30 = vmul.f32 %v2729_v52, %v1289_v10 }
  0xe2   : > { %v1432_v31 = vmul.f32 %v2727_v50, %v1287_v20  ;;  %2734 = vrcp.f32 %v938_v19  ;;  %v872_v33 = vadd.f32 66.801315, %v856_v51  ;;  %v3798_v24 = vadd.f32 2.938164, %v1767_v55 }
  0xe3   : > { %2736 = vrcp.f32 %v1911_v57  ;;  %v1674_v12 = vmul.f32 %v1658_v28, %v3787_v22  ;;  %v1834_v3 = vmul.f32 %v1818_v17, %v3787_v22  ;;  %v3802_v38 = vmul.f32 %v2731_v1, %v1785_v60 }
  0xe4   : > { %v1210_v11 = vmul.f32 %v1194_v46, %v3744_v39  ;;  %v696_v32 = vadd.f32 138.35776, %v680_v62  ;;  %2738 = vrsqrt.f32 %v3794_v35  ;;  %v1402_v61 = vmul.f32 %v1386_v2, %v3744_v39 }
  0xe5   : > { %v1690_v15 = vadd.f32 -2.4007583, %v1674_v12  ;;  %v1850_v27 = vadd.f32 2.4451342, %v1834_v3  ;;  %v3808_v45 = vmul.f32 1.1920929e-07, %v3633_v42  ;;  %v888_v23 = vmul.f32 %v872_v33, %v3715_v16 }
  0xe6   : > { %v2733_v54 = vpop.eup %2732  ;;  %vm1040_vm14 = vcmp.eq.f32.partialorder %v3773_v40, inf  ;;  %v1043_v4 = vand.u32 2147483648, %v3773_v40  ;;  %vm1042_vm15 = vcmp.eq.f32.partialorder %v3773_v40, 0.0  ;;  %v3077_v25 = vmov 0.0  }
  0xe7   : > { %v1706_v8 = vmul.f32 %v1690_v15, %v3787_v22  ;;  %v1866_v63 = vmul.f32 %v1850_v27, %v3787_v22  ;;  %v1039_v56 = vmul.f32 %v2733_v54, %v3773_v40  ;;  %2531 = vmatprep.subr.bf16.mxu0 %v3077_v25  ;;  %v1226_v42 = vadd.f32 -2.5497324, %v1210_v11 }
  0xe8   : > { %v712_v19 = vmul.f32 %v696_v32, %v3715_v16  ;;  %v3820_v48 = vadd.f32 -0.5, %v3808_v45  ;;  %v1468_v49 = vsub.f32 1.0, %v3808_v45  ;;  %v1418_v50 = vadd.f32 1.0, %v1402_v61 }
  0xe9   : > { %v1882_v10 = vadd.f32 3.7544086, %v1866_v63  ;;  %v1041_v20 = vsel %vm1040_vm14, %v3773_v40, %v1039_v56  ;;  %2740 = vlog2.f32 %v3808_v45  ;;  %v904_v51 = vadd.f32 -13.280682, %v888_v23 }
  0xea   : > { %v3825_v52 = vsel %vm1042_vm15, %v1043_v4, %v1041_v20  ;;  %v3829_v55 = vmul.f32 %v3820_v48, %v3820_v48  ;;  %2742 = vlog2.f32 %v1468_v49  ;;  %v1722_v57 = vadd.f32 -2.5497324, %v1706_v8 }
  0xeb   : > { %v1898_v58 = vmul.f32 %v1882_v10, %v3787_v22  ;;  %v1144_v37 = vmul.f32 -0.007784894, %v3825_v52  ;;  %v1304_v60 = vmul.f32 0.007784696, %v3825_v52  ;;  %v1961_v40 = vsub.f32 0.0, %v3802_v38 }
  0xec   : > { %v3834_v46 = vpop.eup %2734  ;;  %v1993_v62 = vsel %vm1977_vm12, %v1436_v30, %v3783_v43  ;;  %v3842_v1 = vsel %vm1975_vm13, %v1432_v31, %v952_v0  ;;  %v796_v2 = vmul.f32 -54.476097, %v3829_v55  ;;  %v1242_v17 = vmul.f32 %v1226_v42, %v3744_v39 }
  0xed   : > { %v2737_v28 = vpop.eup %2736  ;;  %v1914_v33 = vadd.f32 1.0, %v1898_v58  ;;  %v728_v12 = vadd.f32 -30.664799, %v712_v19  ;;  %v1160_v3 = vadd.f32 -0.32239646, %v1144_v37  ;;  %2744 = vrcp.f32 %v1418_v50 }
  0xee   : > { %v2739_v11 = vpop.eup %2738  ;;  %v1320_v38 = vadd.f32 0.32246712, %v1304_v60  ;;  %vm1536_vm1 = vcmp.eq.f32.partialorder %v3794_v35, inf  ;;  %v812_v43 = vadd.f32 161.58583, %v796_v2  ;;  %v1738_v30 = vmul.f32 %v1722_v57, %v3787_v22 }
  0xef   : > { %v920_v0 = vmul.f32 %v904_v51, %v3715_v16  ;;  %v1539_v31 = vand.u32 2147483648, %v3794_v35  ;;  %v555_v32 = vadd.f32 0.5, %v3640_v44  ;;  %v1176_v61 = vmul.f32 %v1160_v3, %v3825_v52 }
  0xf0   : > { %v1336_v15 = vmul.f32 %v1320_v38, %v3825_v52  ;;  %v1535_v27 = vmul.f32 %v2739_v11, %v3794_v35  ;;  %vm1538_vm2 = vcmp.eq.f32.partialorder %v3794_v35, 0.0  ;;  %v1258_v54 = vadd.f32 4.3746643, %v1242_v17 }
  0xf1   : > { %2746 = vrcp.f32 %v1914_v33  ;;  %v744_v23 = vmul.f32 %v728_v12, %v3715_v16  ;;  %v620_v4 = vmul.f32 -39.69683, %v3829_v55  ;;  %vm2007_vm3 = vcmp.gt.f32.partialorder %v3560_v5, 0.97575 }
  0xf2   : > { %v1192_v8 = vadd.f32 -2.4007583, %v1176_v61  ;;  %v1352_v63 = vadd.f32 2.4451342, %v1336_v15  ;;  %v1537_v44 = vsel %vm1536_vm1, %v3794_v35, %v1535_v27  ;;  %v828_v56 = vmul.f32 %v812_v43, %v3829_v55 }
  0xf3   : > { %v2741_v42 = vpop.eup %2740  ;;  %v1754_v19 = vadd.f32 4.3746643, %v1738_v30  ;;  %v936_v49 = vadd.f32 1.0, %v920_v0  ;;  %v3863_v50 = vsel %vm1538_vm2, %v1539_v31, %v1537_v44  ;;  %v3865_v10 = vmul.f32 1.1920929e-07, %v555_v32 }
  0xf4   : > { %v2743_v16 = vpop.eup %2742  ;;  %v1208_v20 = vmul.f32 %v1192_v8, %v3825_v52  ;;  %v1368_v51 = vmul.f32 %v1352_v63, %v3825_v52  ;;  %v1640_v57 = vmul.f32 -0.007784894, %v3863_v50  ;;  %v1800_v58 = vmul.f32 0.007784696, %v3863_v50 }
  0xf5   : > { %v1928_v35 = vmul.f32 %v2737_v28, %v3798_v24  ;;  %v1274_v37 = vmul.f32 %v1258_v54, %v3744_v39  ;;  %v636_v60 = vadd.f32 220.9461, %v620_v4  ;;  %v994_v2 = vmul.f32 0.6931472, %v2741_v42 }
  0xf6   : > { %vm1978_vm4 = vcmp.lt.f32.partialorder %v3569_v21, 0.02425  ;;  %v1384_v17 = vadd.f32 3.7544086, %v1368_v51  ;;  %v1656_v33 = vadd.f32 -0.32239646, %v1640_v57  ;;  %2748 = vlog2.f32 %v3865_v10  ;;  %v2186_v51 = vpop.permute.xlu0 %2185 }
  0xf7   : > { %v844_v12 = vadd.f32 -155.69897, %v828_v56  ;;  %v1770_v3 = vmul.f32 %v1754_v19, %v3787_v22  ;;  %2750 = vrcp.f32 %v936_v49  ;;  %v1816_v11 = vadd.f32 0.32246712, %v1800_v58  ;;  %v2745_v43 = vpop.eup %2744  ;;  %v2196_v56 = vpop.permute.xlu1 %2195 }
  0xf8   : > { %v1490_v38 = vmul.f32 0.6931472, %v2743_v16  ;;  %v1224_v30 = vadd.f32 -2.5497324, %v1208_v20  ;;  %v1400_v24 = vmul.f32 %v1384_v17, %v3825_v52  ;;  %v1672_v39 = vmul.f32 %v1656_v33, %v3863_v50 }
  0xf9   : > { %v3878_v28 = vmul.f32 -2.0, %v994_v2  ;;  %v2025_v0 = vsel %vm2009_vm0, %v1961_v40, %v1993_v62  ;;  %v1959_v31 = vsub.f32 0.0, %v1928_v35  ;;  %v1290_v32 = vadd.f32 2.938164, %v1274_v37  ;;  %v2169_v37 = vld [vmem:[%s3259_s10 + $0x10] sm:$0xff] }
  0xfa   : > { %v1832_v61 = vmul.f32 %v1816_v11, %v3863_v50  ;;  %v760_v15 = vadd.f32 2.5066283, %v744_v23  ;;  %v1688_v22 = vadd.f32 -2.4007583, %v1672_v39  ;;  %v652_v27 = vmul.f32 %v636_v60, %v3829_v55 }
  0xfb   : > { %v860_v54 = vmul.f32 %v844_v12, %v3829_v55  ;;  %v2747_v4 = vpop.eup %2746  ;;  %v1786_v8 = vadd.f32 2.938164, %v1770_v3  ;;  %v1416_v63 = vadd.f32 1.0, %v1400_v24  ;;  %2752 = vrsqrt.f32 %v3878_v28 }
  0xfc   : > { %v1848_v44 = vadd.f32 2.4451342, %v1832_v61  ;;  %vm2010_vm5 = vcmp.gt.f32.partialorder %v3569_v21, 0.97575  ;;  %v1240_v13 = vmul.f32 %v1224_v30, %v3825_v52  ;;  %v1704_v40 = vmul.f32 %v1688_v22, %v3863_v50 }
  0xfd   : > { %v3889_v62 = vmul.f32 -2.0, %v1490_v38  ;;  %v510_v23 = vxor.u32 %v3629_v59, %v478_v6  ;;  %v2023_v42 = vsel %vm2007_vm3, %v1959_v31, %v3842_v1  ;;  %v958_v19 = vmul.f32 %v3834_v46, %v3767_v34 }
  0xfe   : > { %v1438_v49 = vmul.f32 %v2745_v43, %v1290_v32  ;;  %v1864_v16 = vmul.f32 %v1848_v44, %v3863_v50  ;;  %v2265_v20 = vmul.f32 %v2196_v56, %v2025_v0  ;;  %v1720_v57 = vadd.f32 -2.5497324, %v1704_v40 }
  0xff   : > { %v668_v58 = vadd.f32 -275.9285, %v652_v27  ;;  %v876_v35 = vadd.f32 66.801315, %v860_v54  ;;  %v1934_v53 = vmul.f32 %v2747_v4, %v1786_v8  ;;  %v776_v6 = vmul.f32 %v3638_v18, %v760_v15 }
 0x100   : > { %2754 = vrcp.f32 %v1416_v63  ;;  %v1880_v59 = vadd.f32 3.7544086, %v1864_v16  ;;  %v2749_v60 = vpop.eup %2748  ;;  %v1256_v5 = vadd.f32 4.3746643, %v1240_v13  ;;  %v1736_v1 = vmul.f32 %v1720_v57, %v3863_v50 }
 0x101   : > { %2756 = vrsqrt.f32 %v3889_v62  ;;  %v526_v34 = vshrl.u32 %v510_v23, 9  ;;  %v2751_v46 = vpop.eup %2750  ;;  %v3904_v2 = vmul.f32 %v2186_v51, %v2023_v42  ;;  %v1994_v17 = vsel %vm1978_vm4, %v1438_v49, %v958_v19  ;;  %v2201_v42 = vpop.permute.xlu1 %2200 }
 0x102   : > { %v1896_v33 = vmul.f32 %v1880_v59, %v3863_v50  ;;  %v3912_v18 = vxor.u32 %v3761_v26, %v477_v36  ;;  %v3914_v12 = vadd.f32 %v2265_v20, %v2169_v37  ;;  %v684_v3 = vmul.f32 %v668_v58, %v3829_v55 }
 0x103   : > { %v892_v11 = vmul.f32 %v876_v35, %v3829_v55  ;;  %v3919_v38 = vadd.f32 -0.5, %v3865_v10  ;;  %v1962_v43 = vsub.f32 0.0, %v1934_v53  ;;  %v1752_v30 = vadd.f32 4.3746643, %v1736_v1 }
 0x104   : > { %v1912_v24 = vadd.f32 1.0, %v1896_v33  ;;  %v992_v39 = vmul.f32 0.6931472, %v2749_v60  ;;  %v954_v0 = vmul.f32 %v2751_v46, %v776_v6  ;;  %v1272_v31 = vmul.f32 %v1256_v5, %v3825_v52 }
 0x105   : > { %v3924_v7 = vmul.f32 %v3919_v38, %v3919_v38  ;;  %v542_v36 = vcvt.s32.f32 %v526_v34  ;;  %v2753_v26 = vpop.eup %2752  ;;  %vm1068_vm6 = vcmp.eq.f32.partialorder %v3878_v28, inf  ;;  %v1071_v32 = vand.u32 2147483648, %v3878_v28 }
 0x106   : > { %2758 = vrcp.f32 %v1912_v24  ;;  %v3928_v61 = vmul.f32 -2.0, %v992_v39  ;;  %vm1976_vm7 = vcmp.lt.f32.partialorder %v3623_v47, 0.02425  ;;  %v700_v15 = vadd.f32 138.35776, %v684_v3 }
 0x107   : > { %v1067_v22 = vmul.f32 %v2753_v26, %v3878_v28  ;;  %vm1070_vm8 = vcmp.eq.f32.partialorder %v3878_v28, 0.0  ;;  %v795_v52 = vmul.f32 -54.476097, %v3924_v7  ;;  %v2026_v27 = vsel %vm2010_vm5, %v1962_v43, %v1994_v17 }
 0x108   : > { %v1768_v54 = vmul.f32 %v1752_v30, %v3863_v50  ;;  %v908_v4 = vadd.f32 -13.280682, %v892_v11  ;;  %2760 = vrsqrt.f32 %v3928_v61  ;;  %v1288_v8 = vadd.f32 2.938164, %v1272_v31 }
 0x109   : > { %v1069_v63 = vsel %vm1068_vm6, %v3878_v28, %v1067_v22  ;;  %v619_v44 = vmul.f32 -39.69683, %v3924_v7  ;;  %v811_v13 = vadd.f32 161.58583, %v795_v52  ;;  %vm2008_vm9 = vcmp.gt.f32.partialorder %v3623_v47, 0.97575 }
 0x10a   : > { %v2755_v40 = vpop.eup %2754  ;;  %v3941_v23 = vsel %vm1070_vm8, %v1071_v32, %v1069_v63  ;;  %vm1564_vm10 = vcmp.eq.f32.partialorder %v3889_v62, inf  ;;  %v1567_v21 = vand.u32 2147483648, %v3889_v62  ;;  %v1467_v50 = vsub.f32 1.0, %v3865_v10 }
 0x10b   : > { %v2757_v56 = vpop.eup %2756  ;;  %v1148_v19 = vmul.f32 -0.007784894, %v3941_v23  ;;  %v1308_v28 = vmul.f32 0.007784696, %v3941_v23  ;;  %v827_v49 = vmul.f32 %v811_v13, %v3924_v7  ;;  %v558_v16 = vadd.f32 0.5, %v542_v36 }
 0x10c   : > { %v1784_v20 = vadd.f32 2.938164, %v1768_v54  ;;  %v716_v51 = vmul.f32 %v700_v15, %v3829_v55  ;;  %v1563_v57 = vmul.f32 %v2757_v56, %v3889_v62  ;;  %vm1566_vm11 = vcmp.eq.f32.partialorder %v3889_v62, 0.0  ;;  %v2191_v15 = vpop.permute.xlu0 %2190  ;;  %v2167_v54 = vld [vmem:[%s3259_s10] sm:$0xff] }
 0x10d   : > { %v924_v58 = vmul.f32 %v908_v4, %v3829_v55  ;;  %v1164_v35 = vadd.f32 -0.32239646, %v1148_v19  ;;  %v1324_v37 = vadd.f32 0.32246712, %v1308_v28  ;;  %v635_v53 = vadd.f32 220.9461, %v619_v44 }
 0x10e   : > { %v2266_v6 = vmul.f32 %v2201_v42, %v2026_v27  ;;  %v1434_v59 = vmul.f32 %v2755_v40, %v1288_v8  ;;  %v1565_v60 = vsel %vm1564_vm10, %v3889_v62, %v1563_v57  ;;  %v843_v5 = vadd.f32 -155.69897, %v827_v49  ;;  %v2168_v44 = vld [vmem:[%s3259_s10 + $0x8] sm:$0xff]  ;;  %v2170_v49 = vld [vmem:[%s3259_s10 + $0x18] sm:$0xff] }
 0x10f   : > { %v1340_v1 = vmul.f32 %v1324_v37, %v3941_v23  ;;  %v3957_v34 = vsel %vm1566_vm11, %v1567_v21, %v1565_v60  ;;  %2762 = vlog2.f32 %v1467_v50  ;;  %v3959_v46 = vmul.f32 1.1920929e-07, %v558_v16 }
 0x110   : > { %v2759_v17 = vpop.eup %2758  ;;  %v1180_v33 = vmul.f32 %v1164_v35, %v3941_v23  ;;  %v1644_v3 = vmul.f32 -0.007784894, %v3957_v34  ;;  %v1804_v11 = vmul.f32 0.007784696, %v3957_v34  ;;  %v859_v43 = vmul.f32 %v843_v5, %v3924_v7 }
 0x111   : > { %v1930_v30 = vmul.f32 %v2759_v17, %v1784_v20  ;;  %v1356_v62 = vadd.f32 2.4451342, %v1340_v1  ;;  %v651_v24 = vmul.f32 %v635_v53, %v3924_v7  ;;  %vm1061_vm12 = vcmp.eq.f32.partialorder %v3928_v61, inf }
 0x112   : > { %v2761_v39 = vpop.eup %2760  ;;  %v1992_v31 = vsel %vm1976_vm7, %v1434_v59, %v954_v0  ;;  %v1660_v36 = vadd.f32 -0.32239646, %v1644_v3  ;;  %v1820_v26 = vadd.f32 0.32246712, %v1804_v11  ;;  %v1064_v32 = vand.u32 2147483648, %v3928_v61 }
 0x113   : > { %v1960_v22 = vsub.f32 0.0, %v1930_v30  ;;  %v1372_v52 = vmul.f32 %v1356_v62, %v3941_v23  ;;  %2764 = vlog2.f32 %v3959_v46  ;;  %v1470_v27 = vsub.f32 1.0, %v3959_v46 }
 0x114   : > { %v1196_v4 = vadd.f32 -2.4007583, %v1180_v33  ;;  %v1676_v8 = vmul.f32 %v1660_v36, %v3957_v34  ;;  %v875_v63 = vadd.f32 66.801315, %v859_v43  ;;  %v1060_v0 = vmul.f32 %v2761_v39, %v3928_v61 }
 0x115   : > { %v2024_v13 = vsel %vm2008_vm9, %v1960_v22, %v1992_v31  ;;  %v1836_v40 = vmul.f32 %v1820_v26, %v3957_v34  ;;  %v667_v21 = vadd.f32 -275.9285, %v651_v24  ;;  %v3981_v50 = vadd.f32 -0.5, %v3959_v46 }
 0x116   : > { %v2264_v56 = vmul.f32 %v2191_v15, %v2024_v13  ;;  %v1388_v42 = vadd.f32 3.7544086, %v1372_v52  ;;  %v1692_v19 = vadd.f32 -2.4007583, %v1676_v8  ;;  %vm1063_vm13 = vcmp.eq.f32.partialorder %v3928_v61, 0.0 }
 0x117   : > { %v2279_v28 = vadd.f32 %v3904_v2, %v2167_v54  ;;  %v732_v16 = vadd.f32 -30.664799, %v716_v51  ;;  %v1062_v47 = vsel %vm1061_vm12, %v3928_v61, %v1060_v0  ;;  %2766 = vlog2.f32 %v1470_v27 }
 0x118   : > { %v2280_v20 = vadd.f32 %v2264_v56, %v2168_v44  ;;  %v940_v57 = vadd.f32 1.0, %v924_v58  ;;  %v1212_v35 = vmul.f32 %v1196_v4, %v3941_v23  ;;  %v891_v37 = vmul.f32 %v875_v63, %v3924_v7 }
 0x119   : > { %v2763_v53 = vpop.eup %2762  ;;  %v1852_v59 = vadd.f32 2.4451342, %v1836_v40  ;;  %v683_v60 = vmul.f32 %v667_v21, %v3924_v7  ;;  %v3992_v5 = vsel %vm1063_vm13, %v1064_v32, %v1062_v47  ;;  %v3996_v2 = vmul.f32 %v3981_v50, %v3981_v50 }
 0x11a   : > { %v2282_v51 = vadd.f32 %v2266_v6, %v2170_v49  ;;  %v1404_v61 = vmul.f32 %v1388_v42, %v3941_v23  ;;  %v1708_v1 = vmul.f32 %v1692_v19, %v3957_v34  ;;  %v2298_v58 = vpack.c.bf16 %v2280_v20, %v2279_v28 }
 0x11b   : > { %v748_v17 = vmul.f32 %v732_v16, %v3829_v55  ;;  %v1147_v33 = vmul.f32 -0.007784894, %v3992_v5  ;;  %v622_v3 = vmul.f32 -39.69683, %v3996_v2  ;;  %v525_v11 = vshrl.u32 %v3912_v18, 9 }
 0x11c   : > { %2768 = vrcp.f32 %v940_v57  ;;  %v1228_v43 = vadd.f32 -2.5497324, %v1212_v35  ;;  %v907_v30 = vadd.f32 -13.280682, %v891_v37  ;;  %v1307_v62 = vmul.f32 0.007784696, %v3992_v5  ;;  %2532 = vmatpush3.bf16.msra.mxu0 %v2298_v58 }
 0x11d   : > { %v2765_v6 = vpop.eup %2764  ;;  %v1868_v24 = vmul.f32 %v1852_v59, %v3957_v34  ;;  %v699_v39 = vadd.f32 138.35776, %v683_v60  ;;  %v1163_v31 = vadd.f32 -0.32239646, %v1147_v33  ;;  %v1488_v36 = vmul.f32 0.6931472, %v2763_v53  ;;  %2533 = vmatprep.subr.bf16.mxu0 %v3077_v25 }
 0x11e   : > { %v1420_v55 = vadd.f32 1.0, %v1404_v61  ;;  %v1724_v26 = vadd.f32 -2.5497324, %v1708_v1  ;;  %v1323_v32 = vadd.f32 0.32246712, %v1307_v62  ;;  %v2299_v15 = vpack.c.bf16 %v2282_v51, %v3914_v12 }
 0x11f   : > { %v1179_v18 = vmul.f32 %v1163_v31, %v3992_v5  ;;  %v4009_v22 = vmul.f32 -2.0, %v1488_v36  ;;  %v638_v52 = vadd.f32 220.9461, %v622_v3  ;;  %v798_v27 = vmul.f32 -54.476097, %v3996_v2 }
 0x120   : > { %v1244_v54 = vmul.f32 %v1228_v43, %v3941_v23  ;;  %v923_v4 = vmul.f32 %v907_v30, %v3924_v7  ;;  %v1339_v8 = vmul.f32 %v1323_v32, %v3992_v5  ;;  %v998_v63 = vmul.f32 0.6931472, %v2765_v6  ;;  %2534 = vmatpush3.bf16.msra.mxu0 %v2299_v15 }
 0x121   : > { %v2767_v0 = vpop.eup %2766  ;;  %v764_v44 = vadd.f32 2.5066283, %v748_v17  ;;  %v1884_v13 = vadd.f32 3.7544086, %v1868_v24  ;;  %v1195_v40 = vadd.f32 -2.4007583, %v1179_v18  ;;  %2770 = vrsqrt.f32 %v4009_v22  ;;  %2535 = vmatprep.subr.bf16.mxu0 %v3077_v25 }
 0x122   : > { %v1740_v12 = vmul.f32 %v1724_v26, %v3957_v34  ;;  %v715_v21 = vmul.f32 %v699_v39, %v3924_v7  ;;  %v1355_v56 = vadd.f32 2.4451342, %v1339_v8  ;;  %v541_v42 = vcvt.s32.f32 %v525_v11 }
 0x123   : > { %2772 = vrcp.f32 %v1420_v55  ;;  %v654_v19 = vmul.f32 %v638_v52, %v3996_v2  ;;  %v814_v28 = vadd.f32 161.58583, %v798_v27  ;;  %v4020_v49 = vmul.f32 -2.0, %v998_v63 }
 0x124   : > { %v1260_v16 = vadd.f32 4.3746643, %v1244_v54  ;;  %v939_v47 = vadd.f32 1.0, %v923_v4  ;;  %v1211_v20 = vmul.f32 %v1195_v40, %v3992_v5  ;;  %v1494_v57 = vmul.f32 0.6931472, %v2767_v0 }
 0x125   : > { %v1900_v35 = vmul.f32 %v1884_v13, %v3957_v34  ;;  %v1371_v37 = vmul.f32 %v1355_v56, %v3992_v5  ;;  %v830_v53 = vmul.f32 %v814_v28, %v3996_v2  ;;  %2774 = vrsqrt.f32 %v4020_v49 }
 0x126   : > { %v2769_v59 = vpop.eup %2768  ;;  %v780_v60 = vmul.f32 %v3820_v48, %v764_v44  ;;  %v1756_v51 = vadd.f32 4.3746643, %v1740_v12  ;;  %v731_v61 = vadd.f32 -30.664799, %v715_v21  ;;  %v670_v1 = vadd.f32 -275.9285, %v654_v19 }
 0x127   : > { %v557_v58 = vadd.f32 0.5, %v541_v42  ;;  %v1276_v17 = vmul.f32 %v1260_v16, %v3941_v23  ;;  %v1227_v33 = vadd.f32 -2.5497324, %v1211_v20  ;;  %v4029_v3 = vmul.f32 -2.0, %v1494_v57 }
 0x128   : > { %v1916_v11 = vadd.f32 1.0, %v1900_v35  ;;  %2776 = vrcp.f32 %v939_v47  ;;  %v1387_v43 = vadd.f32 3.7544086, %v1371_v37  ;;  %v846_v30 = vadd.f32 -155.69897, %v830_v53 }
 0x129   : > { %v4031_v62 = vmul.f32 %v2769_v59, %v780_v60  ;;  %v1772_v6 = vmul.f32 %v1756_v51, %v3957_v34  ;;  %v4035_v24 = vmul.f32 %v731_v61, %v3924_v7  ;;  %2778 = vrsqrt.f32 %v4029_v3 }
 0x12a   : > { %vm1557_vm14 = vcmp.eq.f32.partialorder %v4009_v22, inf  ;;  %v1560_v23 = vand.u32 2147483648, %v4009_v22  ;;  %v686_v39 = vmul.f32 %v670_v1, %v3996_v2  ;;  %v4041_v31 = vmul.f32 1.1920929e-07, %v557_v58 }
 0x12b   : > { %v2771_v48 = vpop.eup %2770  ;;  %v1292_v36 = vadd.f32 2.938164, %v1276_v17  ;;  %v1243_v55 = vmul.f32 %v1227_v33, %v3992_v5  ;;  %vm1559_vm15 = vcmp.eq.f32.partialorder %v4009_v22, 0.0  ;;  %2780 = vrcp.f32 %v1916_v11 }
 0x12c   : > { %v1556_v26 = vmul.f32 %v2771_v48, %v4009_v22  ;;  %v1403_v34 = vmul.f32 %v1387_v43, %v3992_v5  ;;  %v862_v32 = vmul.f32 %v846_v30, %v3996_v2  ;;  %v4049_v15 = vadd.f32 -0.5, %v4041_v31 }
 0x12d   : > { %v2773_v7 = vpop.eup %2772  ;;  %v1788_v18 = vadd.f32 2.938164, %v1772_v6  ;;  %vm1082_vm0 = vcmp.eq.f32.partialorder %v4020_v49, inf  ;;  %vm1084_vm1 = vcmp.eq.f32.partialorder %v4020_v49, 0.0  ;;  %v702_v4 = vadd.f32 138.35776, %v686_v39 }
 0x12e   : > { %v1558_v52 = vsel %vm1557_vm14, %v4009_v22, %v1556_v26  ;;  %v1085_v8 = vand.u32 2147483648, %v4020_v49  ;;  %v4059_v63 = vmul.f32 %v4049_v15, %v4049_v15  ;;  %v4061_v0 = vmul.f32 %v2773_v7, %v1292_v36 }
 0x12f   : > { %v2775_v27 = vpop.eup %2774  ;;  %v4054_v54 = vsel %vm1559_vm15, %v1560_v23, %v1558_v52  ;;  %v4063_v44 = vadd.f32 4.3746643, %v1243_v55  ;;  %v1419_v40 = vadd.f32 1.0, %v1403_v34  ;;  %v878_v12 = vadd.f32 66.801315, %v862_v32 }
 0x130   : > { %v1643_v22 = vmul.f32 -0.007784894, %v4054_v54  ;;  %v1803_v13 = vmul.f32 0.007784696, %v4054_v54  ;;  %v1081_v21 = vmul.f32 %v2775_v27, %v4020_v49  ;;  %v621_v56 = vmul.f32 -39.69683, %v4059_v63 }
 0x131   : > { %vm1578_vm2 = vcmp.eq.f32.partialorder %v4029_v3, inf  ;;  %vm1580_vm3 = vcmp.eq.f32.partialorder %v4029_v3, 0.0  ;;  %v1581_v47 = vand.u32 2147483648, %v4029_v3  ;;  %v1469_v57 = vsub.f32 1.0, %v4041_v31 }
 0x132   : > { %v1659_v42 = vadd.f32 -0.32239646, %v1643_v22  ;;  %v1819_v19 = vadd.f32 0.32246712, %v1803_v13  ;;  %v4071_v28 = vpop.eup %2776  ;;  %v1083_v16 = vsel %vm1082_vm0, %v4020_v49, %v1081_v21  ;;  %v637_v20 = vadd.f32 220.9461, %v621_v56 }
 0x133   : > { %v2779_v35 = vpop.eup %2778  ;;  %v4082_v59 = vsel %vm1084_vm1, %v1085_v8, %v1083_v16  ;;  %v797_v60 = vmul.f32 -54.476097, %v4059_v63  ;;  %vm1980_vm4 = vcmp.lt.f32.partialorder %v3808_v45, 0.02425  ;;  %2782 = vlog2.f32 %v4041_v31 }
 0x134   : > { %v1675_v37 = vmul.f32 %v1659_v42, %v4054_v54  ;;  %v1835_v53 = vmul.f32 %v1819_v19, %v4054_v54  ;;  %v1150_v51 = vmul.f32 -0.007784894, %v4082_v59  ;;  %v1310_v61 = vmul.f32 0.007784696, %v4082_v59 }
 0x135   : > { %v1577_v1 = vmul.f32 %v2779_v35, %v4029_v3  ;;  %2784 = vrcp.f32 %v1419_v40  ;;  %v653_v33 = vmul.f32 %v637_v20, %v4059_v63  ;;  %v2781_v49 = vpop.eup %2780  ;;  %v813_v39 = vadd.f32 161.58583, %v797_v60 }
 0x136   : > { %v1691_v58 = vadd.f32 -2.4007583, %v1675_v37  ;;  %v1851_v17 = vadd.f32 2.4451342, %v1835_v53  ;;  %v1166_v11 = vadd.f32 -0.32239646, %v1150_v51  ;;  %2786 = vlog2.f32 %v1469_v57 }
 0x137   : > { %v1326_v43 = vadd.f32 0.32246712, %v1310_v61  ;;  %v1579_v30 = vsel %vm1578_vm2, %v4029_v3, %v1577_v1  ;;  %v669_v7 = vadd.f32 -275.9285, %v653_v33  ;;  %v894_v52 = vmul.f32 %v878_v12, %v3996_v2 }
 0x138   : > { %v1707_v6 = vmul.f32 %v1691_v58, %v4054_v54  ;;  %v1867_v48 = vmul.f32 %v1851_v17, %v4054_v54  ;;  %v4098_v23 = vsel %vm1580_vm3, %v1581_v47, %v1579_v30  ;;  %v1182_v36 = vmul.f32 %v1166_v11, %v4082_v59  ;;  %v2211_v30 = vpop.permute.xlu1 %2210 }
 0x139   : > { %v1342_v55 = vmul.f32 %v1326_v43, %v4082_v59  ;;  %v1646_v26 = vmul.f32 -0.007784894, %v4098_v23  ;;  %v1806_v27 = vmul.f32 0.007784696, %v4098_v23  ;;  %v1938_v8 = vmul.f32 %v2781_v49, %v1788_v18 }
 0x13a   : > { %v1723_v34 = vadd.f32 -2.5497324, %v1707_v6  ;;  %v1883_v32 = vadd.f32 3.7544086, %v1867_v48  ;;  %v718_v22 = vmul.f32 %v702_v4, %v3996_v2  ;;  %v1198_v56 = vadd.f32 -2.4007583, %v1182_v36 }
 0x13b   : > { %v1358_v3 = vadd.f32 2.4451342, %v1342_v55  ;;  %v1662_v13 = vadd.f32 -0.32239646, %v1646_v26  ;;  %v1822_v42 = vadd.f32 0.32246712, %v1806_v27  ;;  %v685_v16 = vmul.f32 %v669_v7, %v4059_v63 }
 0x13c   : > { %v1739_v40 = vmul.f32 %v1723_v34, %v4054_v54  ;;  %v1899_v21 = vmul.f32 %v1883_v32, %v4054_v54  ;;  %vm2012_vm5 = vcmp.gt.f32.partialorder %v3808_v45, 0.97575  ;;  %v829_v12 = vmul.f32 %v813_v39, %v4059_v63 }
 0x13d   : > { %v1374_v19 = vmul.f32 %v1358_v3, %v4082_v59  ;;  %v763_v18 = vadd.f32 2.5066283, %v4035_v24  ;;  %v910_v4 = vadd.f32 -13.280682, %v894_v52  ;;  %v1838_v20 = vmul.f32 %v1822_v42, %v4098_v23  ;;  %v2783_v57 = vpop.eup %2782 }
 0x13e   : > { %v1915_v47 = vadd.f32 1.0, %v1899_v21  ;;  %v1964_v35 = vsub.f32 0.0, %v1938_v8  ;;  %v1275_v37 = vmul.f32 %v4063_v44, %v3992_v5  ;;  %v1755_v53 = vadd.f32 4.3746643, %v1739_v40 }
 0x13f   : > { %v1678_v60 = vmul.f32 %v1662_v13, %v4098_v23  ;;  %v2785_v51 = vpop.eup %2784  ;;  %v1996_v61 = vsel %vm1980_vm4, %v4061_v0, %v4031_v62  ;;  %v734_v24 = vadd.f32 -30.664799, %v718_v22  ;;  %v1214_v1 = vmul.f32 %v1198_v56, %v4082_v59 }
 0x140   : > { %2788 = vrcp.f32 %v1915_v47  ;;  %v2787_v58 = vpop.eup %2786  ;;  %v1390_v17 = vadd.f32 3.7544086, %v1374_v19  ;;  %v701_v33 = vadd.f32 138.35776, %v685_v16  ;;  %v845_v49 = vadd.f32 -155.69897, %v829_v12 }
 0x141   : > { %v779_v11 = vmul.f32 %v3919_v38, %v763_v18  ;;  %v926_v5 = vmul.f32 %v910_v4, %v3996_v2  ;;  %v1854_v44 = vadd.f32 2.4451342, %v1838_v20  ;;  %v996_v43 = vmul.f32 0.6931472, %v2783_v57 }
 0x142   : > { %v2028_v6 = vsel %vm2012_vm5, %v1964_v35, %v1996_v61  ;;  %v1291_v62 = vadd.f32 2.938164, %v1275_v37  ;;  %v1771_v0 = vmul.f32 %v1755_v53, %v4054_v54  ;;  %v1694_v48 = vadd.f32 -2.4007583, %v1678_v60  ;;  %v2172_v54 = vld [vmem:[%s3259_s10 + $0x28] sm:$0xff]  ;;  %v2206_v60 = vpop.permute.xlu0 %2205 }
 0x143   : > { %v1230_v39 = vadd.f32 -2.5497324, %v1214_v1  ;;  %v4127_v36 = vmul.f32 -2.0, %v996_v43  ;;  %v1492_v55 = vmul.f32 0.6931472, %v2787_v58  ;;  %v314_v26 = vadd.s32 72, %v3483_v9 }
 0x144   : > { %v750_v38 = vmul.f32 %v734_v24, %v3996_v2  ;;  %v1406_v7 = vmul.f32 %v1390_v17, %v4082_v59  ;;  %v717_v34 = vmul.f32 %v701_v33, %v4059_v63  ;;  %v861_v45 = vmul.f32 %v845_v49, %v4059_v63  ;;  %v2171_v49 = vld [vmem:[%s3259_s10 + $0x20] sm:$0xff] }
 0x145   : > { %v2268_v32 = vmul.f32 %v2211_v30, %v2028_v6  ;;  %v942_v52 = vadd.f32 1.0, %v926_v5  ;;  %v1870_v27 = vmul.f32 %v1854_v44, %v4098_v23  ;;  %2790 = vrsqrt.f32 %v4127_v36 }
 0x146   : > { %v960_v8 = vmul.f32 %v4071_v28, %v779_v11  ;;  %v1440_v22 = vmul.f32 %v2785_v51, %v1291_v62  ;;  %v1787_v3 = vadd.f32 2.938164, %v1771_v0  ;;  %v1710_v13 = vmul.f32 %v1694_v48, %v4098_v23 }
 0x147   : > { %vm1979_vm6 = vcmp.lt.f32.partialorder %v3865_v10, 0.02425  ;;  %vm2011_vm7 = vcmp.gt.f32.partialorder %v3865_v10, 0.97575  ;;  %v1246_v2 = vmul.f32 %v1230_v39, %v4082_v59  ;;  %v4142_v40 = vmul.f32 -2.0, %v1492_v55 }
 0x148   : > { %v1422_v21 = vadd.f32 1.0, %v1406_v7  ;;  %v733_v56 = vadd.f32 -30.664799, %v717_v34  ;;  %v877_v42 = vadd.f32 66.801315, %v861_v45  ;;  %v333_v19 = vmul.u32 128, %v314_v26 }
 0x149   : > { %v2284_v12 = vadd.f32 %v2268_v32, %v2172_v54  ;;  %v4144_v18 = vadd.f32 2.5066283, %v750_v38  ;;  %2792 = vrcp.f32 %v942_v52  ;;  %v1886_v28 = vadd.f32 3.7544086, %v1870_v27 }
 0x14a   : > { %v2789_v16 = vpop.eup %2788  ;;  %v1995_v4 = vsel %vm1979_vm6, %v1440_v22, %v960_v8  ;;  %v1726_v20 = vadd.f32 -2.5497324, %v1710_v13  ;;  %2794 = vrsqrt.f32 %v4142_v40  ;;  %v4147_v57 = vadd.f32 4.3746643, %v1246_v2 }
 0x14b   : > { %v1936_v47 = vmul.f32 %v2789_v16, %v1787_v3  ;;  %v350_v35 = vadd.s32 %v3493_v14, %v333_v19  ;;  %v313_v37 = vadd.s32 64, %v3483_v9  ;;  %v316_v53 = vadd.s32 88, %v3483_v9 }
 0x14c   : > { %2796 = vrcp.f32 %v1422_v21  ;;  %v4153_v61 = vmul.f32 %v733_v56, %v4059_v63  ;;  %v893_v24 = vmul.f32 %v877_v42, %v4059_v63  ;;  %v1902_v1 = vmul.f32 %v1886_v28, %v4098_v23 }
 0x14d   : > { %v1963_v51 = vsub.f32 0.0, %v1936_v47  ;;  %v366_v58 = vadd.s32 %v350_v35, %v3499_v29  ;;  %v332_v17 = vmul.u32 128, %v313_v37  ;;  %v335_v33 = vmul.u32 128, %v316_v53 }
 0x14e   : > { %v1742_v5 = vmul.f32 %v1726_v20, %v4098_v23  ;;  %vm1075_vm8 = vcmp.eq.f32.partialorder %v4127_v36, inf  ;;  %v315_v44 = vadd.s32 80, %v3483_v9  ;;  %v1078_v6 = vand.u32 2147483648, %v4127_v36 }
 0x14f   : > { %v2027_v11 = vsel %vm2011_vm7, %v1963_v51, %v1995_v4  ;;  %v2791_v43 = vpop.eup %2790  ;;  %v384_v62 = vxor.u32 %v3514_v41, %v366_v58  ;;  %v349_v0 = vadd.s32 %v3493_v14, %v332_v17  ;;  %v909_v48 = vadd.f32 -13.280682, %v893_v24 }
 0x150   : > { %v2267_v30 = vmul.f32 %v2206_v60, %v2027_v11  ;;  %v1074_v39 = vmul.f32 %v2791_v43, %v4127_v36  ;;  %vm1077_vm9 = vcmp.eq.f32.partialorder %v4127_v36, 0.0  ;;  %v352_v10 = vadd.s32 %v3493_v14, %v335_v33 }
 0x151   : > { %v1918_v26 = vadd.f32 1.0, %v1902_v1  ;;  %v400_v38 = vshrl.u32 %v384_v62, 16  ;;  %v365_v7 = vadd.s32 %v349_v0, %v3499_v29  ;;  %vm1571_vm10 = vcmp.eq.f32.partialorder %v4142_v40, inf }
 0x152   : > { %v2283_v55 = vadd.f32 %v2267_v30, %v2171_v49  ;;  %v1076_v34 = vsel %vm1075_vm8, %v4127_v36, %v1074_v39  ;;  %v368_v45 = vadd.s32 %v352_v10, %v3499_v29  ;;  %v334_v32 = vmul.u32 128, %v315_v44 }
 0x153   : > { %v4174_v52 = vpop.eup %2792  ;;  %v4176_v27 = vsel %vm1077_vm9, %v1078_v6, %v1076_v34  ;;  %v416_v54 = vxor.u32 %v400_v38, %v384_v62  ;;  %v383_v8 = vxor.u32 %v3514_v41, %v365_v7  ;;  %v1574_v36 = vand.u32 2147483648, %v4142_v40 }
 0x154   : > { %v2300_v22 = vpack.c.bf16 %v2284_v12, %v2283_v55  ;;  %v2795_v3 = vpop.eup %2794  ;;  %v1149_v13 = vmul.f32 -0.007784894, %v4176_v27  ;;  %v1309_v2 = vmul.f32 0.007784696, %v4176_v27  ;;  %v386_v21 = vxor.u32 %v3514_v41, %v368_v45 }
 0x155   : > { %v1570_v56 = vmul.f32 %v2795_v3, %v4142_v40  ;;  %vm1573_vm11 = vcmp.eq.f32.partialorder %v4142_v40, 0.0  ;;  %v432_v42 = vmul.u32 2146121005, %v416_v54  ;;  %v399_v19 = vshrl.u32 %v383_v8, 16 }
 0x156   : > { %2536 = vmatpush3.bf16.msra.mxu0 %v2300_v22  ;;  %v4185_v16 = vpop.eup %2796  ;;  %v1758_v28 = vadd.f32 4.3746643, %v1742_v5  ;;  %v1165_v12 = vadd.f32 -0.32239646, %v1149_v13  ;;  %v1325_v47 = vadd.f32 0.32246712, %v1309_v2  ;;  %v351_v4 = vadd.s32 %v3493_v14, %v334_v32 }
 0x157   : > { %2537 = vmatprep.subr.bf16.mxu0 %v3077_v25  ;;  %v1572_v20 = vsel %vm1571_vm10, %v4142_v40, %v1570_v56  ;;  %v448_v35 = vshrl.u32 %v432_v42, 15  ;;  %v415_v37 = vxor.u32 %v399_v19, %v383_v8  ;;  %v402_v53 = vshrl.u32 %v386_v21, 16 }
 0x158   : > { %v925_v60 = vmul.f32 %v909_v48, %v4059_v63  ;;  %v1181_v51 = vmul.f32 %v1165_v12, %v4176_v27  ;;  %v1341_v24 = vmul.f32 %v1325_v47, %v4176_v27  ;;  %v4197_v1 = vsel %vm1573_vm11, %v1574_v36, %v1572_v20 }
 0x159   : > { %2798 = vrcp.f32 %v1918_v26  ;;  %v1645_v58 = vmul.f32 -0.007784894, %v4197_v1  ;;  %v1805_v17 = vmul.f32 0.007784696, %v4197_v1  ;;  %v464_v33 = vxor.u32 %v448_v35, %v432_v42 }
 0x15a   : > { %v1197_v49 = vadd.f32 -2.4007583, %v1181_v51  ;;  %v1357_v11 = vadd.f32 2.4451342, %v1341_v24  ;;  %v431_v5 = vmul.u32 2146121005, %v415_v37  ;;  %v418_v44 = vxor.u32 %v402_v53, %v386_v21 }
 0x15b   : > { %v1661_v43 = vadd.f32 -0.32239646, %v1645_v58  ;;  %v1821_v63 = vadd.f32 0.32246712, %v1805_v17  ;;  %v480_v30 = vmul.u32 2221713035, %v464_v33  ;;  %v367_v6 = vadd.s32 %v351_v4, %v3499_v29 }
 0x15c   : > { %v1213_v62 = vmul.f32 %v1197_v49, %v4176_v27  ;;  %v1373_v40 = vmul.f32 %v1357_v11, %v4176_v27  ;;  %v447_v0 = vshrl.u32 %v431_v5, 15  ;;  %v434_v48 = vmul.u32 2146121005, %v418_v44 }
 0x15d   : > { %v1774_v39 = vmul.f32 %v1758_v28, %v4098_v23  ;;  %v1677_v10 = vmul.f32 %v1661_v43, %v4197_v1  ;;  %v1837_v55 = vmul.f32 %v1821_v63, %v4197_v1  ;;  %v496_v26 = vshrl.u32 %v480_v30, 16 }
 0x15e   : > { %v1229_v38 = vadd.f32 -2.5497324, %v1213_v62  ;;  %v1389_v7 = vadd.f32 3.7544086, %v1373_v40  ;;  %v463_v34 = vxor.u32 %v447_v0, %v431_v5  ;;  %v450_v45 = vshrl.u32 %v434_v48, 15 }
 0x15f   : > { %v941_v32 = vadd.f32 1.0, %v925_v60  ;;  %v1693_v54 = vadd.f32 -2.4007583, %v1677_v10  ;;  %v1853_v8 = vadd.f32 2.4451342, %v1837_v55  ;;  %v512_v22 = vxor.u32 %v496_v26, %v480_v30 }
 0x160   : > { %v1245_v3 = vmul.f32 %v1229_v38, %v4176_v27  ;;  %v1405_v13 = vmul.f32 %v1389_v7, %v4176_v27  ;;  %v479_v2 = vmul.u32 2221713035, %v463_v34  ;;  %v385_v23 = vxor.u32 %v3514_v41, %v367_v6 }
 0x161   : > { %v1709_v36 = vmul.f32 %v1693_v54, %v4197_v1  ;;  %v1869_v21 = vmul.f32 %v1853_v8, %v4197_v1  ;;  %v528_v56 = vshrl.u32 %v512_v22, 9  ;;  %v466_v42 = vxor.u32 %v450_v45, %v434_v48 }
 0x162   : > { %v1278_v19 = vmul.f32 %v4147_v57, %v4082_v59  ;;  %v1790_v28 = vadd.f32 2.938164, %v1774_v39  ;;  %v1421_v12 = vadd.f32 1.0, %v1405_v13  ;;  %v495_v47 = vshrl.u32 %v479_v2, 16 }
 0x163   : > { %v2799_v4 = vpop.eup %2798  ;;  %vm1982_vm12 = vcmp.lt.f32.partialorder %v3959_v46, 0.02425  ;;  %2800 = vrcp.f32 %v941_v32  ;;  %v1725_v20 = vadd.f32 -2.5497324, %v1709_v36  ;;  %v1885_v35 = vadd.f32 3.7544086, %v1869_v21  ;;  %v2221_v36 = vpop.permute.xlu1 %2220 }
 0x164   : > { %v544_v37 = vcvt.s32.f32 %v528_v56  ;;  %v1261_v53 = vadd.f32 4.3746643, %v1245_v3  ;;  %2802 = vrcp.f32 %v1421_v12  ;;  %v511_v60 = vxor.u32 %v495_v47, %v479_v2 }
 0x165   : > { %v401_v51 = vshrl.u32 %v385_v23, 16  ;;  %v1741_v24 = vmul.f32 %v1725_v20, %v4197_v1  ;;  %v1901_v58 = vmul.f32 %v1885_v35, %v4197_v1  ;;  %v482_v59 = vmul.u32 2221713035, %v466_v42 }
 0x166   : > { %v560_v17 = vadd.f32 0.5, %v544_v37  ;;  %v782_v57 = vmul.f32 %v3981_v50, %v4144_v18  ;;  %v1294_v33 = vadd.f32 2.938164, %v1278_v19  ;;  %v765_v49 = vadd.f32 2.5066283, %v4153_v61 }
 0x167   : > { %v527_v11 = vshrl.u32 %v511_v60, 9  ;;  %v1942_v5 = vmul.f32 %v2799_v4, %v1790_v28  ;;  %v1917_v44 = vadd.f32 1.0, %v1901_v58  ;;  %v318_v63 = vadd.s32 104, %v3483_v9  ;;  %v2174_v60 = vld [vmem:[%s3259_s10 + $0x38] sm:$0xff] }
 0x168   : > { %v4220_v43 = vmul.f32 1.1920929e-07, %v560_v17  ;;  %v1277_v30 = vmul.f32 %v1261_v53, %v4176_v27  ;;  %v1757_v6 = vadd.f32 4.3746643, %v1741_v24  ;;  %v417_v40 = vxor.u32 %v401_v51, %v385_v23 }
 0x169   : > { %v543_v62 = vcvt.s32.f32 %v527_v11  ;;  %2804 = vrcp.f32 %v1917_v44  ;;  %v498_v18 = vshrl.u32 %v482_v59, 16  ;;  %v966_v61 = vmul.f32 %v4174_v52, %v782_v57 }
 0x16a   : > { %v4225_v0 = vadd.f32 -0.5, %v4220_v43  ;;  %v1472_v50 = vsub.f32 1.0, %v4220_v43  ;;  %v1446_v48 = vmul.f32 %v4185_v16, %v1294_v33  ;;  %2806 = vlog2.f32 %v4220_v43 }
 0x16b   : > { %v559_v39 = vadd.f32 0.5, %v543_v62  ;;  %vm2014_vm13 = vcmp.gt.f32.partialorder %v3959_v46, 0.97575  ;;  %v337_v10 = vmul.u32 128, %v318_v63  ;;  %v781_v55 = vmul.f32 %v4049_v15, %v765_v49  ;;  %v2173_v63 = vld [vmem:[%s3259_s10 + $0x30] sm:$0xff] }
 0x16c   : > { %v4234_v27 = vmul.f32 %v4225_v0, %v4225_v0  ;;  %2808 = vlog2.f32 %v1472_v50  ;;  %v1773_v26 = vmul.f32 %v1757_v6, %v4197_v1  ;;  %v433_v52 = vmul.u32 2146121005, %v417_v40 }
 0x16d   : > { %v4238_v38 = vmul.f32 1.1920929e-07, %v559_v39  ;;  %v2801_v7 = vpop.eup %2800  ;;  %v1966_v16 = vsub.f32 0.0, %v1942_v5  ;;  %v1293_v34 = vadd.f32 2.938164, %v1277_v30  ;;  %v514_v32 = vxor.u32 %v498_v18, %v482_v59  ;;  %v2216_v59 = vpop.permute.xlu0 %2215 }
 0x16e   : > { %v624_v45 = vmul.f32 -39.69683, %v4234_v27  ;;  %v2803_v54 = vpop.eup %2802  ;;  %v1998_v8 = vsel %vm1982_vm12, %v1446_v48, %v966_v61  ;;  %v800_v22 = vmul.f32 -54.476097, %v4234_v27  ;;  %v354_v1 = vadd.s32 %v3493_v14, %v337_v10 }
 0x16f   : > { %v4245_v3 = vadd.f32 -0.5, %v4238_v38  ;;  %v1471_v15 = vsub.f32 1.0, %v4238_v38  ;;  %2810 = vlog2.f32 %v4238_v38  ;;  %v964_v13 = vmul.f32 %v2801_v7, %v781_v55 }
 0x170   : > { %v1789_v2 = vadd.f32 2.938164, %v1773_v26  ;;  %v449_v23 = vshrl.u32 %v433_v52, 15  ;;  %v2030_v21 = vsel %vm2014_vm13, %v1966_v16, %v1998_v8  ;;  %v1444_v56 = vmul.f32 %v2803_v54, %v1293_v34 }
 0x171   : > { %2812 = vlog2.f32 %v1471_v15  ;;  %v640_v42 = vadd.f32 220.9461, %v624_v45  ;;  %v530_v19 = vshrl.u32 %v514_v32, 9  ;;  %vm1981_vm14 = vcmp.lt.f32.partialorder %v4041_v31, 0.02425 }
 0x172   : > { %v816_v28 = vadd.f32 161.58583, %v800_v22  ;;  %v4255_v12 = vmul.f32 %v4245_v3, %v4245_v3  ;;  %vm2013_vm15 = vcmp.gt.f32.partialorder %v4041_v31, 0.97575  ;;  %v2270_v20 = vmul.f32 %v2221_v36, %v2030_v21 }
 0x173   : > { %v2805_v47 = vpop.eup %2804  ;;  %v465_v46 = vxor.u32 %v449_v23, %v433_v52  ;;  %v370_v37 = vadd.s32 %v354_v1, %v3499_v29  ;;  %v1997_v51 = vsel %vm1981_vm14, %v1444_v56, %v964_v13  ;;  %v656_v24 = vmul.f32 %v640_v42, %v4234_v27 }
 0x174   : > { %v2807_v4 = vpop.eup %2806  ;;  %v1940_v35 = vmul.f32 %v2805_v47, %v1789_v2  ;;  %v546_v17 = vcvt.s32.f32 %v530_v19  ;;  %v832_v33 = vmul.f32 %v816_v28, %v4234_v27  ;;  %v799_v11 = vmul.f32 -54.476097, %v4255_v12 }
 0x175   : > { %v1002_v58 = vmul.f32 0.6931472, %v2807_v4  ;;  %v2286_v44 = vadd.f32 %v2270_v20, %v2174_v60  ;;  %v388_v62 = vxor.u32 %v3514_v41, %v370_v37  ;;  %v672_v18 = vadd.f32 -275.9285, %v656_v24 }
 0x176   : > { %v2809_v53 = vpop.eup %2808  ;;  %v1965_v57 = vsub.f32 0.0, %v1940_v35  ;;  %v562_v61 = vadd.f32 0.5, %v546_v17  ;;  %v848_v39 = vadd.f32 -155.69897, %v832_v33  ;;  %v815_v10 = vadd.f32 161.58583, %v799_v11 }
 0x177   : > { %v1498_v49 = vmul.f32 0.6931472, %v2809_v53  ;;  %v1024_v5 = vmul.f32 -2.0, %v1002_v58  ;;  %v481_v55 = vmul.u32 2221713035, %v465_v46  ;;  %v404_v31 = vshrl.u32 %v388_v62, 16 }
 0x178   : > { %v2029_v30 = vsel %vm2013_vm15, %v1965_v57, %v1997_v51  ;;  %v623_v52 = vmul.f32 -39.69683, %v4255_v12  ;;  %v4272_v7 = vadd.s32 96, %v3483_v9  ;;  %v688_v16 = vmul.f32 %v672_v18, %v4234_v27 }
 0x179   : > { %v4266_v6 = vmul.f32 -2.0, %v1498_v49  ;;  %v2811_v40 = vpop.eup %2810  ;;  %v2269_v50 = vmul.f32 %v2216_v59, %v2029_v30  ;;  %2814 = vrsqrt.f32 %v1024_v5  ;;  %v4275_v32 = vmul.f32 1.1920929e-07, %v562_v61 }
 0x17a   : > { %v1000_v34 = vmul.f32 0.6931472, %v2811_v40  ;;  %v864_v54 = vmul.f32 %v848_v39, %v4234_v27  ;;  %v831_v8 = vmul.f32 %v815_v10, %v4255_v12  ;;  %v497_v22 = vshrl.u32 %v481_v55, 16 }
 0x17b   : > { %v2813_v48 = vpop.eup %2812  ;;  %2816 = vrsqrt.f32 %v4266_v6  ;;  %v2285_v26 = vadd.f32 %v2269_v50, %v2173_v63  ;;  %v639_v1 = vadd.f32 220.9461, %v623_v52  ;;  %v704_v23 = vadd.f32 138.35776, %v688_v16 }
 0x17c   : > { %v1496_v45 = vmul.f32 0.6931472, %v2813_v48  ;;  %v4279_v13 = vmul.f32 -2.0, %v1000_v34  ;;  %2818 = vlog2.f32 %v4275_v32  ;;  %v4284_v36 = vxor.u32 %v404_v31, %v388_v62 }
 0x17d   : > { %v2301_v15 = vpack.c.bf16 %v2286_v44, %v2285_v26  ;;  %v336_v21 = vmul.u32 128, %v4272_v7  ;;  %v880_v56 = vadd.f32 66.801315, %v864_v54  ;;  %v847_v42 = vadd.f32 -155.69897, %v831_v8 }
 0x17e   : > { %v4281_v2 = vmul.f32 -2.0, %v1496_v45  ;;  %2820 = vrsqrt.f32 %v4279_v13  ;;  %v4289_v19 = vxor.u32 %v497_v22, %v481_v55  ;;  %vm1096_vm0 = vcmp.eq.f32.partialorder %v1024_v5, inf }
 0x17f   : > { %2538 = vmatpush3.bf16.msra.mxu0 %v2301_v15  ;;  %v1099_v47 = vand.u32 2147483648, %v1024_v5  ;;  %v655_v4 = vmul.f32 %v639_v1, %v4255_v12  ;;  %vm1098_vm1 = vcmp.eq.f32.partialorder %v1024_v5, 0.0  ;;  %vm1592_vm2 = vcmp.eq.f32.partialorder %v4266_v6, inf }
 0x180   : > { %2539 = vmatprep.subr.bf16.mxu0 %v3077_v25  ;;  %2822 = vrsqrt.f32 %v4281_v2  ;;  %v1595_v46 = vand.u32 2147483648, %v4266_v6  ;;  %v720_v37 = vmul.f32 %v704_v23, %v4234_v27  ;;  %vm1594_vm3 = vcmp.eq.f32.partialorder %v4266_v6, 0.0 }
 0x181   : > { %v436_v60 = vmul.u32 2146121005, %v4284_v36  ;;  %v896_v51 = vmul.f32 %v880_v56, %v4234_v27  ;;  %v863_v58 = vmul.f32 %v847_v42, %v4255_v12  ;;  %v4302_v17 = vadd.f32 -0.5, %v4275_v32 }
 0x182   : > { %v1474_v33 = vsub.f32 1.0, %v4275_v32  ;;  %v529_v49 = vshrl.u32 %v4289_v19, 9  ;;  %v736_v62 = vadd.f32 -30.664799, %v720_v37  ;;  %vm1089_vm4 = vcmp.eq.f32.partialorder %v4279_v13, inf }
 0x183   : > { %v2815_v28 = vpop.eup %2814  ;;  %v912_v18 = vadd.f32 -13.280682, %v896_v51  ;;  %v1092_v52 = vand.u32 2147483648, %v4279_v13  ;;  %vm1091_vm5 = vcmp.eq.f32.partialorder %v4279_v13, 0.0  ;;  %vm1585_vm6 = vcmp.eq.f32.partialorder %v4281_v2, inf }
 0x184   : > { %v1095_v35 = vmul.f32 %v2815_v28, %v1024_v5  ;;  %2824 = vlog2.f32 %v1474_v33  ;;  %vm1587_vm7 = vcmp.eq.f32.partialorder %v4281_v2, 0.0  ;;  %v1588_v56 = vand.u32 2147483648, %v4281_v2 }
 0x185   : > { %v2817_v20 = vpop.eup %2816  ;;  %vm1984_vm10 = vcmp.lt.f32.partialorder %v4220_v43, 0.02425  ;;  %vm1983_vm11 = vcmp.lt.f32.partialorder %v4238_v38, 0.02425  ;;  %vm2016_vm13 = vcmp.gt.f32.partialorder %v4220_v43, 0.97575 }
 0x186   : > { %v1591_v53 = vmul.f32 %v2817_v20, %v4266_v6  ;;  %v1097_v24 = vsel %vm1096_vm0, %v1024_v5, %v1095_v35  ;;  %v671_v5 = vadd.f32 -275.9285, %v655_v4  ;;  %v2819_v30 = vpop.eup %2818  ;;  %v752_v20 = vmul.f32 %v736_v62, %v4234_v27 }
 0x187   : > { %v4304_v59 = vsel %vm1098_vm1, %v1099_v47, %v1097_v24  ;;  %v1006_v31 = vmul.f32 0.6931472, %v2819_v30  ;;  %v4344_v24 = vmul.f32 %v4302_v17, %v4302_v17  ;;  %vm2015_vm14 = vcmp.gt.f32.partialorder %v4238_v38, 0.97575 }
 0x188   : > { %v1593_v57 = vsel %vm1592_vm2, %v4266_v6, %v1591_v53  ;;  %v1152_v11 = vmul.f32 -0.007784894, %v4304_v59  ;;  %v1312_v44 = vmul.f32 0.007784696, %v4304_v59  ;;  %v879_v6 = vadd.f32 66.801315, %v863_v58  ;;  %v2821_v10 = vpop.eup %2820 }
 0x189   : > { %v4311_v63 = vsel %vm1594_vm3, %v1595_v46, %v1593_v57  ;;  %v1088_v45 = vmul.f32 %v2821_v10, %v4279_v13  ;;  %v687_v8 = vmul.f32 %v671_v5, %v4255_v12  ;;  %v4334_v4 = vmul.f32 -2.0, %v1006_v31 }
 0x18a   : > { %v1648_v40 = vmul.f32 -0.007784894, %v4311_v63  ;;  %v1808_v50 = vmul.f32 0.007784696, %v4311_v63  ;;  %v1328_v61 = vadd.f32 0.32246712, %v1312_v44  ;;  %v2823_v16 = vpop.eup %2822  ;;  %v895_v35 = vmul.f32 %v879_v6, %v4255_v12 }
 0x18b   : > { %v1168_v48 = vadd.f32 -0.32239646, %v1152_v11  ;;  %v1584_v22 = vmul.f32 %v2823_v16, %v4281_v2  ;;  %v1090_v23 = vsel %vm1089_vm4, %v4279_v13, %v1088_v45  ;;  %v928_v13 = vmul.f32 %v912_v18, %v4234_v27 }
 0x18c   : > { %v1824_v39 = vadd.f32 0.32246712, %v1808_v50  ;;  %v1344_v55 = vmul.f32 %v1328_v61, %v4304_v59  ;;  %v1664_v26 = vadd.f32 -0.32239646, %v1648_v40  ;;  %v4331_v28 = vsel %vm1091_vm5, %v1092_v52, %v1090_v23 }
 0x18d   : > { %v1184_v15 = vmul.f32 %v1168_v48, %v4304_v59  ;;  %v1586_v47 = vsel %vm1585_vm6, %v4281_v2, %v1584_v22  ;;  %v1151_v46 = vmul.f32 -0.007784894, %v4331_v28  ;;  %v1311_v37 = vmul.f32 0.007784696, %v4331_v28 }
 0x18e   : > { %v1840_v34 = vmul.f32 %v1824_v39, %v4311_v63  ;;  %v1360_v54 = vadd.f32 2.4451342, %v1344_v55  ;;  %v1680_v42 = vmul.f32 %v1664_v26, %v4311_v63  ;;  %v703_v51 = vadd.f32 138.35776, %v687_v8  ;;  %v2825_v27 = vpop.eup %2824 }
 0x18f   : > { %v1200_v58 = vadd.f32 -2.4007583, %v1184_v15  ;;  %v1167_v33 = vadd.f32 -0.32239646, %v1151_v46  ;;  %v4349_v11 = vsel %vm1587_vm7, %v1588_v56, %v1586_v47  ;;  %v1327_v5 = vadd.f32 0.32246712, %v1311_v37 }
 0x190   : > { %v1856_v1 = vadd.f32 2.4451342, %v1840_v34  ;;  %v1376_v53 = vmul.f32 %v1360_v54, %v4304_v59  ;;  %v1696_v44 = vadd.f32 -2.4007583, %v1680_v42  ;;  %v626_v30 = vmul.f32 -39.69683, %v4344_v24 }
 0x191   : > { %2826 = vrsqrt.f32 %v4334_v4  ;;  %v4353_v62 = vadd.f32 2.5066283, %v752_v20  ;;  %v911_v40 = vadd.f32 -13.280682, %v895_v35  ;;  %v1183_v50 = vmul.f32 %v1167_v33, %v4331_v28 }
 0x192   : > { %v1872_v57 = vmul.f32 %v1856_v1, %v4311_v63  ;;  %v1647_v18 = vmul.f32 -0.007784894, %v4349_v11  ;;  %v1392_v61 = vadd.f32 3.7544086, %v1376_v53  ;;  %v719_v6 = vmul.f32 %v703_v51, %v4255_v12 }
 0x193   : > { %v1343_v2 = vmul.f32 %v1327_v5, %v4331_v28  ;;  %v1807_v48 = vmul.f32 0.007784696, %v4349_v11  ;;  %v944_v39 = vadd.f32 1.0, %v928_v13  ;;  %v1216_v10 = vmul.f32 %v1200_v58, %v4304_v59 }
 0x194   : > { %v1888_v55 = vadd.f32 3.7544086, %v1872_v57  ;;  %v1199_v26 = vadd.f32 -2.4007583, %v1183_v50  ;;  %v1712_v52 = vmul.f32 %v1696_v44, %v4311_v63  ;;  %v1663_v16 = vadd.f32 -0.32239646, %v1647_v18 }
 0x195   : > { %v1359_v31 = vadd.f32 2.4451342, %v1343_v2  ;;  %v642_v34 = vadd.f32 220.9461, %v626_v30  ;;  %v927_v45 = vmul.f32 %v911_v40, %v4255_v12  ;;  %v1823_v8 = vadd.f32 0.32246712, %v1807_v48 }
 0x196   : > { %v1215_v54 = vmul.f32 %v1199_v26, %v4331_v28  ;;  %v802_v22 = vmul.f32 -54.476097, %v4344_v24  ;;  %v1408_v15 = vmul.f32 %v1392_v61, %v4304_v59  ;;  %v735_v1 = vadd.f32 -30.664799, %v719_v6 }
 0x197   : > { %v1375_v23 = vmul.f32 %v1359_v31, %v4331_v28  ;;  %v1679_v56 = vmul.f32 %v1663_v16, %v4349_v11  ;;  %v1232_v42 = vadd.f32 -2.5497324, %v1216_v10  ;;  %v1904_v47 = vmul.f32 %v1888_v55, %v4311_v63 }
 0x198   : > { %v1839_v20 = vmul.f32 %v1823_v8, %v4349_v11  ;;  %v1502_v35 = vmul.f32 0.6931472, %v2825_v27  ;;  %v1728_v46 = vadd.f32 -2.5497324, %v1712_v52  ;;  %v353_v53 = vadd.s32 %v3493_v14, %v336_v21 }
 0x199   : > { %v1391_v37 = vadd.f32 3.7544086, %v1375_v23  ;;  %v1695_v13 = vadd.f32 -2.4007583, %v1679_v56  ;;  %v943_v51 = vadd.f32 1.0, %v927_v45  ;;  %v545_v33 = vcvt.s32.f32 %v529_v49 }
 0x19a   : > { %v1231_v58 = vadd.f32 -2.5497324, %v1215_v54  ;;  %v1855_v57 = vadd.f32 2.4451342, %v1839_v20  ;;  %2828 = vrcp.f32 %v944_v39  ;;  %v1424_v5 = vadd.f32 1.0, %v1408_v15 }
 0x19b   : > { %v2827_v44 = vpop.eup %2826  ;;  %v1407_v30 = vmul.f32 %v1391_v37, %v4331_v28  ;;  %v1711_v27 = vmul.f32 %v1695_v13, %v4349_v11  ;;  %v1920_v40 = vadd.f32 1.0, %v1904_v47  ;;  %v751_v50 = vmul.f32 %v735_v1, %v4255_v12 }
 0x19c   : > { %v1871_v7 = vmul.f32 %v1855_v57, %v4349_v11  ;;  %v818_v18 = vadd.f32 161.58583, %v802_v22  ;;  %v1248_v21 = vmul.f32 %v1232_v42, %v4304_v59  ;;  %v1744_v61 = vmul.f32 %v1728_v46, %v4311_v63 }
 0x19d   : > { %v1727_v6 = vadd.f32 -2.5497324, %v1711_v27  ;;  %v4381_v19 = vmul.f32 -2.0, %v1502_v35  ;;  %2830 = vrcp.f32 %v943_v51  ;;  %v1247_v49 = vmul.f32 %v1231_v58, %v4331_v28 }
 0x19e   : > { %v1887_v2 = vadd.f32 3.7544086, %v1871_v7  ;;  %v1109_v48 = vmul.f32 %v2827_v44, %v4334_v4  ;;  %2832 = vrcp.f32 %v1424_v5  ;;  %v1423_v39 = vadd.f32 1.0, %v1407_v30 }
 0x19f   : > { %v1743_v12 = vmul.f32 %v1727_v6, %v4349_v11  ;;  %vm1110_vm8 = vcmp.eq.f32.partialorder %v4334_v4, inf  ;;  %2834 = vrcp.f32 %v1920_v40  ;;  %v658_v55 = vmul.f32 %v642_v34, %v4344_v24 }
 0x1a0   : > { %v1903_v10 = vmul.f32 %v1887_v2, %v4349_v11  ;;  %v834_v26 = vmul.f32 %v818_v18, %v4344_v24  ;;  %v1264_v52 = vadd.f32 4.3746643, %v1248_v21  ;;  %v1760_v31 = vadd.f32 4.3746643, %v1744_v61 }
 0x1a1   : > { %v1113_v16 = vand.u32 2147483648, %v4334_v4  ;;  %2836 = vrsqrt.f32 %v4381_v19  ;;  %v1263_v45 = vadd.f32 4.3746643, %v1247_v49  ;;  %v1111_v8 = vsel %vm1110_vm8, %v4334_v4, %v1109_v48 }
 0x1a2   : > { %v1919_v54 = vadd.f32 1.0, %v1903_v10  ;;  %vm1112_vm9 = vcmp.eq.f32.partialorder %v4334_v4, 0.0  ;;  %v767_v22 = vadd.f32 2.5066283, %v751_v50  ;;  %2838 = vrcp.f32 %v1423_v39 }
 0x1a3   : > { %v1759_v15 = vadd.f32 4.3746643, %v1743_v12  ;;  %v369_v1 = vadd.s32 %v353_v53, %v3499_v29  ;;  %v674_v34 = vadd.f32 -275.9285, %v658_v55  ;;  %v850_v23 = vadd.f32 -155.69897, %v834_v26 }
 0x1a4   : > { %2840 = vrcp.f32 %v1919_v54  ;;  %v561_v56 = vadd.f32 0.5, %v545_v33  ;;  %v2829_v42 = vpop.eup %2828  ;;  %v1280_v47 = vmul.f32 %v1264_v52, %v4304_v59  ;;  %v1776_v20 = vmul.f32 %v1760_v31, %v4311_v63 }
 0x1a5   : > { %v4397_v35 = vsel %vm1112_vm9, %v1113_v16, %v1111_v8  ;;  %v452_v46 = vshrl.u32 %v436_v60, 15  ;;  %v784_v4 = vmul.f32 %v4225_v0, %v4353_v62  ;;  %v1279_v37 = vmul.f32 %v1263_v45, %v4331_v28 }
 0x1a6   : > { %v4404_v13 = vmul.f32 1.1920929e-07, %v561_v56  ;;  %v783_v53 = vmul.f32 %v4245_v3, %v767_v22  ;;  %v1775_v59 = vmul.f32 %v1759_v15, %v4349_v11  ;;  %v387_v51 = vxor.u32 %v3514_v41, %v369_v1 }
 0x1a7   : > { %v468_v63 = vxor.u32 %v452_v46, %v436_v60  ;;  %v2831_v58 = vpop.eup %2830  ;;  %v690_v57 = vmul.f32 %v674_v34, %v4344_v24  ;;  %v1314_v0 = vmul.f32 0.007784696, %v4397_v35  ;;  %v1296_v33 = vadd.f32 2.938164, %v1280_v47 }
 0x1a8   : > { %v4415_v28 = vadd.f32 -0.5, %v4404_v13  ;;  %2842 = vlog2.f32 %v4404_v13  ;;  %v2833_v62 = vpop.eup %2832  ;;  %v1792_v3 = vadd.f32 2.938164, %v1776_v20  ;;  %v866_v36 = vmul.f32 %v850_v23, %v4344_v24 }
 0x1a9   : > { %v1473_v60 = vsub.f32 1.0, %v4404_v13  ;;  %v2835_v11 = vpop.eup %2834  ;;  %v1295_v44 = vadd.f32 2.938164, %v1279_v37  ;;  %v1154_v5 = vmul.f32 -0.007784894, %v4397_v35  ;;  %vm1606_vm12 = vcmp.eq.f32.partialorder %v4381_v19, inf }
 0x1aa   : > { %v4425_v30 = vmul.f32 %v4415_v28, %v4415_v28  ;;  %v1791_v40 = vadd.f32 2.938164, %v1775_v59  ;;  %v1609_v50 = vand.u32 2147483648, %v4381_v19  ;;  %v484_v7 = vmul.u32 2221713035, %v468_v63 }
 0x1ab   : > { %v2837_v27 = vpop.eup %2836  ;;  %v403_v18 = vshrl.u32 %v387_v51, 16  ;;  %v1330_v21 = vadd.f32 0.32246712, %v1314_v0  ;;  %vm1608_vm15 = vcmp.eq.f32.partialorder %v4381_v19, 0.0  ;;  %2844 = vlog2.f32 %v1473_v60 }
 0x1ac   : > { %v1605_v61 = vmul.f32 %v2837_v27, %v4381_v19  ;;  %v2839_v6 = vpop.eup %2838  ;;  %v970_v49 = vmul.f32 %v2829_v42, %v784_v4  ;;  %v801_v2 = vmul.f32 -54.476097, %v4425_v30  ;;  %v500_v48 = vshrl.u32 %v484_v7, 16  ;;  %v2231_v27 = vpop.permute.xlu1 %2230 }
 0x1ad   : > { %v419_v39 = vxor.u32 %v403_v18, %v387_v51  ;;  %v1450_v10 = vmul.f32 %v2833_v62, %v1296_v33  ;;  %v1946_v55 = vmul.f32 %v2835_v11, %v1792_v3  ;;  %v882_v26 = vadd.f32 66.801315, %v866_v36 }
 0x1ae   : > { %v2841_v12 = vpop.eup %2840  ;;  %v1607_v52 = vsel %vm1606_vm12, %v4381_v19, %v1605_v61  ;;  %v968_v31 = vmul.f32 %v2831_v58, %v783_v53  ;;  %v817_v54 = vadd.f32 161.58583, %v801_v2  ;;  %v1448_v8 = vmul.f32 %v2839_v6, %v1295_v44 }
 0x1af   : > { %v1944_v16 = vmul.f32 %v2841_v12, %v1791_v40  ;;  %v4436_v45 = vsel %vm1608_vm15, %v1609_v50, %v1607_v52  ;;  %v1170_v22 = vadd.f32 -0.32239646, %v1154_v5  ;;  %v1346_v15 = vmul.f32 %v1330_v21, %v4397_v35  ;;  %v2226_v50 = vpop.permute.xlu0 %2225 }
 0x1b0   : > { %v625_v1 = vmul.f32 -39.69683, %v4425_v30  ;;  %v706_v34 = vadd.f32 138.35776, %v690_v57  ;;  %v1810_v23 = vmul.f32 0.007784696, %v4436_v45  ;;  %v516_v56 = vxor.u32 %v500_v48, %v484_v7 }
 0x1b1   : > { %v435_v42 = vmul.u32 2146121005, %v419_v39  ;;  %v1968_v20 = vsub.f32 0.0, %v1946_v55  ;;  %v2000_v19 = vsel %vm1984_vm10, %v1450_v10, %v970_v49  ;;  %v898_v46 = vmul.f32 %v882_v26, %v4344_v24  ;;  %v2176_v55 = vld [vmem:[%s3259_s10 + $0x48] sm:$0xff]  ;;  %v2175_v26 = vld [vmem:[%s3259_s10 + $0x40] sm:$0xff] }
 0x1b2   : > { %v2843_v47 = vpop.eup %2842  ;;  %v1650_v4 = vmul.f32 -0.007784894, %v4436_v45  ;;  %v1967_v37 = vsub.f32 0.0, %v1944_v16  ;;  %v833_v53 = vmul.f32 %v817_v54, %v4425_v30  ;;  %v532_v63 = vshrl.u32 %v516_v56, 9 }
 0x1b3   : > { %v1004_v59 = vmul.f32 0.6931472, %v2843_v47  ;;  %v1999_v51 = vsel %vm1983_vm11, %v1448_v8, %v968_v31  ;;  %v1186_v58 = vmul.f32 %v1170_v22, %v4397_v35  ;;  %v1362_v57 = vadd.f32 2.4451342, %v1346_v15 }
 0x1b4   : > { %v641_v0 = vadd.f32 220.9461, %v625_v1  ;;  %v1826_v62 = vadd.f32 0.32246712, %v1810_v23  ;;  %v548_v3 = vcvt.s32.f32 %v532_v63  ;;  %v451_v36 = vshrl.u32 %v435_v42, 15 }
 0x1b5   : > { %v4449_v33 = vmul.f32 -2.0, %v1004_v59  ;;  %v2845_v60 = vpop.eup %2844  ;;  %v722_v11 = vmul.f32 %v706_v34, %v4344_v24  ;;  %v914_v44 = vadd.f32 -13.280682, %v898_v46  ;;  %v1666_v5 = vadd.f32 -0.32239646, %v1650_v4 }
 0x1b6   : > { %v2032_v40 = vsel %vm2016_vm13, %v1968_v20, %v2000_v19  ;;  %v2031_v7 = vsel %vm2015_vm14, %v1967_v37, %v1999_v51  ;;  %v849_v18 = vadd.f32 -155.69897, %v833_v53  ;;  %v1202_v21 = vadd.f32 -2.4007583, %v1186_v58 }
 0x1b7   : > { %2846 = vrsqrt.f32 %v4449_v33  ;;  %v1378_v61 = vmul.f32 %v1362_v57, %v4397_v35  ;;  %v657_v6 = vmul.f32 %v641_v0, %v4425_v30  ;;  %v320_v49 = vadd.s32 120, %v3483_v9 }
 0x1b8   : > { %v1842_v2 = vmul.f32 %v1826_v62, %v4436_v45  ;;  %v1500_v43 = vmul.f32 0.6931472, %v2845_v60  ;;  %v564_v48 = vadd.f32 0.5, %v548_v3  ;;  %v467_v39 = vxor.u32 %v451_v36, %v435_v42 }
 0x1b9   : > { %v2272_v12 = vmul.f32 %v2231_v27, %v2032_v40  ;;  %v2271_v10 = vmul.f32 %v2226_v50, %v2031_v7  ;;  %v1682_v38 = vmul.f32 %v1666_v5, %v4436_v45  ;;  %v738_v52 = vadd.f32 -30.664799, %v722_v11 }
 0x1ba   : > { %v930_v31 = vmul.f32 %v914_v44, %v4344_v24  ;;  %v865_v16 = vmul.f32 %v849_v18, %v4425_v30  ;;  %v4466_v54 = vmul.f32 -2.0, %v1500_v43  ;;  %v1218_v8 = vmul.f32 %v1202_v21, %v4397_v35 }
 0x1bb   : > { %v1394_v22 = vadd.f32 3.7544086, %v1378_v61  ;;  %v673_v15 = vadd.f32 -275.9285, %v657_v6  ;;  %v339_v1 = vmul.u32 128, %v320_v49  ;;  %v4470_v23 = vmul.f32 1.1920929e-07, %v564_v48 }
 0x1bc   : > { %v1858_v34 = vadd.f32 2.4451342, %v1842_v2  ;;  %2848 = vrsqrt.f32 %v4466_v54  ;;  %v483_v56 = vmul.u32 2221713035, %v467_v39  ;;  %v2288_v42 = vadd.f32 %v2272_v12, %v2176_v55 }
 0x1bd   : > { %v2287_v47 = vadd.f32 %v2271_v10, %v2175_v26  ;;  %v1698_v20 = vadd.f32 -2.4007583, %v1682_v38  ;;  %v754_v19 = vmul.f32 %v738_v52, %v4344_v24  ;;  %v946_v46 = vadd.f32 1.0, %v930_v31 }
 0x1be   : > { %v881_v4 = vadd.f32 66.801315, %v865_v16  ;;  %2850 = vlog2.f32 %v4470_v23  ;;  %v1234_v37 = vadd.f32 -2.5497324, %v1218_v8  ;;  %v1410_v53 = vmul.f32 %v1394_v22, %v4397_v35 }
 0x1bf   : > { %v689_v59 = vmul.f32 %v673_v15, %v4425_v30  ;;  %v356_v63 = vadd.s32 %v3493_v14, %v339_v1  ;;  %v1874_v58 = vmul.f32 %v1858_v34, %v4436_v45  ;;  %vm1103_vm0 = vcmp.eq.f32.partialorder %v4449_v33, inf }
 0x1c0   : > { %v1106_v57 = vand.u32 2147483648, %v4449_v33  ;;  %v499_v0 = vshrl.u32 %v483_v56, 16  ;;  %v1714_v24 = vmul.f32 %v1698_v20, %v4436_v45  ;;  %vm1105_vm1 = vcmp.eq.f32.partialorder %v4449_v33, 0.0 }
 0x1c1   : > { %v2847_v51 = vpop.eup %2846  ;;  %v2302_v3 = vpack.c.bf16 %v2288_v42, %v2287_v47  ;;  %v4483_v36 = vadd.f32 2.5066283, %v754_v19  ;;  %2852 = vrcp.f32 %v946_v46  ;;  %v897_v60 = vmul.f32 %v881_v4, %v4425_v30 }
 0x1c2   : > { %v1102_v62 = vmul.f32 %v2847_v51, %v4449_v33  ;;  %v1250_v11 = vmul.f32 %v1234_v37, %v4397_v35  ;;  %v1426_v44 = vadd.f32 1.0, %v1410_v53  ;;  %v1476_v27 = vsub.f32 1.0, %v4470_v23 }
 0x1c3   : > { %2540 = vmatpush3.bf16.msra.mxu0 %v2302_v3  ;;  %v1890_v40 = vadd.f32 3.7544086, %v1874_v58  ;;  %v705_v50 = vadd.f32 138.35776, %v689_v59  ;;  %v515_v18 = vxor.u32 %v499_v0, %v483_v56  ;;  %v1730_v21 = vadd.f32 -2.5497324, %v1714_v24 }
 0x1c4   : > { %v1104_v5 = vsel %vm1103_vm0, %v4449_v33, %v1102_v62  ;;  %2541 = vmatprep.subr.bf16.mxu0 %v3077_v25  ;;  %v372_v49 = vadd.s32 %v356_v63, %v3499_v29  ;;  %v913_v43 = vadd.f32 -13.280682, %v897_v60  ;;  %vm1599_vm2 = vcmp.eq.f32.partialorder %v4466_v54, inf }
 0x1c5   : > { %v4489_v7 = vsel %vm1105_vm1, %v1106_v57, %v1104_v5  ;;  %vm1601_vm3 = vcmp.eq.f32.partialorder %v4466_v54, 0.0  ;;  %v1602_v33 = vand.u32 2147483648, %v4466_v54  ;;  %2854 = vlog2.f32 %v1476_v27 }
 0x1c6   : > { %v1153_v61 = vmul.f32 -0.007784894, %v4489_v7  ;;  %v1313_v6 = vmul.f32 0.007784696, %v4489_v7  ;;  %v2849_v2 = vpop.eup %2848  ;;  %v1266_v38 = vadd.f32 4.3746643, %v1250_v11  ;;  %2856 = vrcp.f32 %v1426_v44 }
 0x1c7   : > { %v1598_v12 = vmul.f32 %v2849_v2, %v4466_v54  ;;  %v1906_v55 = vmul.f32 %v1890_v40, %v4436_v45  ;;  %v531_v26 = vshrl.u32 %v515_v18, 9  ;;  %v1746_v22 = vmul.f32 %v1730_v21, %v4436_v45 }
 0x1c8   : > { %v1169_v48 = vadd.f32 -0.32239646, %v1153_v61  ;;  %v1329_v39 = vadd.f32 0.32246712, %v1313_v6  ;;  %v2851_v10 = vpop.eup %2850  ;;  %v721_v15 = vmul.f32 %v705_v50, %v4425_v30  ;;  %v390_v34 = vxor.u32 %v3514_v41, %v372_v49 }
 0x1c9   : > { %v1600_v16 = vsel %vm1599_vm2, %v4466_v54, %v1598_v12  ;;  %v1010_v8 = vmul.f32 0.6931472, %v2851_v10  ;;  %v929_v56 = vmul.f32 %v913_v43, %v4425_v30  ;;  %v1922_v46 = vadd.f32 1.0, %v1906_v55 }
 0x1ca   : > { %v1185_v52 = vmul.f32 %v1169_v48, %v4489_v7  ;;  %v1345_v31 = vmul.f32 %v1329_v39, %v4489_v7  ;;  %v4507_v1 = vsel %vm1601_vm3, %v1602_v33, %v1600_v16  ;;  %v4514_v37 = vadd.f32 -0.5, %v4470_v23 }
 0x1cb   : > { %v1649_v20 = vmul.f32 -0.007784894, %v4507_v1  ;;  %v2853_v19 = vpop.eup %2852  ;;  %v1809_v4 = vmul.f32 0.007784696, %v4507_v1  ;;  %v4516_v53 = vmul.f32 -2.0, %v1010_v8  ;;  %v547_v51 = vcvt.s32.f32 %v531_v26 }
 0x1cc   : > { %v1201_v42 = vadd.f32 -2.4007583, %v1185_v52  ;;  %v1361_v47 = vadd.f32 2.4451342, %v1345_v31  ;;  %v1762_v58 = vadd.f32 4.3746643, %v1746_v22  ;;  %v4526_v50 = vmul.f32 %v4514_v37, %v4514_v37 }
 0x1cd   : > { %v1665_v63 = vadd.f32 -0.32239646, %v1649_v20  ;;  %v737_v57 = vadd.f32 -30.664799, %v721_v15  ;;  %v1825_v0 = vadd.f32 0.32246712, %v1809_v4  ;;  %2858 = vrsqrt.f32 %v4516_v53 }
 0x1ce   : > { %v1217_v54 = vmul.f32 %v1201_v42, %v4489_v7  ;;  %v1377_v59 = vmul.f32 %v1361_v47, %v4489_v7  ;;  %v945_v24 = vadd.f32 1.0, %v929_v56  ;;  %2860 = vrcp.f32 %v1922_v46 }
 0x1cf   : > { %v1681_v3 = vmul.f32 %v1665_v63, %v4507_v1  ;;  %v1841_v11 = vmul.f32 %v1825_v0, %v4507_v1  ;;  %v406_v44 = vshrl.u32 %v390_v34, 16  ;;  %v2855_v5 = vpop.eup %2854  ;;  %v563_v18 = vadd.f32 0.5, %v547_v51 }
 0x1d0   : > { %v1393_v62 = vadd.f32 3.7544086, %v1377_v59  ;;  %v1233_v60 = vadd.f32 -2.5497324, %v1217_v54  ;;  %v2857_v21 = vpop.eup %2856  ;;  %v786_v61 = vmul.f32 %v4302_v17, %v4483_v36  ;;  %v1282_v6 = vmul.f32 %v1266_v38, %v4397_v35 }
 0x1d1   : > { %v1697_v40 = vadd.f32 -2.4007583, %v1681_v3  ;;  %v1857_v49 = vadd.f32 2.4451342, %v1841_v11  ;;  %v319_v2 = vadd.s32 112, %v3483_v9  ;;  %v753_v43 = vmul.f32 %v737_v57, %v4425_v30 }
 0x1d2   : > { %v1409_v27 = vmul.f32 %v1393_v62, %v4489_v7  ;;  %2862 = vrcp.f32 %v945_v24  ;;  %v1249_v39 = vmul.f32 %v1233_v60, %v4489_v7  ;;  %v1506_v10 = vmul.f32 0.6931472, %v2855_v5 }
 0x1d3   : > { %v1713_v48 = vmul.f32 %v1697_v40, %v4507_v1  ;;  %v1873_v12 = vmul.f32 %v1857_v49, %v4507_v1  ;;  %v422_v55 = vxor.u32 %v406_v44, %v390_v34  ;;  %v1778_v26 = vmul.f32 %v1762_v58, %v4436_v45 }
 0x1d4   : > { %v1425_v33 = vadd.f32 1.0, %v1409_v27  ;;  %v804_v35 = vmul.f32 -54.476097, %v4526_v50  ;;  %v4538_v36 = vmul.f32 1.1920929e-07, %v563_v18  ;;  %v1298_v9 = vadd.f32 2.938164, %v1282_v6 }
 0x1d5   : > { %v1729_v17 = vadd.f32 -2.5497324, %v1713_v48  ;;  %v1889_v30 = vadd.f32 3.7544086, %v1873_v12  ;;  %v4540_v38 = vmul.f32 -2.0, %v1506_v10  ;;  %v338_v42 = vmul.u32 128, %v319_v2 }
 0x1d6   : > { %2864 = vrcp.f32 %v1425_v33  ;;  %v769_v52 = vadd.f32 2.5066283, %v753_v43  ;;  %v4544_v16 = vadd.f32 -0.5, %v4538_v36  ;;  %v1265_v8 = vadd.f32 4.3746643, %v1249_v39 }
 0x1d7   : > { %v1745_v31 = vmul.f32 %v1729_v17, %v4507_v1  ;;  %2866 = vlog2.f32 %v4538_v36  ;;  %v1905_v45 = vmul.f32 %v1889_v30, %v4507_v1  ;;  %v438_v22 = vmul.u32 2146121005, %v422_v55  ;;  %v2859_v15 = vpop.eup %2858 }
 0x1d8   : > { %v1794_v34 = vadd.f32 2.938164, %v1778_v26  ;;  %v820_v56 = vadd.f32 161.58583, %v804_v35  ;;  %2868 = vrsqrt.f32 %v4540_v38  ;;  %v2861_v47 = vpop.eup %2860  ;;  %v974_v20 = vmul.f32 %v2853_v19, %v786_v61 }
 0x1d9   : > { %v1454_v46 = vmul.f32 %v2857_v21, %v1298_v9  ;;  %v1921_v4 = vadd.f32 1.0, %v1905_v45  ;;  %vm1986_vm4 = vcmp.lt.f32.partialorder %v4275_v32, 0.02425  ;;  %v785_v54 = vmul.f32 %v4415_v28, %v769_v52  ;;  %v2241_v52 = vpop.permute.xlu1 %2240 }
 0x1da   : > { %v1761_v59 = vadd.f32 4.3746643, %v1745_v31  ;;  %v4553_v63 = vmul.f32 %v4544_v16, %v4544_v16  ;;  %v1281_v51 = vmul.f32 %v1265_v8, %v4489_v7  ;;  %v1123_v58 = vmul.f32 %v2859_v15, %v4516_v53 }
 0x1db   : > { %2870 = vrcp.f32 %v1921_v4  ;;  %v454_v57 = vshrl.u32 %v438_v22, 15  ;;  %v1950_v24 = vmul.f32 %v2861_v47, %v1794_v34  ;;  %v836_v19 = vmul.f32 %v820_v56, %v4526_v50  ;;  %v2236_v34 = vpop.permute.xlu0 %2235 }
 0x1dc   : > { %v2863_v0 = vpop.eup %2862  ;;  %vm1124_vm5 = vcmp.eq.f32.partialorder %v4516_v53, inf  ;;  %v355_v62 = vadd.s32 %v3493_v14, %v338_v42  ;;  %v2002_v28 = vsel %vm1986_vm4, %v1454_v46, %v974_v20  ;;  %vm2018_vm6 = vcmp.gt.f32.partialorder %v4275_v32, 0.97575 }
 0x1dd   : > { %v1475_v3 = vsub.f32 1.0, %v4538_v36  ;;  %v1777_v60 = vmul.f32 %v1761_v59, %v4507_v1  ;;  %v628_v7 = vmul.f32 -39.69683, %v4526_v50  ;;  %v1127_v11 = vand.u32 2147483648, %v4516_v53 }
 0x1de   : > { %v803_v44 = vmul.f32 -54.476097, %v4553_v63  ;;  %v1297_v27 = vadd.f32 2.938164, %v1281_v51  ;;  %v1125_v40 = vsel %vm1124_vm5, %v4516_v53, %v1123_v58  ;;  %vm1126_vm7 = vcmp.eq.f32.partialorder %v4516_v53, 0.0 }
 0x1df   : > { %v470_v14 = vxor.u32 %v454_v57, %v438_v22  ;;  %v1970_v21 = vsub.f32 0.0, %v1950_v24  ;;  %v972_v61 = vmul.f32 %v2863_v0, %v785_v54  ;;  %v852_v6 = vadd.f32 -155.69897, %v836_v19  ;;  %v2177_v54 = vld [vmem:[%s3259_s10 + $0x50] sm:$0xff] }
 0x1e0   : > { %v2865_v5 = vpop.eup %2864  ;;  %v371_v49 = vadd.s32 %v355_v62, %v3499_v29  ;;  %vm1620_vm8 = vcmp.eq.f32.partialorder %v4540_v38, inf  ;;  %vm1622_vm9 = vcmp.eq.f32.partialorder %v4540_v38, 0.0  ;;  %2872 = vlog2.f32 %v1475_v3 }
 0x1e1   : > { %v2867_v18 = vpop.eup %2866  ;;  %v1793_v43 = vadd.f32 2.938164, %v1777_v60  ;;  %v4571_v33 = vsel %vm1126_vm7, %v1127_v11, %v1125_v40  ;;  %v1623_v48 = vand.u32 2147483648, %v4540_v38  ;;  %v819_v53 = vadd.f32 161.58583, %v803_v44 }
 0x1e2   : > { %v1008_v1 = vmul.f32 0.6931472, %v2867_v18  ;;  %v2869_v2 = vpop.eup %2868  ;;  %v1452_v39 = vmul.f32 %v2865_v5, %v1297_v27  ;;  %v486_v55 = vmul.u32 2221713035, %v470_v14  ;;  %vm1985_vm10 = vcmp.lt.f32.partialorder %v4404_v13, 0.02425 }
 0x1e3   : > { %v1619_v12 = vmul.f32 %v2869_v2, %v4540_v38  ;;  %v644_v29 = vadd.f32 220.9461, %v628_v7  ;;  %v868_v26 = vmul.f32 %v852_v6, %v4526_v50  ;;  %v389_v17 = vxor.u32 %v3514_v41, %v371_v49 }
 0x1e4   : > { %v4575_v10 = vmul.f32 -2.0, %v1008_v1  ;;  %v2034_v9 = vsel %vm2018_vm6, %v1970_v21, %v2002_v28  ;;  %v1316_v8 = vmul.f32 0.007784696, %v4571_v33  ;;  %v835_v41 = vmul.f32 %v819_v53, %v4553_v63 }
 0x1e5   : > { %v2871_v35 = vpop.eup %2870  ;;  %v1621_v30 = vsel %vm1620_vm8, %v4540_v38, %v1619_v12  ;;  %v2001_v32 = vsel %vm1985_vm10, %v1452_v39, %v972_v61  ;;  %vm2017_vm11 = vcmp.gt.f32.partialorder %v4404_v13, 0.97575  ;;  %v502_v15 = vshrl.u32 %v486_v55, 16  ;;  %v2178_v38 = vld [vmem:[%s3259_s10 + $0x58] sm:$0xff] }
 0x1e6   : > { %2874 = vrsqrt.f32 %v4575_v10  ;;  %v1948_v31 = vmul.f32 %v2871_v35, %v1793_v43  ;;  %v4589_v45 = vsel %vm1622_vm9, %v1623_v48, %v1621_v30  ;;  %v660_v42 = vmul.f32 %v644_v29, %v4526_v50 }
 0x1e7   : > { %v1812_v22 = vmul.f32 0.007784696, %v4589_v45  ;;  %v884_v47 = vadd.f32 66.801315, %v868_v26  ;;  %v405_v20 = vshrl.u32 %v389_v17, 16  ;;  %v2274_v46 = vmul.f32 %v2241_v52, %v2034_v9 }
 0x1e8   : > { %v1969_v56 = vsub.f32 0.0, %v1948_v31  ;;  %v627_v4 = vmul.f32 -39.69683, %v4553_v63  ;;  %v1332_v51 = vadd.f32 0.32246712, %v1316_v8  ;;  %v518_v19 = vxor.u32 %v502_v15, %v486_v55 }
 0x1e9   : > { %v851_v58 = vadd.f32 -155.69897, %v835_v41  ;;  %v1652_v13 = vmul.f32 -0.007784894, %v4589_v45  ;;  %v1828_v24 = vadd.f32 0.32246712, %v1812_v22  ;;  %v900_v28 = vmul.f32 %v884_v47, %v4526_v50 }
 0x1ea   : > { %v2033_v59 = vsel %vm2017_vm11, %v1969_v56, %v2001_v32  ;;  %v2873_v57 = vpop.eup %2872  ;;  %v676_v62 = vadd.f32 -275.9285, %v660_v42  ;;  %v421_v3 = vxor.u32 %v405_v20, %v389_v17  ;;  %v2290_v60 = vadd.f32 %v2274_v46, %v2178_v38 }
 0x1eb   : > { %v2273_v0 = vmul.f32 %v2236_v34, %v2033_v59  ;;  %v1156_v11 = vmul.f32 -0.007784894, %v4571_v33  ;;  %v643_v44 = vadd.f32 220.9461, %v627_v4  ;;  %v1348_v5 = vmul.f32 %v1332_v51, %v4571_v33 }
 0x1ec   : > { %v867_v27 = vmul.f32 %v851_v58, %v4553_v63  ;;  %vm1117_vm12 = vcmp.eq.f32.partialorder %v4575_v10, inf  ;;  %v1504_v40 = vmul.f32 0.6931472, %v2873_v57  ;;  %v1668_v18 = vadd.f32 -0.32239646, %v1652_v13 }
 0x1ed   : > { %v2289_v7 = vadd.f32 %v2273_v0, %v2177_v54  ;;  %v1844_v21 = vmul.f32 %v1828_v24, %v4589_v45  ;;  %v1120_v61 = vand.u32 2147483648, %v4575_v10  ;;  %v534_v6 = vshrl.u32 %v518_v19, 9 }
 0x1ee   : > { %vm1119_vm13 = vcmp.eq.f32.partialorder %v4575_v10, 0.0  ;;  %v4608_v1 = vmul.f32 -2.0, %v1504_v40  ;;  %v437_v2 = vmul.u32 2146121005, %v421_v3  ;;  %v1172_v43 = vadd.f32 -0.32239646, %v1156_v11 }
 0x1ef   : > { %v659_v48 = vmul.f32 %v643_v44, %v4553_v63  ;;  %v550_v53 = vcvt.s32.f32 %v534_v6  ;;  %v2303_v39 = vpack.c.bf16 %v2290_v60, %v2289_v7  ;;  %v692_v12 = vmul.f32 %v676_v62, %v4526_v50 }
 0x1f0   : > { %v2875_v14 = vpop.eup %2874  ;;  %v1364_v55 = vadd.f32 2.4451342, %v1348_v5  ;;  %2876 = vrsqrt.f32 %v4608_v1  ;;  %v1684_v26 = vmul.f32 %v1668_v18, %v4589_v45  ;;  %v1860_v17 = vadd.f32 2.4451342, %v1844_v21 }
 0x1f1   : > { %v1116_v49 = vmul.f32 %v2875_v14, %v4575_v10  ;;  %v883_v35 = vadd.f32 66.801315, %v867_v27  ;;  %2542 = vmatpush3.bf16.msra.mxu0 %v2303_v39  ;;  %v566_v31 = vadd.f32 0.5, %v550_v53  ;;  %v453_v8 = vshrl.u32 %v437_v2, 15 }
 0x1f2   : > { %2543 = vmatprep.subr.bf16.mxu0 %v3077_v25  ;;  %v916_v41 = vadd.f32 -13.280682, %v900_v28  ;;  %v675_v32 = vadd.f32 -275.9285, %v659_v48  ;;  %v1380_v22 = vmul.f32 %v1364_v55, %v4571_v33  ;;  %vm3078_vm14 = vmmov 0  }
 0x1f3   : > { %v1118_v29 = vsel %vm1117_vm12, %v4575_v10, %v1116_v49  ;;  %v1188_v10 = vmul.f32 %v1172_v43, %v4571_v33  ;;  %v4624_v56 = vmul.f32 1.1920929e-07, %v566_v31  ;;  %2547 = vmatprep.mubr.msk.bf16.mxu0 %vm3078_vm14, %v3077_v25  ;;  %v1700_v42 = vadd.f32 -2.4007583, %v1684_v26 }
 0x1f4   : > { %v4617_v9 = vsel %vm1119_vm13, %v1120_v61, %v1118_v29  ;;  %v1876_v47 = vmul.f32 %v1860_v17, %v4589_v45  ;;  %v469_v20 = vxor.u32 %v453_v8, %v437_v2  ;;  %v899_v46 = vmul.f32 %v883_v35, %v4553_v63 }
 0x1f5   : > { %v1155_v30 = vmul.f32 -0.007784894, %v4617_v9  ;;  %v1315_v52 = vmul.f32 0.007784696, %v4617_v9  ;;  %2878 = vlog2.f32 %v4624_v56  ;;  %v708_v38 = vadd.f32 138.35776, %v692_v12 }
 0x1f6   : > { %v932_v54 = vmul.f32 %v916_v41, %v4526_v50  ;;  %v1478_v51 = vsub.f32 1.0, %v4624_v56  ;;  %v1204_v58 = vadd.f32 -2.4007583, %v1188_v10  ;;  %v1396_v57 = vadd.f32 3.7544086, %v1380_v22 }
 0x1f7   : > { %v1171_v15 = vadd.f32 -0.32239646, %v1155_v30  ;;  %v1331_v34 = vadd.f32 0.32246712, %v1315_v52  ;;  %v691_v0 = vmul.f32 %v675_v32, %v4553_v63  ;;  %v1716_v24 = vmul.f32 %v1700_v42, %v4589_v45 }
 0x1f8   : > { %v1892_v19 = vadd.f32 3.7544086, %v1876_v47  ;;  %2880 = vlog2.f32 %v1478_v51  ;;  %v485_v62 = vmul.u32 2221713035, %v469_v20  ;;  %v915_v3 = vadd.f32 -13.280682, %v899_v46 }
 0x1f9   : > { %v1347_v4 = vmul.f32 %v1331_v34, %v4617_v9  ;;  %v1187_v59 = vmul.f32 %v1171_v15, %v4617_v9  ;;  %vm1613_vm15 = vcmp.eq.f32.partialorder %v4608_v1, inf  ;;  %v1616_v7 = vand.u32 2147483648, %v4608_v1 }
 0x1fa   : > { %v2877_v28 = vpop.eup %2876  ;;  %vm1615_vm0 = vcmp.eq.f32.partialorder %v4608_v1, 0.0  ;;  %v501_v5 = vshrl.u32 %v485_v62, 16  ;;  %v724_v27 = vmul.f32 %v708_v38, %v4526_v50  ;;  %v1220_v40 = vmul.f32 %v1204_v58, %v4571_v33 }
 0x1fb   : > { %v1363_v13 = vadd.f32 2.4451342, %v1347_v4  ;;  %v1203_v11 = vadd.f32 -2.4007583, %v1187_v59  ;;  %v1612_v44 = vmul.f32 %v2877_v28, %v4608_v1  ;;  %v1412_v14 = vmul.f32 %v1396_v57, %v4571_v33 }
 0x1fc   : > { %v707_v18 = vadd.f32 138.35776, %v691_v0  ;;  %v948_v21 = vadd.f32 1.0, %v932_v54  ;;  %v1732_v61 = vadd.f32 -2.5497324, %v1716_v24  ;;  %v1908_v6 = vmul.f32 %v1892_v19, %v4589_v45 }
 0x1fd   : > { %v1379_v60 = vmul.f32 %v1363_v13, %v4617_v9  ;;  %v1614_v49 = vsel %vm1613_vm15, %v4608_v1, %v1612_v44  ;;  %v931_v2 = vmul.f32 %v915_v3, %v4553_v63  ;;  %v517_v53 = vxor.u32 %v501_v5, %v485_v62 }
 0x1fe   : > { %v4647_v48 = vsel %vm1615_vm0, %v1616_v7, %v1614_v49  ;;  %v1219_v39 = vmul.f32 %v1203_v11, %v4617_v9  ;;  %v740_v26 = vadd.f32 -30.664799, %v724_v27  ;;  %v1236_v17 = vadd.f32 -2.5497324, %v1220_v40 }
 0x1ff   : > { %v1395_v43 = vadd.f32 3.7544086, %v1379_v60  ;;  %v1651_v12 = vmul.f32 -0.007784894, %v4647_v48  ;;  %v1811_v55 = vmul.f32 0.007784696, %v4647_v48  ;;  %v2879_v29 = vpop.eup %2878  ;;  %v723_v30 = vmul.f32 %v707_v18, %v4553_v63 }
 0x200   : > { %v1428_v35 = vadd.f32 1.0, %v1412_v14  ;;  %v1748_v1 = vmul.f32 %v1732_v61, %v4589_v45  ;;  %v1924_v52 = vadd.f32 1.0, %v1908_v6  ;;  %2882 = vrcp.f32 %v948_v21 }
 0x201   : > { %v1667_v31 = vadd.f32 -0.32239646, %v1651_v12  ;;  %v1827_v8 = vadd.f32 0.32246712, %v1811_v55  ;;  %v947_v41 = vadd.f32 1.0, %v931_v2  ;;  %v1411_v10 = vmul.f32 %v1395_v43, %v4617_v9 }
 0x202   : > { %v533_v32 = vshrl.u32 %v517_v53, 9  ;;  %v2881_v22 = vpop.eup %2880  ;;  %v1235_v15 = vadd.f32 -2.5497324, %v1219_v39  ;;  %v1014_v47 = vmul.f32 0.6931472, %v2879_v29  ;;  %v1252_v20 = vmul.f32 %v1236_v17, %v4571_v33 }
 0x203   : > { %v1683_v34 = vmul.f32 %v1667_v31, %v4647_v48  ;;  %v1843_v42 = vmul.f32 %v1827_v8, %v4647_v48  ;;  %2884 = vrcp.f32 %v1428_v35  ;;  %v739_v46 = vadd.f32 -30.664799, %v723_v30 }
 0x204   : > { %v1510_v4 = vmul.f32 0.6931472, %v2881_v22  ;;  %v1764_v38 = vadd.f32 4.3746643, %v1748_v1  ;;  %2886 = vrcp.f32 %v1924_v52  ;;  %v1427_v51 = vadd.f32 1.0, %v1411_v10 }
 0x205   : > { %v1699_v54 = vadd.f32 -2.4007583, %v1683_v34  ;;  %v1859_v59 = vadd.f32 2.4451342, %v1843_v42  ;;  %v4658_v58 = vmul.f32 -2.0, %v1014_v47  ;;  %v549_v0 = vcvt.s32.f32 %v533_v32 }
 0x206   : > { %v4660_v57 = vmul.f32 -2.0, %v1510_v4  ;;  %2888 = vrcp.f32 %v947_v41  ;;  %v1251_v13 = vmul.f32 %v1235_v15, %v4617_v9  ;;  %v756_v62 = vmul.f32 %v740_v26, %v4526_v50 }
 0x207   : > { %v1715_v24 = vmul.f32 %v1699_v54, %v4647_v48  ;;  %v1875_v19 = vmul.f32 %v1859_v59, %v4647_v48  ;;  %2890 = vrsqrt.f32 %v4658_v58  ;;  %v1268_v28 = vadd.f32 4.3746643, %v1252_v20 }
 0x208   : > { %2892 = vrsqrt.f32 %v4660_v57  ;;  %v1780_v7 = vmul.f32 %v1764_v38, %v4589_v45  ;;  %v755_v11 = vmul.f32 %v739_v46, %v4553_v63  ;;  %v565_v44 = vadd.f32 0.5, %v549_v0 }
 0x209   : > { %v1731_v3 = vadd.f32 -2.5497324, %v1715_v24  ;;  %v1891_v60 = vadd.f32 3.7544086, %v1875_v19  ;;  %2894 = vrcp.f32 %v1427_v51  ;;  %v1267_v5 = vadd.f32 4.3746643, %v1251_v13  ;;  %v2251_v13 = vpop.permute.xlu1 %2250 }
 0x20a   : > { %v4673_v50 = vadd.f32 -0.5, %v4624_v56  ;;  %v2883_v14 = vpop.eup %2882  ;;  %v772_v18 = vadd.f32 2.5066283, %v756_v62  ;;  %v1284_v21 = vmul.f32 %v1268_v28, %v4571_v33  ;;  %v771_v49 = vadd.f32 2.5066283, %v755_v11  ;;  %v2246_v28 = vpop.permute.xlu0 %2245 }
 0x20b   : > { %v1747_v27 = vmul.f32 %v1731_v3, %v4647_v48  ;;  %v1907_v40 = vmul.f32 %v1891_v60, %v4647_v48  ;;  %v4676_v2 = vmul.f32 1.1920929e-07, %v565_v44  ;;  %v1796_v43 = vadd.f32 2.938164, %v1780_v7 }
 0x20c   : > { %v1283_v53 = vmul.f32 %v1267_v5, %v4617_v9  ;;  %v4681_v39 = vmul.f32 %v4673_v50, %v4673_v50  ;;  %v788_v55 = vmul.f32 %v4514_v37, %v772_v18  ;;  %v1300_v29 = vadd.f32 2.938164, %v1284_v21  ;;  %v2179_v21 = vld [vmem:[%s3259_s10 + $0x60] sm:$0xff] }
 0x20d   : > { %v1923_v61 = vadd.f32 1.0, %v1907_v40  ;;  %v2885_v6 = vpop.eup %2884  ;;  %v1763_v45 = vadd.f32 4.3746643, %v1747_v27  ;;  %v787_v26 = vmul.f32 %v4544_v16, %v771_v49  ;;  %v1477_v35 = vsub.f32 1.0, %v4676_v2  ;;  %v2180_v27 = vld [vmem:[%s3259_s10 + $0x68] sm:$0xff] }
 0x20e   : > { %v2887_v63 = vpop.eup %2886  ;;  %v1299_v52 = vadd.f32 2.938164, %v1283_v53  ;;  %v806_v9 = vmul.f32 -54.476097, %v4681_v39  ;;  %vm1988_vm1 = vcmp.lt.f32.partialorder %v4470_v23, 0.02425  ;;  %v1458_v8 = vmul.f32 %v2885_v6, %v1300_v29 }
 0x20f   : > { %2896 = vrcp.f32 %v1923_v61  ;;  %v1779_v17 = vmul.f32 %v1763_v45, %v4647_v48  ;;  %v1954_v1 = vmul.f32 %v2887_v63, %v1796_v43  ;;  %vm1987_vm2 = vcmp.lt.f32.partialorder %v4538_v36, 0.02425 }
 0x210   : > { %v2889_v12 = vpop.eup %2888  ;;  %2898 = vlog2.f32 %v4676_v2  ;;  %v4693_v16 = vadd.f32 -0.5, %v4676_v2  ;;  %v978_v48 = vmul.f32 %v2883_v14, %v788_v55  ;;  %vm1634_vm3 = vcmp.eq.f32.partialorder %v4660_v57, inf }
 0x211   : > { %v2891_v33 = vpop.eup %2890  ;;  %v976_v10 = vmul.f32 %v2889_v12, %v787_v26  ;;  %v1795_v32 = vadd.f32 2.938164, %v1779_v17  ;;  %vm1138_vm4 = vcmp.eq.f32.partialorder %v4658_v58, inf  ;;  %2900 = vlog2.f32 %v1477_v35 }
 0x212   : > { %v2893_v30 = vpop.eup %2892  ;;  %v1137_v41 = vmul.f32 %v2891_v33, %v4658_v58  ;;  %v1972_v22 = vsub.f32 0.0, %v1954_v1  ;;  %v822_v34 = vadd.f32 161.58583, %v806_v9  ;;  %v1637_v42 = vand.u32 2147483648, %v4660_v57 }
 0x213   : > { %v2895_v31 = vpop.eup %2894  ;;  %v1633_v37 = vmul.f32 %v2893_v30, %v4660_v57  ;;  %v1141_v47 = vand.u32 2147483648, %v4658_v58  ;;  %vm1636_vm5 = vcmp.eq.f32.partialorder %v4660_v57, 0.0  ;;  %v4704_v46 = vmul.f32 %v4693_v16, %v4693_v16 }
 0x214   : > { %v1456_v15 = vmul.f32 %v2895_v31, %v1299_v52  ;;  %v2004_v38 = vsel %vm1988_vm1, %v1458_v8, %v978_v48  ;;  %vm2020_vm6 = vcmp.gt.f32.partialorder %v4470_v23, 0.97575  ;;  %v1139_v54 = vsel %vm1138_vm4, %v4658_v58, %v1137_v41 }
 0x215   : > { %v1635_v20 = vsel %vm1634_vm3, %v4660_v57, %v1633_v37  ;;  %vm1140_vm7 = vcmp.eq.f32.partialorder %v4658_v58, 0.0  ;;  %vm2019_vm8 = vcmp.gt.f32.partialorder %v4538_v36, 0.97575  ;;  %v838_v57 = vmul.f32 %v822_v34, %v4681_v39 }
 0x216   : > { %v2003_v51 = vsel %vm1987_vm2, %v1456_v15, %v976_v10  ;;  %v4715_v0 = vsel %vm1636_vm5, %v1637_v42, %v1635_v20  ;;  %v2036_v24 = vsel %vm2020_vm6, %v1972_v22, %v2004_v38  ;;  %v4717_v23 = vsel %vm1140_vm7, %v1141_v47, %v1139_v54 }
 0x217   : > { %v805_v62 = vmul.f32 -54.476097, %v4704_v46  ;;  %v630_v3 = vmul.f32 -39.69683, %v4681_v39  ;;  %v1814_v36 = vmul.f32 0.007784696, %v4715_v0  ;;  %v2276_v7 = vmul.f32 %v2251_v13, %v2036_v24 }
 0x218   : > { %v854_v11 = vadd.f32 -155.69897, %v838_v57  ;;  %v1318_v44 = vmul.f32 0.007784696, %v4717_v23  ;;  %v1654_v6 = vmul.f32 -0.007784894, %v4715_v0 }
 0x219   : > { %v2897_v4 = vpop.eup %2896  ;;  %v821_v14 = vadd.f32 161.58583, %v805_v62  ;;  %v646_v61 = vadd.f32 220.9461, %v630_v3  ;;  %v1830_v49 = vadd.f32 0.32246712, %v1814_v36  ;;  %v2292_v63 = vadd.f32 %v2276_v7, %v2180_v27 }
 0x21a   : > { %v1952_v59 = vmul.f32 %v2897_v4, %v1795_v32  ;;  %v2899_v58 = vpop.eup %2898  ;;  %v870_v43 = vmul.f32 %v854_v11, %v4681_v39  ;;  %v1334_v53 = vadd.f32 0.32246712, %v1318_v44  ;;  %v1158_v29 = vmul.f32 -0.007784894, %v4717_v23 }
 0x21b   : > { %v2901_v5 = vpop.eup %2900  ;;  %v1012_v18 = vmul.f32 0.6931472, %v2899_v58  ;;  %v837_v33 = vmul.f32 %v821_v14, %v4704_v46  ;;  %v662_v26 = vmul.f32 %v646_v61, %v4681_v39  ;;  %v629_v17 = vmul.f32 -39.69683, %v4704_v46 }
 0x21c   : > { %v1971_v19 = vsub.f32 0.0, %v1952_v59  ;;  %v1508_v12 = vmul.f32 0.6931472, %v2901_v5  ;;  %v1670_v35 = vadd.f32 -0.32239646, %v1654_v6  ;;  %v1846_v30 = vmul.f32 %v1830_v49, %v4715_v0 }
 0x21d   : > { %v1029_v45 = vmul.f32 -2.0, %v1012_v18  ;;  %v886_v1 = vadd.f32 66.801315, %v870_v43  ;;  %v1350_v52 = vmul.f32 %v1334_v53, %v4717_v23  ;;  %v1174_v31 = vadd.f32 -0.32239646, %v1158_v29 }
 0x21e   : > { %v2035_v60 = vsel %vm2019_vm8, %v1971_v19, %v2003_v51  ;;  %v1525_v9 = vmul.f32 -2.0, %v1508_v12  ;;  %v853_v37 = vadd.f32 -155.69897, %v837_v33  ;;  %v678_v8 = vadd.f32 -275.9285, %v662_v26 }
 0x21f   : > { %v2275_v40 = vmul.f32 %v2246_v28, %v2035_v60  ;;  %2902 = vrsqrt.f32 %v1029_v45  ;;  %v645_v41 = vadd.f32 220.9461, %v629_v17  ;;  %v1686_v10 = vmul.f32 %v1670_v35, %v4715_v0 }
 0x220   : > { %v1862_v32 = vadd.f32 2.4451342, %v1846_v30  ;;  %2904 = vrsqrt.f32 %v1525_v9  ;;  %v902_v22 = vmul.f32 %v886_v1, %v4681_v39  ;;  %v1366_v15 = vadd.f32 2.4451342, %v1350_v52 }
 0x221   : > { %v2291_v55 = vadd.f32 %v2275_v40, %v2179_v21  ;;  %v1190_v34 = vmul.f32 %v1174_v31, %v4717_v23  ;;  %v869_v42 = vmul.f32 %v853_v37, %v4704_v46  ;;  %v694_v47 = vmul.f32 %v678_v8, %v4681_v39 }
 0x222   : > { %v661_v20 = vmul.f32 %v645_v41, %v4704_v46  ;;  %v1702_v38 = vadd.f32 -2.4007583, %v1686_v10  ;;  %v1878_v54 = vmul.f32 %v1862_v32, %v4715_v0  ;;  %vm1131_vm9 = vcmp.eq.f32.partialorder %v1029_v45, inf }
 0x223   : > { %v2304_v48 = vpack.c.bf16 %v2292_v63, %v2291_v55  ;;  %v1134_v59 = vand.u32 2147483648, %v1029_v45  ;;  %v918_v51 = vadd.f32 -13.280682, %v902_v22  ;;  %v1382_v57 = vmul.f32 %v1366_v15, %v4717_v23 }
 0x224   : > { %vm1133_vm10 = vcmp.eq.f32.partialorder %v1029_v45, 0.0  ;;  %v885_v24 = vadd.f32 66.801315, %v869_v42  ;;  %v710_v19 = vadd.f32 138.35776, %v694_v47  ;;  %v1718_v58 = vmul.f32 %v1702_v38, %v4715_v0 }
 0x225   : > { %2544 = vmatpush3.bf16.msra.mxu0 %v2304_v48  ;;  %v1894_v28 = vadd.f32 3.7544086, %v1878_v54  ;;  %v677_v3 = vadd.f32 -275.9285, %v661_v20  ;;  %v934_v36 = vmul.f32 %v918_v51, %v4681_v39  ;;  %v1398_v7 = vadd.f32 3.7544086, %v1382_v57 }
 0x226   : > { %2545 = vmatprep.subr.bf16.mxu0 %v3077_v25  ;;  %v1206_v25 = vadd.f32 -2.4007583, %v1190_v34  ;;  %v901_v40 = vmul.f32 %v885_v24, %v4704_v46  ;;  %vm1627_vm11 = vcmp.eq.f32.partialorder %v1525_v9, inf  ;;  %v1630_v14 = vand.u32 2147483648, %v1525_v9 }
 0x227   : > { %vm1629_vm12 = vcmp.eq.f32.partialorder %v1525_v9, 0.0  ;;  %v726_v6 = vmul.f32 %v710_v19, %v4681_v39  ;;  %v1734_v49 = vadd.f32 -2.5497324, %v1718_v58  ;;  %v693_v63 = vmul.f32 %v677_v3, %v4704_v46 }
 0x228   : > { %v1222_v27 = vmul.f32 %v1206_v25, %v4717_v23  ;;  %v1414_v43 = vmul.f32 %v1398_v7, %v4717_v23  ;;  %v950_v29 = vadd.f32 1.0, %v934_v36  ;;  %v917_v26 = vadd.f32 -13.280682, %v901_v40 }
 0x229   : > { %v2903_v4 = vpop.eup %2902  ;;  %v1750_v52 = vmul.f32 %v1734_v49, %v4715_v0  ;;  %v709_v37 = vadd.f32 138.35776, %v693_v63  ;;  %v742_v22 = vadd.f32 -30.664799, %v726_v6  ;;  %vm1990_vm13 = vcmp.lt.f32.partialorder %v4624_v56, 0.02425 }
 0x22a   : > { %v1130_v13 = vmul.f32 %v2903_v4, %v1029_v45  ;;  %v2905_v5 = vpop.eup %2904  ;;  %v1238_v33 = vadd.f32 -2.5497324, %v1222_v27  ;;  %v1430_v8 = vadd.f32 1.0, %v1414_v43  ;;  %v933_v15 = vmul.f32 %v917_v26, %v4704_v46 }
 0x22b   : > { %v1626_v61 = vmul.f32 %v2905_v5, %v1525_v9  ;;  %2906 = vrcp.f32 %v950_v29  ;;  %v725_v20 = vmul.f32 %v709_v37, %v4704_v46  ;;  %v1766_v54 = vadd.f32 4.3746643, %v1750_v52 }
 0x22c   : > { %v1132_v62 = vsel %vm1131_vm9, %v1029_v45, %v1130_v13  ;;  %v1910_v45 = vmul.f32 %v1894_v28, %v4715_v0  ;;  %v758_v57 = vmul.f32 %v742_v22, %v4681_v39  ;;  %v949_v25 = vadd.f32 1.0, %v933_v15  ;;  %v2181_v22 = vld [vmem:[%s3259_s10 + $0x70] sm:$0xff] }
 0x22d   : > { %v4743_v60 = vsel %vm1133_vm10, %v1134_v59, %v1132_v62  ;;  %v1628_v55 = vsel %vm1627_vm11, %v1525_v9, %v1626_v61  ;;  %v1254_v9 = vmul.f32 %v1238_v33, %v4717_v23  ;;  %v741_v58 = vadd.f32 -30.664799, %v725_v20 }
 0x22e   : > { %v1157_v11 = vmul.f32 -0.007784894, %v4743_v60  ;;  %v1317_v44 = vmul.f32 0.007784696, %v4743_v60  ;;  %v1631_v17 = vsel %vm1629_vm12, %v1630_v14, %v1628_v55  ;;  %v1926_v31 = vadd.f32 1.0, %v1910_v45 }
 0x22f   : > { %v1653_v1 = vmul.f32 -0.007784894, %v1631_v17  ;;  %v1813_v48 = vmul.f32 0.007784696, %v1631_v17  ;;  %v1270_v13 = vadd.f32 4.3746643, %v1254_v9  ;;  %v1782_v36 = vmul.f32 %v1766_v54, %v4715_v0 }
 0x230   : > { %v1173_v18 = vadd.f32 -0.32239646, %v1157_v11  ;;  %v1333_v21 = vadd.f32 0.32246712, %v1317_v44  ;;  %2908 = vrcp.f32 %v1926_v31  ;;  %v774_v11 = vadd.f32 2.5066283, %v758_v57  ;;  %v2261_v31 = vpop.permute.xlu1 %2260 }
 0x231   : > { %v1669_v32 = vadd.f32 -0.32239646, %v1653_v1  ;;  %v1829_v34 = vadd.f32 0.32246712, %v1813_v48  ;;  %2910 = vrcp.f32 %v1430_v8  ;;  %v1286_v44 = vmul.f32 %v1270_v13, %v4717_v23 }
 0x232   : > { %v1189_v53 = vmul.f32 %v1173_v18, %v4743_v60  ;;  %v1349_v12 = vmul.f32 %v1333_v21, %v4743_v60  ;;  %2912 = vrcp.f32 %v949_v25  ;;  %v757_v39 = vmul.f32 %v741_v58, %v4704_v46 }
 0x233   : > { %v1685_v47 = vmul.f32 %v1669_v32, %v1631_v17  ;;  %v1845_v38 = vmul.f32 %v1829_v34, %v1631_v17  ;;  %v1798_v21 = vadd.f32 2.938164, %v1782_v36  ;;  %v790_v6 = vmul.f32 %v4673_v50, %v774_v11 }
 0x234   : > { %v1205_v35 = vadd.f32 -2.4007583, %v1189_v53  ;;  %v1365_v30 = vadd.f32 2.4451342, %v1349_v12  ;;  %v1302_v49 = vadd.f32 2.938164, %v1286_v44 }
 0x235   : > { %v1701_v51 = vadd.f32 -2.4007583, %v1685_v47  ;;  %v1861_v24 = vadd.f32 2.4451342, %v1845_v38  ;;  %v2907_v18 = vpop.eup %2906  ;;  %v773_v43 = vadd.f32 2.5066283, %v757_v39 }
 0x236   : > { %v1221_v41 = vmul.f32 %v1205_v35, %v4743_v60  ;;  %v1381_v10 = vmul.f32 %v1365_v30, %v4743_v60  ;;  %v982_v12 = vmul.f32 %v2907_v18, %v790_v6  ;;  %vm2022_vm14 = vcmp.gt.f32.partialorder %v4624_v56, 0.97575 }
 0x237   : > { %v1717_v62 = vmul.f32 %v1701_v51, %v1631_v17  ;;  %v1877_v3 = vmul.f32 %v1861_v24, %v1631_v17  ;;  %v789_v33 = vmul.f32 %v4693_v16, %v773_v43  ;;  %vm1989_vm15 = vcmp.lt.f32.partialorder %v4676_v2, 0.02425 }
 0x238   : > { %v1397_v42 = vadd.f32 3.7544086, %v1381_v10  ;;  %v1237_v4 = vadd.f32 -2.5497324, %v1221_v41  ;;  %vm2021_vm0 = vcmp.gt.f32.partialorder %v4676_v2, 0.97575  ;;  %v2256_v10 = vpop.permute.xlu0 %2255 }
 0x239   : > { %v1733_v7 = vadd.f32 -2.5497324, %v1717_v62  ;;  %v1893_v5 = vadd.f32 3.7544086, %v1877_v3  ;;  %v2182_v41 = vld [vmem:[%s3259_s10 + $0x78] sm:$0xff] }
 0x23a   : > { %v1413_v59 = vmul.f32 %v1397_v42, %v4743_v60  ;;  %v1253_v28 = vmul.f32 %v1237_v4, %v4743_v60  ;;  %v2909_v61 = vpop.eup %2908  ;;  %v2296_v42 = vld [vmem:[%s3277_s7] sm:$0xff] }
 0x23b   : > { %v1749_v27 = vmul.f32 %v1733_v7, %v1631_v17  ;;  %v1909_v14 = vmul.f32 %v1893_v5, %v1631_v17  ;;  %v2911_v0 = vpop.eup %2910  ;;  %v1958_v53 = vmul.f32 %v2909_v61, %v1798_v21  ;;  %v2297_v20 = vpack.c.bf16 %v2296_v42, %v2296_v42  ;;  %v2295_v4 = vld [vmem:[#allocation2] sm:$0xff] }
 0x23c   : > { %v1429_v19 = vadd.f32 1.0, %v1413_v59  ;;  %v1269_v40 = vadd.f32 4.3746643, %v1253_v28  ;;  %v1462_v55 = vmul.f32 %v2911_v0, %v1302_v49  ;;  %v2913_v29 = vpop.eup %2912 }
 0x23d   : > { %v1925_v45 = vadd.f32 1.0, %v1909_v14  ;;  %v1765_v63 = vadd.f32 4.3746643, %v1749_v27  ;;  %v1974_v35 = vsub.f32 0.0, %v1958_v53 }
 0x23e   : > { %2914 = vrcp.f32 %v1429_v19  ;;  %v1285_v23 = vmul.f32 %v1269_v40, %v4743_v60  ;;  %v2006_v30 = vsel %vm1990_vm13, %v1462_v55, %v982_v12  ;;  %v980_v60 = vmul.f32 %v2913_v29, %v789_v33 }
 0x23f   : > { %2916 = vrcp.f32 %v1925_v45  ;;  %v1781_v46 = vmul.f32 %v1765_v63, %v1631_v17  ;;  %v2038_v37 = vsel %vm2022_vm14, %v1974_v35, %v2006_v30 }
 0x240   : > { %v1301_v26 = vadd.f32 2.938164, %v1285_v23  ;;  %v2278_v8 = vmul.f32 %v2261_v31, %v2038_v37 }
 0x241   : > { %v1797_v1 = vadd.f32 2.938164, %v1781_v46 }
 0x242   : > { %v2294_v56 = vadd.f32 %v2278_v8, %v2182_v41 }
 0x248   : > { %v2915_v50 = vpop.eup %2914 }
 0x249   : > { %v1460_v52 = vmul.f32 %v2915_v50, %v1301_v26  ;;  %v2917_v17 = vpop.eup %2916 }
 0x24a   : > { %v1956_v48 = vmul.f32 %v2917_v17, %v1797_v1 }
 0x24b   : > { %v2005_v16 = vsel %vm1989_vm15, %v1460_v52, %v980_v60 }
 0x24c   : > { %v1973_v32 = vsub.f32 0.0, %v1956_v48 }
 0x24e   : > { %v2037_v9 = vsel %vm2021_vm0, %v1973_v32, %v2005_v16 }
 0x24f   : > { %v2277_v15 = vmul.f32 %v2256_v10, %v2037_v9 }
 0x251   : > { %v2293_v34 = vadd.f32 %v2277_v15, %v2181_v22 }
 0x253   : > { %v2305_v47 = vpack.c.bf16 %v2294_v56, %v2293_v34 }
 0x255   : > { %2546 = vmatpush3.bf16.msra.mxu0 %v2305_v47 }
 0x258   : > { %2548 = vmatmul.mubr.bf16.vlgmr.msra.gmra.mrb[0].mxu0 %v2297_v20 }
 0x328   : > { %2351 = sbr.rel (%p2517_p0) target bundleno = 823 (0x337), region = 48 }
 0x32b   : > { %v2340_v38 = vpop.f32.mrb[0].mxu0 }
 0x32c   : > { %v2346_v54 = vadd.f32 %v2340_v38, %v2295_v4  ;;  %v2549_v59 = vpop.f32.mrb[1].mxu0 }
 0x32d   : > { %v2343_v51 = vpop.f32.mrb[2].mxu0 }
 0x32e   : > { %2347 = vst [vmem:[#allocation2] sm:$0xff] %v2346_v54  ;;  %v2550_v2 = vpop.f32.mrb[3].mxu0 }
 0x335   : > { %v2352_v57 = vld [vmem:[#allocation2] sm:$0xff] }
 0x336   : > { %2353 = vst [vmem:[%s273_s25] sm:$0xff] %v2352_v57 }
 0x337 PF: > { %s2519_s10 = sshll.u32 %s3058_s27, 7  ;;  %s2368_s30 = sshll.u32 %s273_s25, 4  ;;  %s2369_s30 = int_to_ptr.vmem [resolvable:$true] %s2368_s30 }
 0x338   : > { %s4785_s13 = scalar_lea.hbm %s4850_s5, %s2519_s10  ;;  %s4874_s26 = sand.u32 1, %s3034_s21  }
 0x339   : > { %s2355_s7 = scalar_lea.sflag [#allocation7], %s4874_s26  ;;  %s2948_s9 = scalar_lea.vmem %s2369_s30, 128 }
 0x33a   : > { %p2949_p1 = scmp.ne.s32.totalorder %s2369_s30, %s2948_s9  ;;  %p4875_p3 = scmp.ne.s32.totalorder %s4866_s16, 0 }
 0x33b   : > { %s3079_s6 = smov [#allocation8]  }
 0x33c   : > { %p2950_p6 = pnand %p2949_p1, %p4875_p3  ;;  %s2952_s23 = sshll.u32 %s3079_s6, 4  ;;  %s2953_s23 = int_to_ptr.vmem [resolvable:$false] %s2952_s23 }
 0x33d   : > { %s2954_s12 = scalar_lea.vmem %s2953_s23, 256  ;;  %p2955_p10 = scmp.lt.s32.totalorder %s2369_s30, %s2953_s23 }
 0x33e   : > { %p2951_p9 = pneg %p2950_p6  ;;  %p2956_p11 = scmp.lt.s32.totalorder %s2954_s12, %s2948_s9 }
 0x340   : > { %p2957_p5 = por %p2956_p11, %p2955_p10 }
 0x342   : > { %p2958_p8 = pnand %p2957_p5, %p2951_p9 }
 0x344   : > { %2961 = shalt.err (!%p2958_p8)
}
 0x345   : > { %s2962_s25 = scalar_lea.hbm %s4785_s13, 128  ;;  %s2966_s2 = scalar_lea.hbm %s4850_s5, 384 }
 0x346   : > { %p2963_p13 = scmp.ne.s32.totalorder %s4785_s13, %s2962_s25  ;;  %p2967_p4 = scmp.lt.u32.totalorder %s4785_s13, %s4850_s5 }
 0x347   : > { %p2968_p7 = scmp.lt.u32.totalorder %s2966_s2, %s2962_s25  ;;  %p2970_p1 = scmp.lt.u32.totalorder %s2962_s25, %s4785_s13 }
 0x348   : > { %p2964_p12 = pnand %p2963_p13, %p4875_p3 }
 0x349   : > { %p2969_p0 = por %p2968_p7, %p2967_p4 }
 0x34a   : > { %p2965_p2 = pneg %p2964_p12 }
 0x34b   : > { %p2971_p6 = por %p2970_p1, %p2969_p0 }
 0x34d   : > { %p2972_p9 = pnand %p2971_p6, %p2965_p2 }
 0x34f   : > { %2975 = shalt.err (!%p2972_p9)
}
 0x350   : > { %2554 = dma.vmem_to_hbm [thread:$0]  (%p4875_p3), %s2369_s30, 128, %s4785_s13, %s2355_s7  }
 0x351 PF: > { %p2565_p10 = scmp.ge.s32.totalorder %s3070_s29, 2  ;;  %s2380_s8 = sand.u32 1, %s3030_s20  }
 0x352   : > { %p4876_p11 = scmp.ne.s32.totalorder %s4868_s19, 0  ;;  %s2381_s15 = scalar_lea.sflag [#allocation7], %s2380_s8 }
 0x354   : > { %p2561_p5 = pnand %p2565_p10, %p4876_p11 }
 0x356   : > { %3025 = dma.done.wait (!%p2561_p5), %s2381_s15, 128  }
 0x357   : > { %3027 = vsyncadd (!%p2561_p5), %s2381_s15, 4294967168  ;;  %s22_s29 = sadd.s32 1, %s3070_s29   ;;  %s4877_s16 = sld [smem:[#allocation11_spill]] }
 0x358   : > { %p19_p8 = scmp.ge.s32.totalorder %s22_s29, 11   ;;  %s4878_s25 = sld [smem:[#allocation16_spill]] }
 0x359   : > { %s4879_s26 = sld [smem:[#allocation12_spill]]  ;;  %s4880_s27 = sld [smem:[#allocation13_spill]] }
 0x35a   : > { %s4881_s0 = sld [smem:[#allocation14_spill]]  ;;  %s4882_s28 = sld [smem:[#allocation15_spill]] }
 0x35b   : > { %s4883_s20 = smov %s3034_s21  ;;  %s4884_s21 = smov %s3038_s22 }
 0x35c   : > { %s4885_s22 = smov %s3200_s17  ;;  %s4886_s23 = smov %s3046_s24 }
 0x35d   : > { %s4887_s24 = smov %s4877_s16  ;;  %21 = sbr.rel (!%p19_p8) target bundleno = 12 (0xc), region = 98 }
 0x364   :  { %2386 = vsyncpa [#allocation6], 1 }
 0x365   :  { %2388 = vsyncpa [#allocation6 + $0x1], 1 }
 0x366   :  { %2389 = vsyncpa [#allocation7], 1 }
 0x367   :  { %2391 = vsyncpa [#allocation7 + $0x1], 1 }

</bundles_post_ra>
